<compile_context>
chip_gen: v7x
topology: tpu7x:2x2x1
jax: 0.10.0
libtpu: 0.0.40
codegen_flags: <defaults>
</compile_context>

<pallas_src>
import jax
import jax.numpy as jnp
from jax.experimental import pallas as pl
from jax.experimental.pallas import tpu as pltpu

EPS = 1e-5


def _round_up(x, m):
    return (x + m - 1) // m * m


# ------------------------------ Pallas kernels ------------------------------ #

def _conv_stats_kernel(w_ref, p_ref, y_ref, s_ref, q_ref):
    """y0 = W @ patches (MXU, bf16 in / f32 acc) + per-chunk sum / sumsq."""
    t = pl.program_id(1)
    y = jnp.dot(w_ref[...], p_ref[...], preferred_element_type=jnp.float32)
    y_ref[...] = y                                   # (Cout, tm), lane-dense

    @pl.when(t == 0)
    def _():
        s_ref[...] = jnp.zeros_like(s_ref)
        q_ref[...] = jnp.zeros_like(q_ref)

    s_ref[...] += y[None]                            # per-lane partial sums
    q_ref[...] += (y * y)[None]


def _scale_shift_relu_kernel(y_ref, a_ref, b_ref, o_ref):
    """Fused train-mode BatchNorm + ReLU as a single FMA + max."""
    o_ref[...] = jnp.maximum(y_ref[...] * a_ref[...] + b_ref[...], 0.0)


def _trilinear_kernel(khw_ref, ad_ref, x_ref, o_ref):
    """Per (n,c) slice: HW upsample (D,HW)@(HW,4HW), then D upsample (2D,D)@."""
    t = jnp.dot(x_ref[0], khw_ref[...], preferred_element_type=jnp.float32)
    o_ref[...] = jnp.dot(ad_ref[...], t, preferred_element_type=jnp.float32)[None]


# ------------------------------- JAX wrappers ------------------------------- #

def _im2col_T(x_ncdhw, ksize=3, pad=1):
    """Channels-first im2col, transposed: (K = 27*Cin, M = N*D*H*W)."""
    N, C, D, H, W = x_ncdhw.shape
    xp = jnp.pad(x_ncdhw, ((0, 0), (0, 0), (pad, pad), (pad, pad), (pad, pad)))
    taps = []
    for kd in range(ksize):
        for kh in range(ksize):
            for kw in range(ksize):
                taps.append(xp[:, :, kd:kd + D, kh:kh + H, kw:kw + W])
    pt = jnp.stack(taps, axis=1)                      # (N, 27, C, D, H, W)
    pt = pt.reshape(N, ksize ** 3 * C, D * H * W)     # (N, K, DHW), tap-major K
    pt = jnp.transpose(pt, (1, 0, 2))                 # (K, N, DHW)
    return pt.reshape(ksize ** 3 * C, N * D * H * W)  # (K, M)


def conv_bn_relu(x_ncdhw, w_oidhw, gamma, beta, *, tm=512, nchunks=2):
    """Conv3d(k3,p1) -> BatchNorm3d(batch stats, biased var) -> ReLU (NCDHW)."""
    N, Cin, D, H, W = x_ncdhw.shape
    Cout = w_oidhw.shape[0]
    M = N * D * H * W
    K = 27 * Cin
    Kp = _round_up(K, 128)

    # Keep the double-buffered (Kp, tm) bf16 patch block inside a conservative
    # VMEM budget (v7x: 64 MiB physical / 32 MiB scoped default).
    max_tm = max(128, ((4 * 1024 * 1024) // (Kp * 2)) // 128 * 128)
    tm = min(tm, max_tm)

    Mp = _round_up(M, tm * nchunks)
    T = Mp // (tm * nchunks)

    patches = _im2col_T(x_ncdhw)                                    # (K, M) f32
    patches = jnp.pad(patches, ((0, Kp - K), (0, Mp - M))).astype(jnp.bfloat16)
    wt = jnp.transpose(w_oidhw, (0, 2, 3, 4, 1)).reshape(Cout, K)   # (Cout, K)
    wt = jnp.pad(wt, ((0, 0), (0, Kp - K))).astype(jnp.bfloat16)

    y0, ssum, ssq = pl.pallas_call(
        _conv_stats_kernel,
        out_shape=(jax.ShapeDtypeStruct((Cout, Mp), jnp.float32),
                   jax.ShapeDtypeStruct((nchunks, Cout, tm), jnp.float32),
                   jax.ShapeDtypeStruct((nchunks, Cout, tm), jnp.float32)),
        grid_spec=pltpu.PrefetchScalarGridSpec(
            num_scalar_prefetch=0, grid=(nchunks, T),
            in_specs=[pl.BlockSpec((Cout, Kp), lambda c, t: (0, 0)),
                      pl.BlockSpec((Kp, tm), lambda c, t: (0, c * T + t))],
            out_specs=[pl.BlockSpec((Cout, tm), lambda c, t: (0, c * T + t)),
                       pl.BlockSpec((1, Cout, tm), lambda c, t: (c, 0, 0)),
                       pl.BlockSpec((1, Cout, tm), lambda c, t: (c, 0, 0))]),
        compiler_params=pltpu.CompilerParams(
            dimension_semantics=("parallel", "arbitrary")),
    )(wt, patches)

    # Fold batch statistics + affine into one per-channel scale/shift (tiny).
    # Note: the Conv3d bias cancels exactly under training-mode BatchNorm
    # (z - E[z]); it is kept in the params only for parity with PyTorch.
    inv_m = 1.0 / M                                   # padded cols contribute 0
    mean = jnp.sum(ssum, axis=(0, 2)) * inv_m         # (Cout,)
    ey2 = jnp.sum(ssq, axis=(0, 2)) * inv_m
    var = ey2 - mean * mean
    scale = gamma * jax.lax.rsqrt(var + EPS)
    shift = beta - mean * scale

    out = pl.pallas_call(
        _scale_shift_relu_kernel,
        out_shape=jax.ShapeDtypeStruct((Cout, Mp), jnp.float32),
        grid_spec=pltpu.PrefetchScalarGridSpec(
            num_scalar_prefetch=0, grid=(Mp // tm,),
            in_specs=[pl.BlockSpec((Cout, tm), lambda i: (0, i)),
                      pl.BlockSpec((Cout, 1), lambda i: (0, 0)),
                      pl.BlockSpec((Cout, 1), lambda i: (0, 0))],
            out_specs=pl.BlockSpec((Cout, tm), lambda i: (0, i))),
        compiler_params=pltpu.CompilerParams(
            dimension_semantics=("parallel",)),
        input_output_aliases={0: 0},                  # normalize y0 in place
    )(y0, scale.reshape(Cout, 1), shift.reshape(Cout, 1))

    out = out[:, :M].reshape(Cout, N, D, H, W)
    return jnp.transpose(out, (1, 0, 2, 3, 4))        # NCDHW


def _interp_matrix(size):
    """1D interp matrix for scale_factor=2, align_corners=True (PyTorch)."""
    out = 2 * size
    if size == 1:
        return jnp.ones((out, size), jnp.float32)
    src = jnp.arange(out, dtype=jnp.float32) * (size - 1) / (out - 1)
    i0 = jnp.floor(src).astype(jnp.int32)
    i1 = jnp.minimum(i0 + 1, size - 1)
    t = src - i0.astype(jnp.float32)
    rows = jnp.arange(out)
    a = jnp.zeros((out, size), jnp.float32)
    a = a.at[rows, i0].add(1.0 - t)
    a = a.at[rows, i1].add(t)
    return a


def trilinear_upsample2x(x_ncdhw):
    """nn.Upsample(scale_factor=2, mode='trilinear', align_corners=True)."""
    N, C, D, H, W = x_ncdhw.shape
    ad = _interp_matrix(D)                                        # (2D, D)
    khw = jnp.kron(_interp_matrix(H), _interp_matrix(W)).T        # (HW, 4HW)
    x = x_ncdhw.reshape(N * C, D, H * W)
    out = pl.pallas_call(
        _trilinear_kernel,
        out_shape=jax.ShapeDtypeStruct((N * C, 2 * D, 4 * H * W), jnp.float32),
        grid_spec=pltpu.PrefetchScalarGridSpec(
            num_scalar_prefetch=0, grid=(N * C,),
            in_specs=[pl.BlockSpec((H * W, 4 * H * W), lambda b: (0, 0)),
                      pl.BlockSpec((2 * D, D), lambda b: (0, 0)),
                      pl.BlockSpec((1, D, H * W), lambda b: (b, 0, 0))],
            out_specs=pl.BlockSpec((1, 2 * D, 4 * H * W), lambda b: (b, 0, 0))),
        compiler_params=pltpu.CompilerParams(
            dimension_semantics=("parallel",)),
    )(khw, ad, x)
    return out.reshape(N, C, 2 * D, 2 * H, 2 * W)


def upsample_module_forward(x1, x2, params):
    """Upsample.forward: ConvBlock -> trilinear 2x -> concat -> ConvBlock."""
    up, cv = params["up"], params["conv"]
    h = conv_bn_relu(x1, up["w1"], up["g1"], up["be1"])
    h = conv_bn_relu(h, up["w2"], up["g2"], up["be2"])
    h = trilinear_upsample2x(h)
    h = jnp.concatenate([h, x2], axis=1)              # channel concat (layout)
    h = conv_bn_relu(h, cv["w1"], cv["g1"], cv["be1"])
    h = conv_bn_relu(h, cv["w2"], cv["g2"], cv["be2"])
    return h


# -------------------------------- reference --------------------------------- #

def _ref_conv_bn_relu(x, w, b, g, beta):
    y = jax.lax.conv_general_dilated(
        x, w, window_strides=(1, 1, 1), padding=[(1, 1)] * 3,
        dimension_numbers=("NCDHW", "OIDHW", "NCDHW"))
    y = y + b[None, :, None, None, None]
    mean = y.mean(axis=(0, 2, 3, 4), keepdims=True)
    var = ((y - mean) ** 2).mean(axis=(0, 2, 3, 4), keepdims=True)
    yn = (y - mean) / jnp.sqrt(var + EPS)
    yn = yn * g[None, :, None, None, None] + beta[None, :, None, None, None]
    return jnp.maximum(yn, 0.0)


def _ref_upsample2x(x):
    def interp_axis(x, axis):
        s = x.shape[axis]
        o = 2 * s
        if s == 1:
            return jnp.repeat(x, 2, axis=axis)
        src = jnp.arange(o, dtype=jnp.float32) * (s - 1) / (o - 1)
        i0 = jnp.floor(src).astype(jnp.int32)
        i1 = jnp.minimum(i0 + 1, s - 1)
        t = src - i0.astype(jnp.float32)
        shape = [1] * x.ndim
        shape[axis] = o
        t = t.reshape(shape)
        return (jnp.take(x, i0, axis=axis) * (1.0 - t)
                + jnp.take(x, i1, axis=axis) * t)
    for ax in (2, 3, 4):
        x = interp_axis(x, ax)
    return x


def _ref_forward(x1, x2, params):
    up, cv = params["up"], params["conv"]
    h = _ref_conv_bn_relu(x1, up["w1"], up["b1"], up["g1"], up["be1"])
    h = _ref_conv_bn_relu(h, up["w2"], up["b2"], up["g2"], up["be2"])
    h = _ref_upsample2x(h)
    h = jnp.concatenate([h, x2], axis=1)
    h = _ref_conv_bn_relu(h, cv["w1"], cv["b1"], cv["g1"], cv["be1"])
    h = _ref_conv_bn_relu(h, cv["w2"], cv["b2"], cv["g2"], cv["be2"])
    return h


# ----------------------------------- main ----------------------------------- #

if __name__ == "__main__":
    key = jax.random.PRNGKey(0)
    ks = jax.random.split(key, 4)

    N, Cin, Cinter, Cout = 2, 4, 8, 8
    D = H = W = 8
    x1 = jax.random.normal(ks[0], (N, Cin, D, H, W), jnp.float32)
    x2 = jax.random.normal(ks[1], (N, Cinter, 2 * D, 2 * H, 2 * W), jnp.float32)

    def convblock_params(k, cin, cout):
        k1, k2, k3, k4 = jax.random.split(k, 4)
        return {
            "w1": jax.random.normal(k1, (cout, cin, 3, 3, 3), jnp.float32) * 0.1,
            "b1": jax.random.normal(k2, (cout,), jnp.float32) * 0.1,
            "g1": jnp.ones((cout,), jnp.float32),
            "be1": jnp.zeros((cout,), jnp.float32),
            "w2": jax.random.normal(k3, (cout, cout, 3, 3, 3), jnp.float32) * 0.1,
            "b2": jax.random.normal(k4, (cout,), jnp.float32) * 0.1,
            "g2": jnp.ones((cout,), jnp.float32),
            "be2": jnp.zeros((cout,), jnp.float32),
        }

    params = {
        "up": convblock_params(ks[2], Cin, Cinter),
        "conv": convblock_params(ks[3], 2 * Cinter, Cout),
    }

    out = jax.jit(upsample_module_forward)(x1, x2, params)
    out = jax.block_until_ready(out)

    ref = _ref_forward(x1, x2, params)
    assert out.shape == (N, Cout, 2 * D, 2 * H, 2 * W), out.shape
    max_err = float(jnp.max(jnp.abs(out - ref)))
    assert max_err < 5e-2, f"max abs error {max_err}"

    print("KERNEL_OK")
</pallas_src>

<mosaic_0001>
module attributes {stable_mosaic.version = 11 : i64} {
  func.func private @main(%arg0: i32) attributes {dimension_semantics = [#tpu.dimension_semantics<core_parallel>], iteration_bounds = array<i64: 2>, tpu.core_type = #tpu.core_type<sc_scalar_subcore>, window_params = []} {
    return
  }
}

module attributes {stable_mosaic.version = 11 : i64} {
  func.func private @main(%arg0: i32) attributes {dimension_semantics = [#tpu.dimension_semantics<core_parallel>], iteration_bounds = array<i64: 2>, tpu.core_type = #tpu.core_type<sc_scalar_subcore>, window_params = []} {
    return
  }
}

module attributes {stable_mosaic.version = 11 : i64} {
  func.func @_conv_stats_kernel(%arg0: i32, %arg1: i32, %arg2: memref<8x128xbf16, #tpu.memory_space<vmem>>, %arg3: memref<128x512xbf16, #tpu.memory_space<vmem>>, %arg4: memref<8x512xf32, #tpu.memory_space<vmem>>, %arg5: memref<1x8x512xf32, #tpu.memory_space<vmem>>, %arg6: memref<1x8x512xf32, #tpu.memory_space<vmem>>) attributes {dimension_semantics = [#tpu.dimension_semantics<parallel>, #tpu.dimension_semantics<arbitrary>], iteration_bounds = array<i64: 2, 1>, scalar_prefetch = 0 : i64, scratch_operands = 0 : i64, tpu.core_type = #tpu.core_type<tc>, window_params = [{pipeline_mode = #tpu.pipeline_mode<synchronous>, transform_indices = @transform_0, window_bounds = array<i64: 8, 128>}, {transform_indices = @transform_1, window_bounds = array<i64: 128, 512>}, {transform_indices = @transform_2, window_bounds = array<i64: 8, 512>}, {transform_indices = @transform_3, window_bounds = array<i64: 1, 8, 512>}, {transform_indices = @transform_4, window_bounds = array<i64: 1, 8, 512>}]} {
    %c0 = arith.constant 0 : index
    %c0_0 = arith.constant 0 : index
    %0 = vector.load %arg2[%c0, %c0_0] : memref<8x128xbf16, #tpu.memory_space<vmem>>, vector<8x128xbf16>
    %c0_1 = arith.constant 0 : index
    %c0_2 = arith.constant 0 : index
    %1 = vector.load %arg3[%c0_1, %c0_2] : memref<128x512xbf16, #tpu.memory_space<vmem>>, vector<128x512xbf16>
    %cst = arith.constant dense<0.000000e+00> : vector<8x512xf32>
    %2 = tpu.matmul %0, %1, %cst {dimension_numbers = #tpu.dot_dimension_numbers<[1], [0], [0], [1], [0, 0, 1, 1], [], []>} : vector<8x128xbf16>, vector<128x512xbf16>, vector<8x512xf32> -> vector<8x512xf32>
    %c0_3 = arith.constant 0 : index
    %c0_4 = arith.constant 0 : index
    %3 = vector.load %arg4[%c0_3, %c0_4] : memref<8x512xf32, #tpu.memory_space<vmem>>, vector<8x512xf32>
    tpu.vector_store %arg4[%c0_3, %c0_4], %2 {strides = array<i32>} : memref<8x512xf32, #tpu.memory_space<vmem>>, vector<8x512xf32>,
    %c0_i32 = arith.constant 0 : i32
    %4 = arith.cmpi eq, %arg1, %c0_i32 : i32
    %5 = arith.extui %4 : i1 to i32
    %c0_i32_5 = arith.constant 0 : i32
    %6 = arith.cmpi ne, %5, %c0_i32_5 : i32
    scf.if %6 {
      %cst_18 = arith.constant 0.000000e+00 : f32
      %16 = vector.broadcast %cst_18 : f32 to vector<1x8x512xf32>
      %c0_19 = arith.constant 0 : index
      %c0_20 = arith.constant 0 : index
      %c0_21 = arith.constant 0 : index
      %17 = vector.load %arg5[%c0_19, %c0_20, %c0_21] : memref<1x8x512xf32, #tpu.memory_space<vmem>>, vector<1x8x512xf32>
      tpu.vector_store %arg5[%c0_19, %c0_20, %c0_21], %16 {strides = array<i32>} : memref<1x8x512xf32, #tpu.memory_space<vmem>>, vector<1x8x512xf32>,
      %cst_22 = arith.constant 0.000000e+00 : f32
      %18 = vector.broadcast %cst_22 : f32 to vector<1x8x512xf32>
      %c0_23 = arith.constant 0 : index
      %c0_24 = arith.constant 0 : index
      %c0_25 = arith.constant 0 : index
      %19 = vector.load %arg6[%c0_23, %c0_24, %c0_25] : memref<1x8x512xf32, #tpu.memory_space<vmem>>, vector<1x8x512xf32>
      tpu.vector_store %arg6[%c0_23, %c0_24, %c0_25], %18 {strides = array<i32>} : memref<1x8x512xf32, #tpu.memory_space<vmem>>, vector<1x8x512xf32>,
    } else {
    }
    %c0_6 = arith.constant 0 : index
    %c0_7 = arith.constant 0 : index
    %c0_8 = arith.constant 0 : index
    %7 = vector.load %arg5[%c0_6, %c0_7, %c0_8] : memref<1x8x512xf32, #tpu.memory_space<vmem>>, vector<1x8x512xf32>
    %8 = vector.shape_cast %2 : vector<8x512xf32> to vector<1x8x512xf32>
    %9 = arith.addf %7, %8 : vector<1x8x512xf32>
    %c0_9 = arith.constant 0 : index
    %c0_10 = arith.constant 0 : index
    %c0_11 = arith.constant 0 : index
    %10 = vector.load %arg5[%c0_9, %c0_10, %c0_11] : memref<1x8x512xf32, #tpu.memory_space<vmem>>, vector<1x8x512xf32>
    tpu.vector_store %arg5[%c0_9, %c0_10, %c0_11], %9 {strides = array<i32>} : memref<1x8x512xf32, #tpu.memory_space<vmem>>, vector<1x8x512xf32>,
    %c0_12 = arith.constant 0 : index
    %c0_13 = arith.constant 0 : index
    %c0_14 = arith.constant 0 : index
    %11 = vector.load %arg6[%c0_12, %c0_13, %c0_14] : memref<1x8x512xf32, #tpu.memory_space<vmem>>, vector<1x8x512xf32>
    %12 = arith.mulf %2, %2 : vector<8x512xf32>
    %13 = vector.shape_cast %12 : vector<8x512xf32> to vector<1x8x512xf32>
    %14 = arith.addf %11, %13 : vector<1x8x512xf32>
    %c0_15 = arith.constant 0 : index
    %c0_16 = arith.constant 0 : index
    %c0_17 = arith.constant 0 : index
    %15 = vector.load %arg6[%c0_15, %c0_16, %c0_17] : memref<1x8x512xf32, #tpu.memory_space<vmem>>, vector<1x8x512xf32>
    tpu.vector_store %arg6[%c0_15, %c0_16, %c0_17], %14 {strides = array<i32>} : memref<1x8x512xf32, #tpu.memory_space<vmem>>, vector<1x8x512xf32>,
    return
  }
  func.func @transform_0(%arg0: i32, %arg1: i32) -> (i32, i32) {
    %c0_i32 = arith.constant 0 : i32
    %c0_i32_0 = arith.constant 0 : i32
    %c0_i32_1 = arith.constant 0 : i32
    return %c0_i32, %c0_i32_0 : i32, i32
  }
  func.func @transform_1(%arg0: i32, %arg1: i32) -> (i32, i32) {
    %c1_i32 = arith.constant 1 : i32
    %0 = arith.muli %arg0, %c1_i32 : i32
    %1 = arith.addi %0, %arg1 : i32
    %c0_i32 = arith.constant 0 : i32
    %c0_i32_0 = arith.constant 0 : i32
    return %c0_i32, %1 : i32, i32
  }
  func.func @transform_2(%arg0: i32, %arg1: i32) -> (i32, i32) {
    %c1_i32 = arith.constant 1 : i32
    %0 = arith.muli %arg0, %c1_i32 : i32
    %1 = arith.addi %0, %arg1 : i32
    %c0_i32 = arith.constant 0 : i32
    %c0_i32_0 = arith.constant 0 : i32
    return %c0_i32, %1 : i32, i32
  }
  func.func @transform_3(%arg0: i32, %arg1: i32) -> (i32, i32, i32) {
    %c0_i32 = arith.constant 0 : i32
    %c0_i32_0 = arith.constant 0 : i32
    %c0_i32_1 = arith.constant 0 : i32
    return %arg0, %c0_i32, %c0_i32_0 : i32, i32, i32
  }
  func.func @transform_4(%arg0: i32, %arg1: i32) -> (i32, i32, i32) {
    %c0_i32 = arith.constant 0 : i32
    %c0_i32_0 = arith.constant 0 : i32
    %c0_i32_1 = arith.constant 0 : i32
    return %arg0, %c0_i32, %c0_i32_0 : i32, i32, i32
  }
}

module attributes {stable_mosaic.version = 11 : i64} {
  func.func @_scale_shift_relu_kernel(%arg0: i32, %arg1: memref<8x512xf32, #tpu.memory_space<vmem>>, %arg2: memref<8x1xf32, #tpu.memory_space<vmem>>, %arg3: memref<8x1xf32, #tpu.memory_space<vmem>>, %arg4: memref<8x512xf32, #tpu.memory_space<vmem>>) attributes {dimension_semantics = [#tpu.dimension_semantics<parallel>], iteration_bounds = array<i64: 2>, scalar_prefetch = 0 : i64, scratch_operands = 0 : i64, tpu.core_type = #tpu.core_type<tc>, window_params = [{transform_indices = @transform_0, window_bounds = array<i64: 8, 512>}, {pipeline_mode = #tpu.pipeline_mode<synchronous>, transform_indices = @transform_1, window_bounds = array<i64: 8, 1>}, {pipeline_mode = #tpu.pipeline_mode<synchronous>, transform_indices = @transform_2, window_bounds = array<i64: 8, 1>}, {transform_indices = @transform_3, window_bounds = array<i64: 8, 512>}]} {
    %c0 = arith.constant 0 : index
    %c0_0 = arith.constant 0 : index
    %0 = vector.load %arg1[%c0, %c0_0] : memref<8x512xf32, #tpu.memory_space<vmem>>, vector<8x512xf32>
    %c0_1 = arith.constant 0 : index
    %c0_2 = arith.constant 0 : index
    %1 = vector.load %arg2[%c0_1, %c0_2] : memref<8x1xf32, #tpu.memory_space<vmem>>, vector<8x1xf32>
    %2 = vector.broadcast %1 : vector<8x1xf32> to vector<8x512xf32>
    %3 = arith.mulf %0, %2 : vector<8x512xf32>
    %c0_3 = arith.constant 0 : index
    %c0_4 = arith.constant 0 : index
    %4 = vector.load %arg3[%c0_3, %c0_4] : memref<8x1xf32, #tpu.memory_space<vmem>>, vector<8x1xf32>
    %5 = vector.broadcast %4 : vector<8x1xf32> to vector<8x512xf32>
    %6 = arith.addf %3, %5 : vector<8x512xf32>
    %cst = arith.constant 0.000000e+00 : f32
    %7 = vector.broadcast %cst : f32 to vector<8x512xf32>
    %8 = arith.maximumf %6, %7 : vector<8x512xf32>
    %c0_5 = arith.constant 0 : index
    %c0_6 = arith.constant 0 : index
    %9 = vector.load %arg4[%c0_5, %c0_6] : memref<8x512xf32, #tpu.memory_space<vmem>>, vector<8x512xf32>
    tpu.vector_store %arg4[%c0_5, %c0_6], %8 {strides = array<i32>} : memref<8x512xf32, #tpu.memory_space<vmem>>, vector<8x512xf32>,
    return
  }
  func.func @transform_0(%arg0: i32) -> (i32, i32) {
    %c0_i32 = arith.constant 0 : i32
    %c0_i32_0 = arith.constant 0 : i32
    return %c0_i32, %arg0 : i32, i32
  }
  func.func @transform_1(%arg0: i32) -> (i32, i32) {
    %c0_i32 = arith.constant 0 : i32
    %c0_i32_0 = arith.constant 0 : i32
    %c0_i32_1 = arith.constant 0 : i32
    return %c0_i32, %c0_i32_0 : i32, i32
  }
  func.func @transform_2(%arg0: i32) -> (i32, i32) {
    %c0_i32 = arith.constant 0 : i32
    %c0_i32_0 = arith.constant 0 : i32
    %c0_i32_1 = arith.constant 0 : i32
    return %c0_i32, %c0_i32_0 : i32, i32
  }
  func.func @transform_3(%arg0: i32) -> (i32, i32) {
    %c0_i32 = arith.constant 0 : i32
    %c0_i32_0 = arith.constant 0 : i32
    return %c0_i32, %arg0 : i32, i32
  }
}

module attributes {stable_mosaic.version = 11 : i64} {
  func.func @_conv_stats_kernel(%arg0: i32, %arg1: i32, %arg2: memref<8x256xbf16, #tpu.memory_space<vmem>>, %arg3: memref<256x512xbf16, #tpu.memory_space<vmem>>, %arg4: memref<8x512xf32, #tpu.memory_space<vmem>>, %arg5: memref<1x8x512xf32, #tpu.memory_space<vmem>>, %arg6: memref<1x8x512xf32, #tpu.memory_space<vmem>>) attributes {dimension_semantics = [#tpu.dimension_semantics<parallel>, #tpu.dimension_semantics<arbitrary>], iteration_bounds = array<i64: 2, 1>, scalar_prefetch = 0 : i64, scratch_operands = 0 : i64, tpu.core_type = #tpu.core_type<tc>, window_params = [{pipeline_mode = #tpu.pipeline_mode<synchronous>, transform_indices = @transform_0, window_bounds = array<i64: 8, 256>}, {transform_indices = @transform_1, window_bounds = array<i64: 256, 512>}, {transform_indices = @transform_2, window_bounds = array<i64: 8, 512>}, {transform_indices = @transform_3, window_bounds = array<i64: 1, 8, 512>}, {transform_indices = @transform_4, window_bounds = array<i64: 1, 8, 512>}]} {
    %c0 = arith.constant 0 : index
    %c0_0 = arith.constant 0 : index
    %0 = vector.load %arg2[%c0, %c0_0] : memref<8x256xbf16, #tpu.memory_space<vmem>>, vector<8x256xbf16>
    %c0_1 = arith.constant 0 : index
    %c0_2 = arith.constant 0 : index
    %1 = vector.load %arg3[%c0_1, %c0_2] : memref<256x512xbf16, #tpu.memory_space<vmem>>, vector<256x512xbf16>
    %cst = arith.constant dense<0.000000e+00> : vector<8x512xf32>
    %2 = tpu.matmul %0, %1, %cst {dimension_numbers = #tpu.dot_dimension_numbers<[1], [0], [0], [1], [0, 0, 1, 1], [], []>} : vector<8x256xbf16>, vector<256x512xbf16>, vector<8x512xf32> -> vector<8x512xf32>
    %c0_3 = arith.constant 0 : index
    %c0_4 = arith.constant 0 : index
    %3 = vector.load %arg4[%c0_3, %c0_4] : memref<8x512xf32, #tpu.memory_space<vmem>>, vector<8x512xf32>
    tpu.vector_store %arg4[%c0_3, %c0_4], %2 {strides = array<i32>} : memref<8x512xf32, #tpu.memory_space<vmem>>, vector<8x512xf32>,
    %c0_i32 = arith.constant 0 : i32
    %4 = arith.cmpi eq, %arg1, %c0_i32 : i32
    %5 = arith.extui %4 : i1 to i32
    %c0_i32_5 = arith.constant 0 : i32
    %6 = arith.cmpi ne, %5, %c0_i32_5 : i32
    scf.if %6 {
      %cst_18 = arith.constant 0.000000e+00 : f32
      %16 = vector.broadcast %cst_18 : f32 to vector<1x8x512xf32>
      %c0_19 = arith.constant 0 : index
      %c0_20 = arith.constant 0 : index
      %c0_21 = arith.constant 0 : index
      %17 = vector.load %arg5[%c0_19, %c0_20, %c0_21] : memref<1x8x512xf32, #tpu.memory_space<vmem>>, vector<1x8x512xf32>
      tpu.vector_store %arg5[%c0_19, %c0_20, %c0_21], %16 {strides = array<i32>} : memref<1x8x512xf32, #tpu.memory_space<vmem>>, vector<1x8x512xf32>,
      %cst_22 = arith.constant 0.000000e+00 : f32
      %18 = vector.broadcast %cst_22 : f32 to vector<1x8x512xf32>
      %c0_23 = arith.constant 0 : index
      %c0_24 = arith.constant 0 : index
      %c0_25 = arith.constant 0 : index
      %19 = vector.load %arg6[%c0_23, %c0_24, %c0_25] : memref<1x8x512xf32, #tpu.memory_space<vmem>>, vector<1x8x512xf32>
      tpu.vector_store %arg6[%c0_23, %c0_24, %c0_25], %18 {strides = array<i32>} : memref<1x8x512xf32, #tpu.memory_space<vmem>>, vector<1x8x512xf32>,
    } else {
    }
    %c0_6 = arith.constant 0 : index
    %c0_7 = arith.constant 0 : index
    %c0_8 = arith.constant 0 : index
    %7 = vector.load %arg5[%c0_6, %c0_7, %c0_8] : memref<1x8x512xf32, #tpu.memory_space<vmem>>, vector<1x8x512xf32>
    %8 = vector.shape_cast %2 : vector<8x512xf32> to vector<1x8x512xf32>
    %9 = arith.addf %7, %8 : vector<1x8x512xf32>
    %c0_9 = arith.constant 0 : index
    %c0_10 = arith.constant 0 : index
    %c0_11 = arith.constant 0 : index
    %10 = vector.load %arg5[%c0_9, %c0_10, %c0_11] : memref<1x8x512xf32, #tpu.memory_space<vmem>>, vector<1x8x512xf32>
    tpu.vector_store %arg5[%c0_9, %c0_10, %c0_11], %9 {strides = array<i32>} : memref<1x8x512xf32, #tpu.memory_space<vmem>>, vector<1x8x512xf32>,
    %c0_12 = arith.constant 0 : index
    %c0_13 = arith.constant 0 : index
    %c0_14 = arith.constant 0 : index
    %11 = vector.load %arg6[%c0_12, %c0_13, %c0_14] : memref<1x8x512xf32, #tpu.memory_space<vmem>>, vector<1x8x512xf32>
    %12 = arith.mulf %2, %2 : vector<8x512xf32>
    %13 = vector.shape_cast %12 : vector<8x512xf32> to vector<1x8x512xf32>
    %14 = arith.addf %11, %13 : vector<1x8x512xf32>
    %c0_15 = arith.constant 0 : index
    %c0_16 = arith.constant 0 : index
    %c0_17 = arith.constant 0 : index
    %15 = vector.load %arg6[%c0_15, %c0_16, %c0_17] : memref<1x8x512xf32, #tpu.memory_space<vmem>>, vector<1x8x512xf32>
    tpu.vector_store %arg6[%c0_15, %c0_16, %c0_17], %14 {strides = array<i32>} : memref<1x8x512xf32, #tpu.memory_space<vmem>>, vector<1x8x512xf32>,
    return
  }
  func.func @transform_0(%arg0: i32, %arg1: i32) -> (i32, i32) {
    %c0_i32 = arith.constant 0 : i32
    %c0_i32_0 = arith.constant 0 : i32
    %c0_i32_1 = arith.constant 0 : i32
    return %c0_i32, %c0_i32_0 : i32, i32
  }
  func.func @transform_1(%arg0: i32, %arg1: i32) -> (i32, i32) {
    %c1_i32 = arith.constant 1 : i32
    %0 = arith.muli %arg0, %c1_i32 : i32
    %1 = arith.addi %0, %arg1 : i32
    %c0_i32 = arith.constant 0 : i32
    %c0_i32_0 = arith.constant 0 : i32
    return %c0_i32, %1 : i32, i32
  }
  func.func @transform_2(%arg0: i32, %arg1: i32) -> (i32, i32) {
    %c1_i32 = arith.constant 1 : i32
    %0 = arith.muli %arg0, %c1_i32 : i32
    %1 = arith.addi %0, %arg1 : i32
    %c0_i32 = arith.constant 0 : i32
    %c0_i32_0 = arith.constant 0 : i32
    return %c0_i32, %1 : i32, i32
  }
  func.func @transform_3(%arg0: i32, %arg1: i32) -> (i32, i32, i32) {
    %c0_i32 = arith.constant 0 : i32
    %c0_i32_0 = arith.constant 0 : i32
    %c0_i32_1 = arith.constant 0 : i32
    return %arg0, %c0_i32, %c0_i32_0 : i32, i32, i32
  }
  func.func @transform_4(%arg0: i32, %arg1: i32) -> (i32, i32, i32) {
    %c0_i32 = arith.constant 0 : i32
    %c0_i32_0 = arith.constant 0 : i32
    %c0_i32_1 = arith.constant 0 : i32
    return %arg0, %c0_i32, %c0_i32_0 : i32, i32, i32
  }
}

module attributes {stable_mosaic.version = 11 : i64} {
  func.func @_trilinear_kernel(%arg0: i32, %arg1: memref<64x256xf32, #tpu.memory_space<vmem>>, %arg2: memref<16x8xf32, #tpu.memory_space<vmem>>, %arg3: memref<1x8x64xf32, #tpu.memory_space<vmem>>, %arg4: memref<1x16x256xf32, #tpu.memory_space<vmem>>) attributes {dimension_semantics = [#tpu.dimension_semantics<parallel>], iteration_bounds = array<i64: 16>, scalar_prefetch = 0 : i64, scratch_operands = 0 : i64, tpu.core_type = #tpu.core_type<tc>, window_params = [{pipeline_mode = #tpu.pipeline_mode<synchronous>, transform_indices = @transform_0, window_bounds = array<i64: 64, 256>}, {pipeline_mode = #tpu.pipeline_mode<synchronous>, transform_indices = @transform_1, window_bounds = array<i64: 16, 8>}, {transform_indices = @transform_2, window_bounds = array<i64: 1, 8, 64>}, {transform_indices = @transform_3, window_bounds = array<i64: 1, 16, 256>}]} {
    %c0 = arith.constant 0 : index
    %c0_0 = arith.constant 0 : index
    %c0_1 = arith.constant 0 : index
    %0 = vector.load %arg3[%c0, %c0_0, %c0_1] : memref<1x8x64xf32, #tpu.memory_space<vmem>>, vector<1x8x64xf32>
    %1 = vector.shape_cast %0 : vector<1x8x64xf32> to vector<8x64xf32>
    %c0_2 = arith.constant 0 : index
    %c0_3 = arith.constant 0 : index
    %2 = vector.load %arg1[%c0_2, %c0_3] : memref<64x256xf32, #tpu.memory_space<vmem>>, vector<64x256xf32>
    %cst = arith.constant dense<0.000000e+00> : vector<8x256xf32>
    %3 = tpu.matmul %1, %2, %cst {dimension_numbers = #tpu.dot_dimension_numbers<[1], [0], [0], [1], [0, 0, 1, 1], [], []>} : vector<8x64xf32>, vector<64x256xf32>, vector<8x256xf32> -> vector<8x256xf32>
    %c0_4 = arith.constant 0 : index
    %c0_5 = arith.constant 0 : index
    %4 = vector.load %arg2[%c0_4, %c0_5] : memref<16x8xf32, #tpu.memory_space<vmem>>, vector<16x8xf32>
    %cst_6 = arith.constant dense<0.000000e+00> : vector<16x256xf32>
    %5 = tpu.matmul %4, %3, %cst_6 {dimension_numbers = #tpu.dot_dimension_numbers<[1], [0], [0], [1], [0, 0, 1, 1], [], []>} : vector<16x8xf32>, vector<8x256xf32>, vector<16x256xf32> -> vector<16x256xf32>
    %6 = vector.shape_cast %5 : vector<16x256xf32> to vector<1x16x256xf32>
    %c0_7 = arith.constant 0 : index
    %c0_8 = arith.constant 0 : index
    %c0_9 = arith.constant 0 : index
    %7 = vector.load %arg4[%c0_7, %c0_8, %c0_9] : memref<1x16x256xf32, #tpu.memory_space<vmem>>, vector<1x16x256xf32>
    tpu.vector_store %arg4[%c0_7, %c0_8, %c0_9], %6 {strides = array<i32>} : memref<1x16x256xf32, #tpu.memory_space<vmem>>, vector<1x16x256xf32>,
    return
  }
  func.func @transform_0(%arg0: i32) -> (i32, i32) {
    %c0_i32 = arith.constant 0 : i32
    %c0_i32_0 = arith.constant 0 : i32
    %c0_i32_1 = arith.constant 0 : i32
    return %c0_i32, %c0_i32_0 : i32, i32
  }
  func.func @transform_1(%arg0: i32) -> (i32, i32) {
    %c0_i32 = arith.constant 0 : i32
    %c0_i32_0 = arith.constant 0 : i32
    %c0_i32_1 = arith.constant 0 : i32
    return %c0_i32, %c0_i32_0 : i32, i32
  }
  func.func @transform_2(%arg0: i32) -> (i32, i32, i32) {
    %c0_i32 = arith.constant 0 : i32
    %c0_i32_0 = arith.constant 0 : i32
    %c0_i32_1 = arith.constant 0 : i32
    return %arg0, %c0_i32, %c0_i32_0 : i32, i32, i32
  }
  func.func @transform_3(%arg0: i32) -> (i32, i32, i32) {
    %c0_i32 = arith.constant 0 : i32
    %c0_i32_0 = arith.constant 0 : i32
    %c0_i32_1 = arith.constant 0 : i32
    return %arg0, %c0_i32, %c0_i32_0 : i32, i32, i32
  }
}

module attributes {stable_mosaic.version = 11 : i64} {
  func.func @_conv_stats_kernel(%arg0: i32, %arg1: i32, %arg2: memref<8x512xbf16, #tpu.memory_space<vmem>>, %arg3: memref<512x512xbf16, #tpu.memory_space<vmem>>, %arg4: memref<8x512xf32, #tpu.memory_space<vmem>>, %arg5: memref<1x8x512xf32, #tpu.memory_space<vmem>>, %arg6: memref<1x8x512xf32, #tpu.memory_space<vmem>>) attributes {dimension_semantics = [#tpu.dimension_semantics<parallel>, #tpu.dimension_semantics<arbitrary>], iteration_bounds = array<i64: 2, 8>, scalar_prefetch = 0 : i64, scratch_operands = 0 : i64, tpu.core_type = #tpu.core_type<tc>, window_params = [{pipeline_mode = #tpu.pipeline_mode<synchronous>, transform_indices = @transform_0, window_bounds = array<i64: 8, 512>}, {transform_indices = @transform_1, window_bounds = array<i64: 512, 512>}, {transform_indices = @transform_2, window_bounds = array<i64: 8, 512>}, {transform_indices = @transform_3, window_bounds = array<i64: 1, 8, 512>}, {transform_indices = @transform_4, window_bounds = array<i64: 1, 8, 512>}]} {
    %c0 = arith.constant 0 : index
    %c0_0 = arith.constant 0 : index
    %0 = vector.load %arg2[%c0, %c0_0] : memref<8x512xbf16, #tpu.memory_space<vmem>>, vector<8x512xbf16>
    %c0_1 = arith.constant 0 : index
    %c0_2 = arith.constant 0 : index
    %1 = vector.load %arg3[%c0_1, %c0_2] : memref<512x512xbf16, #tpu.memory_space<vmem>>, vector<512x512xbf16>
    %cst = arith.constant dense<0.000000e+00> : vector<8x512xf32>
    %2 = tpu.matmul %0, %1, %cst {dimension_numbers = #tpu.dot_dimension_numbers<[1], [0], [0], [1], [0, 0, 1, 1], [], []>} : vector<8x512xbf16>, vector<512x512xbf16>, vector<8x512xf32> -> vector<8x512xf32>
    %c0_3 = arith.constant 0 : index
    %c0_4 = arith.constant 0 : index
    %3 = vector.load %arg4[%c0_3, %c0_4] : memref<8x512xf32, #tpu.memory_space<vmem>>, vector<8x512xf32>
    tpu.vector_store %arg4[%c0_3, %c0_4], %2 {strides = array<i32>} : memref<8x512xf32, #tpu.memory_space<vmem>>, vector<8x512xf32>,
    %c0_i32 = arith.constant 0 : i32
    %4 = arith.cmpi eq, %arg1, %c0_i32 : i32
    %5 = arith.extui %4 : i1 to i32
    %c0_i32_5 = arith.constant 0 : i32
    %6 = arith.cmpi ne, %5, %c0_i32_5 : i32
    scf.if %6 {
      %cst_18 = arith.constant 0.000000e+00 : f32
      %16 = vector.broadcast %cst_18 : f32 to vector<1x8x512xf32>
      %c0_19 = arith.constant 0 : index
      %c0_20 = arith.constant 0 : index
      %c0_21 = arith.constant 0 : index
      %17 = vector.load %arg5[%c0_19, %c0_20, %c0_21] : memref<1x8x512xf32, #tpu.memory_space<vmem>>, vector<1x8x512xf32>
      tpu.vector_store %arg5[%c0_19, %c0_20, %c0_21], %16 {strides = array<i32>} : memref<1x8x512xf32, #tpu.memory_space<vmem>>, vector<1x8x512xf32>,
      %cst_22 = arith.constant 0.000000e+00 : f32
      %18 = vector.broadcast %cst_22 : f32 to vector<1x8x512xf32>
      %c0_23 = arith.constant 0 : index
      %c0_24 = arith.constant 0 : index
      %c0_25 = arith.constant 0 : index
      %19 = vector.load %arg6[%c0_23, %c0_24, %c0_25] : memref<1x8x512xf32, #tpu.memory_space<vmem>>, vector<1x8x512xf32>
      tpu.vector_store %arg6[%c0_23, %c0_24, %c0_25], %18 {strides = array<i32>} : memref<1x8x512xf32, #tpu.memory_space<vmem>>, vector<1x8x512xf32>,
    } else {
    }
    %c0_6 = arith.constant 0 : index
    %c0_7 = arith.constant 0 : index
    %c0_8 = arith.constant 0 : index
    %7 = vector.load %arg5[%c0_6, %c0_7, %c0_8] : memref<1x8x512xf32, #tpu.memory_space<vmem>>, vector<1x8x512xf32>
    %8 = vector.shape_cast %2 : vector<8x512xf32> to vector<1x8x512xf32>
    %9 = arith.addf %7, %8 : vector<1x8x512xf32>
    %c0_9 = arith.constant 0 : index
    %c0_10 = arith.constant 0 : index
    %c0_11 = arith.constant 0 : index
    %10 = vector.load %arg5[%c0_9, %c0_10, %c0_11] : memref<1x8x512xf32, #tpu.memory_space<vmem>>, vector<1x8x512xf32>
    tpu.vector_store %arg5[%c0_9, %c0_10, %c0_11], %9 {strides = array<i32>} : memref<1x8x512xf32, #tpu.memory_space<vmem>>, vector<1x8x512xf32>,
    %c0_12 = arith.constant 0 : index
    %c0_13 = arith.constant 0 : index
    %c0_14 = arith.constant 0 : index
    %11 = vector.load %arg6[%c0_12, %c0_13, %c0_14] : memref<1x8x512xf32, #tpu.memory_space<vmem>>, vector<1x8x512xf32>
    %12 = arith.mulf %2, %2 : vector<8x512xf32>
    %13 = vector.shape_cast %12 : vector<8x512xf32> to vector<1x8x512xf32>
    %14 = arith.addf %11, %13 : vector<1x8x512xf32>
    %c0_15 = arith.constant 0 : index
    %c0_16 = arith.constant 0 : index
    %c0_17 = arith.constant 0 : index
    %15 = vector.load %arg6[%c0_15, %c0_16, %c0_17] : memref<1x8x512xf32, #tpu.memory_space<vmem>>, vector<1x8x512xf32>
    tpu.vector_store %arg6[%c0_15, %c0_16, %c0_17], %14 {strides = array<i32>} : memref<1x8x512xf32, #tpu.memory_space<vmem>>, vector<1x8x512xf32>,
    return
  }
  func.func @transform_0(%arg0: i32, %arg1: i32) -> (i32, i32) {
    %c0_i32 = arith.constant 0 : i32
    %c0_i32_0 = arith.constant 0 : i32
    %c0_i32_1 = arith.constant 0 : i32
    return %c0_i32, %c0_i32_0 : i32, i32
  }
  func.func @transform_1(%arg0: i32, %arg1: i32) -> (i32, i32) {
    %c8_i32 = arith.constant 8 : i32
    %0 = arith.muli %arg0, %c8_i32 : i32
    %1 = arith.addi %0, %arg1 : i32
    %c0_i32 = arith.constant 0 : i32
    %c0_i32_0 = arith.constant 0 : i32
    return %c0_i32, %1 : i32, i32
  }
  func.func @transform_2(%arg0: i32, %arg1: i32) -> (i32, i32) {
    %c8_i32 = arith.constant 8 : i32
    %0 = arith.muli %arg0, %c8_i32 : i32
    %1 = arith.addi %0, %arg1 : i32
    %c0_i32 = arith.constant 0 : i32
    %c0_i32_0 = arith.constant 0 : i32
    return %c0_i32, %1 : i32, i32
  }
  func.func @transform_3(%arg0: i32, %arg1: i32) -> (i32, i32, i32) {
    %c0_i32 = arith.constant 0 : i32
    %c0_i32_0 = arith.constant 0 : i32
    %c0_i32_1 = arith.constant 0 : i32
    return %arg0, %c0_i32, %c0_i32_0 : i32, i32, i32
  }
  func.func @transform_4(%arg0: i32, %arg1: i32) -> (i32, i32, i32) {
    %c0_i32 = arith.constant 0 : i32
    %c0_i32_0 = arith.constant 0 : i32
    %c0_i32_1 = arith.constant 0 : i32
    return %arg0, %c0_i32, %c0_i32_0 : i32, i32, i32
  }
}

module attributes {stable_mosaic.version = 11 : i64} {
  func.func @_scale_shift_relu_kernel(%arg0: i32, %arg1: memref<8x512xf32, #tpu.memory_space<vmem>>, %arg2: memref<8x1xf32, #tpu.memory_space<vmem>>, %arg3: memref<8x1xf32, #tpu.memory_space<vmem>>, %arg4: memref<8x512xf32, #tpu.memory_space<vmem>>) attributes {dimension_semantics = [#tpu.dimension_semantics<parallel>], iteration_bounds = array<i64: 16>, scalar_prefetch = 0 : i64, scratch_operands = 0 : i64, tpu.core_type = #tpu.core_type<tc>, window_params = [{transform_indices = @transform_0, window_bounds = array<i64: 8, 512>}, {pipeline_mode = #tpu.pipeline_mode<synchronous>, transform_indices = @transform_1, window_bounds = array<i64: 8, 1>}, {pipeline_mode = #tpu.pipeline_mode<synchronous>, transform_indices = @transform_2, window_bounds = array<i64: 8, 1>}, {transform_indices = @transform_3, window_bounds = array<i64: 8, 512>}]} {
    %c0 = arith.constant 0 : index
    %c0_0 = arith.constant 0 : index
    %0 = vector.load %arg1[%c0, %c0_0] : memref<8x512xf32, #tpu.memory_space<vmem>>, vector<8x512xf32>
    %c0_1 = arith.constant 0 : index
    %c0_2 = arith.constant 0 : index
    %1 = vector.load %arg2[%c0_1, %c0_2] : memref<8x1xf32, #tpu.memory_space<vmem>>, vector<8x1xf32>
    %2 = vector.broadcast %1 : vector<8x1xf32> to vector<8x512xf32>
    %3 = arith.mulf %0, %2 : vector<8x512xf32>
    %c0_3 = arith.constant 0 : index
    %c0_4 = arith.constant 0 : index
    %4 = vector.load %arg3[%c0_3, %c0_4] : memref<8x1xf32, #tpu.memory_space<vmem>>, vector<8x1xf32>
    %5 = vector.broadcast %4 : vector<8x1xf32> to vector<8x512xf32>
    %6 = arith.addf %3, %5 : vector<8x512xf32>
    %cst = arith.constant 0.000000e+00 : f32
    %7 = vector.broadcast %cst : f32 to vector<8x512xf32>
    %8 = arith.maximumf %6, %7 : vector<8x512xf32>
    %c0_5 = arith.constant 0 : index
    %c0_6 = arith.constant 0 : index
    %9 = vector.load %arg4[%c0_5, %c0_6] : memref<8x512xf32, #tpu.memory_space<vmem>>, vector<8x512xf32>
    tpu.vector_store %arg4[%c0_5, %c0_6], %8 {strides = array<i32>} : memref<8x512xf32, #tpu.memory_space<vmem>>, vector<8x512xf32>,
    return
  }
  func.func @transform_0(%arg0: i32) -> (i32, i32) {
    %c0_i32 = arith.constant 0 : i32
    %c0_i32_0 = arith.constant 0 : i32
    return %c0_i32, %arg0 : i32, i32
  }
  func.func @transform_1(%arg0: i32) -> (i32, i32) {
    %c0_i32 = arith.constant 0 : i32
    %c0_i32_0 = arith.constant 0 : i32
    %c0_i32_1 = arith.constant 0 : i32
    return %c0_i32, %c0_i32_0 : i32, i32
  }
  func.func @transform_2(%arg0: i32) -> (i32, i32) {
    %c0_i32 = arith.constant 0 : i32
    %c0_i32_0 = arith.constant 0 : i32
    %c0_i32_1 = arith.constant 0 : i32
    return %c0_i32, %c0_i32_0 : i32, i32
  }
  func.func @transform_3(%arg0: i32) -> (i32, i32) {
    %c0_i32 = arith.constant 0 : i32
    %c0_i32_0 = arith.constant 0 : i32
    return %c0_i32, %arg0 : i32, i32
  }
}

module attributes {stable_mosaic.version = 11 : i64} {
  func.func @_conv_stats_kernel(%arg0: i32, %arg1: i32, %arg2: memref<8x256xbf16, #tpu.memory_space<vmem>>, %arg3: memref<256x512xbf16, #tpu.memory_space<vmem>>, %arg4: memref<8x512xf32, #tpu.memory_space<vmem>>, %arg5: memref<1x8x512xf32, #tpu.memory_space<vmem>>, %arg6: memref<1x8x512xf32, #tpu.memory_space<vmem>>) attributes {dimension_semantics = [#tpu.dimension_semantics<parallel>, #tpu.dimension_semantics<arbitrary>], iteration_bounds = array<i64: 2, 8>, scalar_prefetch = 0 : i64, scratch_operands = 0 : i64, tpu.core_type = #tpu.core_type<tc>, window_params = [{pipeline_mode = #tpu.pipeline_mode<synchronous>, transform_indices = @transform_0, window_bounds = array<i64: 8, 256>}, {transform_indices = @transform_1, window_bounds = array<i64: 256, 512>}, {transform_indices = @transform_2, window_bounds = array<i64: 8, 512>}, {transform_indices = @transform_3, window_bounds = array<i64: 1, 8, 512>}, {transform_indices = @transform_4, window_bounds = array<i64: 1, 8, 512>}]} {
    %c0 = arith.constant 0 : index
    %c0_0 = arith.constant 0 : index
    %0 = vector.load %arg2[%c0, %c0_0] : memref<8x256xbf16, #tpu.memory_space<vmem>>, vector<8x256xbf16>
    %c0_1 = arith.constant 0 : index
    %c0_2 = arith.constant 0 : index
    %1 = vector.load %arg3[%c0_1, %c0_2] : memref<256x512xbf16, #tpu.memory_space<vmem>>, vector<256x512xbf16>
    %cst = arith.constant dense<0.000000e+00> : vector<8x512xf32>
    %2 = tpu.matmul %0, %1, %cst {dimension_numbers = #tpu.dot_dimension_numbers<[1], [0], [0], [1], [0, 0, 1, 1], [], []>} : vector<8x256xbf16>, vector<256x512xbf16>, vector<8x512xf32> -> vector<8x512xf32>
    %c0_3 = arith.constant 0 : index
    %c0_4 = arith.constant 0 : index
    %3 = vector.load %arg4[%c0_3, %c0_4] : memref<8x512xf32, #tpu.memory_space<vmem>>, vector<8x512xf32>
    tpu.vector_store %arg4[%c0_3, %c0_4], %2 {strides = array<i32>} : memref<8x512xf32, #tpu.memory_space<vmem>>, vector<8x512xf32>,
    %c0_i32 = arith.constant 0 : i32
    %4 = arith.cmpi eq, %arg1, %c0_i32 : i32
    %5 = arith.extui %4 : i1 to i32
    %c0_i32_5 = arith.constant 0 : i32
    %6 = arith.cmpi ne, %5, %c0_i32_5 : i32
    scf.if %6 {
      %cst_18 = arith.constant 0.000000e+00 : f32
      %16 = vector.broadcast %cst_18 : f32 to vector<1x8x512xf32>
      %c0_19 = arith.constant 0 : index
      %c0_20 = arith.constant 0 : index
      %c0_21 = arith.constant 0 : index
      %17 = vector.load %arg5[%c0_19, %c0_20, %c0_21] : memref<1x8x512xf32, #tpu.memory_space<vmem>>, vector<1x8x512xf32>
      tpu.vector_store %arg5[%c0_19, %c0_20, %c0_21], %16 {strides = array<i32>} : memref<1x8x512xf32, #tpu.memory_space<vmem>>, vector<1x8x512xf32>,
      %cst_22 = arith.constant 0.000000e+00 : f32
      %18 = vector.broadcast %cst_22 : f32 to vector<1x8x512xf32>
      %c0_23 = arith.constant 0 : index
      %c0_24 = arith.constant 0 : index
      %c0_25 = arith.constant 0 : index
      %19 = vector.load %arg6[%c0_23, %c0_24, %c0_25] : memref<1x8x512xf32, #tpu.memory_space<vmem>>, vector<1x8x512xf32>
      tpu.vector_store %arg6[%c0_23, %c0_24, %c0_25], %18 {strides = array<i32>} : memref<1x8x512xf32, #tpu.memory_space<vmem>>, vector<1x8x512xf32>,
    } else {
    }
    %c0_6 = arith.constant 0 : index
    %c0_7 = arith.constant 0 : index
    %c0_8 = arith.constant 0 : index
    %7 = vector.load %arg5[%c0_6, %c0_7, %c0_8] : memref<1x8x512xf32, #tpu.memory_space<vmem>>, vector<1x8x512xf32>
    %8 = vector.shape_cast %2 : vector<8x512xf32> to vector<1x8x512xf32>
    %9 = arith.addf %7, %8 : vector<1x8x512xf32>
    %c0_9 = arith.constant 0 : index
    %c0_10 = arith.constant 0 : index
    %c0_11 = arith.constant 0 : index
    %10 = vector.load %arg5[%c0_9, %c0_10, %c0_11] : memref<1x8x512xf32, #tpu.memory_space<vmem>>, vector<1x8x512xf32>
    tpu.vector_store %arg5[%c0_9, %c0_10, %c0_11], %9 {strides = array<i32>} : memref<1x8x512xf32, #tpu.memory_space<vmem>>, vector<1x8x512xf32>,
    %c0_12 = arith.constant 0 : index
    %c0_13 = arith.constant 0 : index
    %c0_14 = arith.constant 0 : index
    %11 = vector.load %arg6[%c0_12, %c0_13, %c0_14] : memref<1x8x512xf32, #tpu.memory_space<vmem>>, vector<1x8x512xf32>
    %12 = arith.mulf %2, %2 : vector<8x512xf32>
    %13 = vector.shape_cast %12 : vector<8x512xf32> to vector<1x8x512xf32>
    %14 = arith.addf %11, %13 : vector<1x8x512xf32>
    %c0_15 = arith.constant 0 : index
    %c0_16 = arith.constant 0 : index
    %c0_17 = arith.constant 0 : index
    %15 = vector.load %arg6[%c0_15, %c0_16, %c0_17] : memref<1x8x512xf32, #tpu.memory_space<vmem>>, vector<1x8x512xf32>
    tpu.vector_store %arg6[%c0_15, %c0_16, %c0_17], %14 {strides = array<i32>} : memref<1x8x512xf32, #tpu.memory_space<vmem>>, vector<1x8x512xf32>,
    return
  }
  func.func @transform_0(%arg0: i32, %arg1: i32) -> (i32, i32) {
    %c0_i32 = arith.constant 0 : i32
    %c0_i32_0 = arith.constant 0 : i32
    %c0_i32_1 = arith.constant 0 : i32
    return %c0_i32, %c0_i32_0 : i32, i32
  }
  func.func @transform_1(%arg0: i32, %arg1: i32) -> (i32, i32) {
    %c8_i32 = arith.constant 8 : i32
    %0 = arith.muli %arg0, %c8_i32 : i32
    %1 = arith.addi %0, %arg1 : i32
    %c0_i32 = arith.constant 0 : i32
    %c0_i32_0 = arith.constant 0 : i32
    return %c0_i32, %1 : i32, i32
  }
  func.func @transform_2(%arg0: i32, %arg1: i32) -> (i32, i32) {
    %c8_i32 = arith.constant 8 : i32
    %0 = arith.muli %arg0, %c8_i32 : i32
    %1 = arith.addi %0, %arg1 : i32
    %c0_i32 = arith.constant 0 : i32
    %c0_i32_0 = arith.constant 0 : i32
    return %c0_i32, %1 : i32, i32
  }
  func.func @transform_3(%arg0: i32, %arg1: i32) -> (i32, i32, i32) {
    %c0_i32 = arith.constant 0 : i32
    %c0_i32_0 = arith.constant 0 : i32
    %c0_i32_1 = arith.constant 0 : i32
    return %arg0, %c0_i32, %c0_i32_0 : i32, i32, i32
  }
  func.func @transform_4(%arg0: i32, %arg1: i32) -> (i32, i32, i32) {
    %c0_i32 = arith.constant 0 : i32
    %c0_i32_0 = arith.constant 0 : i32
    %c0_i32_1 = arith.constant 0 : i32
    return %arg0, %c0_i32, %c0_i32_0 : i32, i32, i32
  }
}

</mosaic_0001>

<bundles_post_ra>
// kernel: upsample_module_forward.10
= control target key start
LH: loop header
LB: loop body
LE: loop exit
PB: predicated region body
PF: predicated region fallthrough
CT: control target
= control target key end

     0   :  { %s312_s12 = smov 0   ;;  %s335_s0 = inlined_call_operand.vmem [shape: f32[8,1024], index: 0, kind: input, shape index: {}, may-alias: {0,3}]   ;;  %s336_s1 = inlined_call_operand.vmem [shape: f32[8,1], index: 1, kind: input, shape index: {}]   ;;  %s337_s2 = inlined_call_operand.vmem [shape: f32[8,1], index: 2, kind: input, shape index: {}]   ;;  %s338_s3 = inlined_call_operand.vmem [shape: f32[8,1024], index: 3, kind: output, shape index: {}, may-alias: {0,3}]  }
   0x1 LB: > { %s262_s13 = sadd.s32 4294967295, %s289_s12   ;;  %p266_p0 = scmp.ge.s32.totalorder %s289_s12, 1  ;;  %s289_s12 = sphi %s312_s12, %s13_s12  }
   0x2   : > { %p138_p1 = scmp.lt.s32.totalorder %s289_s12, 3 }
   0x4   : > { %p139_p2 = pnand %p266_p0, %p138_p1 }
   0x5   : > { %v178_v0 = vld [vmem:[%s336_s1] sm:$0xff] (!%p139_p2)  ;;  %v291_v1 = vmov (!%p139_p2), 0   ;;  %s267_s18 = sshll.u32 (!%p139_p2), %s262_s13, 2 }
   0x6   : > { %142 = sbr.rel (%p139_p2) target bundleno = 145 (0x91), region = 32  ;;  %282 = vset.pattern.permute.xlu0 (!%p139_p2), %v291_v1  ;;  %v188_v2 = vld [vmem:[%s337_s2] sm:$0xff] (!%p139_p2)  ;;  %p163_p3 = scmp.lt.s32.totalorder (!%p139_p2), %s267_s18, 7 }
   0x7   : > { %181 = vperm.xlu0 (!%p139_p2), %282, %v178_v0  }
   0xb   : > { %191 = vperm.xlu0 (!%p139_p2), %282, %v188_v2  }
   0xd   : > { %s340_s18 = smov (!%p163_p3, %s267_s18), 7 }
   0xe   : > { %s268_s19 = sshll.u32 %s340_s18, 3 }
   0xf   : > { %s166_s22 = scalar_lea.vmem %s335_s0, %s268_s19  ;;  %s172_s25 = scalar_lea.vmem %s338_s3, %s268_s19 }
  0x10   : > { %v174_v4 = vld [vmem:[%s166_s22] sm:$0xff]  ;;  %v175_v5 = vld [vmem:[%s166_s22 + $0x8] sm:$0xff]  ;;  %v176_v6 = vld [vmem:[%s166_s22 + $0x10] sm:$0xff] }
  0x11   : > { %v177_v7 = vld [vmem:[%s166_s22 + $0x18] sm:$0xff] }
  0x86   : > { %v182_v3 = vpop.permute.xlu0 %181 }
  0x87   : > { %v184_v8 = vmul.f32 %v182_v3, %v174_v4  ;;  %v185_v9 = vmul.f32 %v182_v3, %v175_v5  ;;  %v186_v10 = vmul.f32 %v182_v3, %v176_v6  ;;  %v187_v12 = vmul.f32 %v182_v3, %v177_v7 }
  0x8a   : > { %v192_v11 = vpop.permute.xlu0 %191 }
  0x8b   : > { %v194_v13 = vadd.f32 %v192_v11, %v184_v8  ;;  %v195_v14 = vadd.f32 %v192_v11, %v185_v9  ;;  %v196_v15 = vadd.f32 %v192_v11, %v186_v10  ;;  %v197_v16 = vadd.f32 %v192_v11, %v187_v12 }
  0x8d   : > { %v198_v17 = vmax.f32 %v194_v13, 0.0  ;;  %v199_v18 = vmax.f32 %v195_v14, 0.0  ;;  %v200_v19 = vmax.f32 %v196_v15, 0.0  ;;  %v201_v20 = vmax.f32 %v197_v16, 0.0 }
  0x8f   : > { %202 = vst [vmem:[%s172_s25] sm:$0xff] %v198_v17  ;;  %203 = vst [vmem:[%s172_s25 + $0x8] sm:$0xff] %v199_v18 }
  0x90   : > { %204 = vst [vmem:[%s172_s25 + $0x10] sm:$0xff] %v200_v19  ;;  %205 = vst [vmem:[%s172_s25 + $0x18] sm:$0xff] %v201_v20 }
  0x91 PF: > { %s13_s12 = sadd.s32 1, %s289_s12  }
  0x92   : > { %p10_p4 = scmp.ge.s32.totalorder %s13_s12, 4  }
  0x94   :  { %12 = sbr.rel (!%p10_p4) target bundleno = 1 (0x1), region = 62 }

// kernel: upsample_module_forward.9
= control target key start
LH: loop header
LB: loop body
LE: loop exit
PB: predicated region body
PF: predicated region fallthrough
CT: control target
= control target key end

     0   :  { %s997_s15 = smov 0   ;;  %s999_s16 = smov 0   ;;  %s1175_s0 = inlined_call_operand.vmem [shape: bf16[8,128], index: 0, kind: input, shape index: {}]   ;;  %s1176_s1 = inlined_call_operand.vmem [shape: bf16[128,1024], index: 1, kind: input, shape index: {}]   ;;  %s1177_s2 = inlined_call_operand.vmem [shape: f32[8,1024], index: 2, kind: output, shape index: {0}]   ;;  %s1178_s3 = inlined_call_operand.vmem [shape: f32[2,8,512], index: 3, kind: output, shape index: {1}]   ;;  %s1179_s4 = inlined_call_operand.vmem [shape: f32[2,8,512], index: 4, kind: output, shape index: {2}]  }
   0x1   :  { %s1001_s17 = smov 0   ;;  %s1003_s18 = smov 0  }
   0x2   :  { %s1005_s19 = smov 0  }
   0x3 LB: > { %s27_s20 = sadd.s32 1, %s965_s18  ;;  %p64_p1 = scmp.ne.s32.totalorder %s957_s16, %s953_s15  ;;  %s969_s19 = sphi %s1005_s19, %s15_s19   ;;  %s965_s18 = sphi %s1003_s18, %s1183_s18   ;;  %s961_s17 = sphi %s1001_s17, %s1182_s17   ;;  %s957_s16 = sphi %s999_s16, %s1181_s16   ;;  %s953_s15 = sphi %s997_s15, %s1180_s15  }
   0x4   : > { %p29_p0 = scmp.ge.s32.totalorder %s27_s20, 2  ;;  %p65_p2 = scmp.eq.s32.totalorder %s969_s19, 0 }
   0x5   : > { %s57_s22 = sadd.s32 1, %s957_s16  ;;  %p792_p5 = scmp.ge.s32.totalorder %s969_s19, 2 }
   0x6   : > { %s1185_s20 = smov (%p29_p0, %s27_s20), 0  ;;  %p66_p3 = por %p65_p2, %p64_p1 }
   0x7   : > { %s54_s21 = ssub.s32 %s965_s18, %s1185_s20  ;;  %173 = sbr.rel (%p792_p5) target bundleno = 34 (0x22), region = 20 }
   0x8   : > { %p55_p4 = scmp.eq.s32.totalorder %s54_s21, 0 }
   0xa   : > { %s1032_s23 = scalar_select %p55_p4, %s957_s16, %s57_s22  }
   0xe   : > { %176 = sbr.rel (!%p66_p3) target bundleno = 34 (0x22), region = 24  ;;  %s178_s24 = sand.u32 (%p66_p3), 1, %s957_s16  }
   0xf   : > { %s838_s25 = sshll.u32 (%p66_p3), %s965_s18, 4  ;;  %s793_s26 = sshll.u32 (%p66_p3), %s178_s24, 8 }
  0x10   : > { %s1040_s29 = scalar_lea.vmem (%p66_p3), %s1176_s1, %s838_s25  ;;  %s1045_s30 = scalar_lea.vmem (%p66_p3), [#allocation2], %s793_s26 }
  0x11   : > { %v197_v0 = vld [vmem:[%s1040_s29] sm:$0xff] (%p66_p3)  ;;  %v199_v1 = vld [vmem:[%s1040_s29 + $0x8] sm:$0xff] (%p66_p3) }
  0x12   : > { %v201_v2 = vld [vmem:[%s1040_s29 + $0x20] sm:$0xff] (%p66_p3)  ;;  %198 = vst [vmem:[%s1045_s30] sm:$0xff] (%p66_p3), %v197_v0  ;;  %200 = vst [vmem:[%s1045_s30 + $0x8] sm:$0xff] (%p66_p3), %v199_v1  ;;  %v203_v3 = vld [vmem:[%s1040_s29 + $0x28] sm:$0xff] (%p66_p3) }
  0x13   : > { %202 = vst [vmem:[%s1045_s30 + $0x10] sm:$0xff] (%p66_p3), %v201_v2  ;;  %v205_v4 = vld [vmem:[%s1040_s29 + $0x40] sm:$0xff] (%p66_p3)  ;;  %v207_v5 = vld [vmem:[%s1040_s29 + $0x48] sm:$0xff] (%p66_p3)  ;;  %204 = vst [vmem:[%s1045_s30 + $0x18] sm:$0xff] (%p66_p3), %v203_v3 }
  0x14   : > { %206 = vst [vmem:[%s1045_s30 + $0x20] sm:$0xff] (%p66_p3), %v205_v4  ;;  %208 = vst [vmem:[%s1045_s30 + $0x28] sm:$0xff] (%p66_p3), %v207_v5  ;;  %v209_v6 = vld [vmem:[%s1040_s29 + $0x60] sm:$0xff] (%p66_p3)  ;;  %v211_v7 = vld [vmem:[%s1040_s29 + $0x68] sm:$0xff] (%p66_p3) }
  0x15   : > { %v213_v8 = vld [vmem:[%s1040_s29 + $0x80] sm:$0xff]  ;;  %210 = vst [vmem:[%s1045_s30 + $0x30] sm:$0xff] %v209_v6  ;;  %212 = vst [vmem:[%s1045_s30 + $0x38] sm:$0xff] %v211_v7  ;;  %v215_v9 = vld [vmem:[%s1040_s29 + $0x88] sm:$0xff] }
  0x16   : > { %214 = vst [vmem:[%s1045_s30 + $0x40] sm:$0xff] %v213_v8  ;;  %v217_v10 = vld [vmem:[%s1040_s29 + $0xa0] sm:$0xff]  ;;  %v219_v11 = vld [vmem:[%s1040_s29 + $0xa8] sm:$0xff]  ;;  %216 = vst [vmem:[%s1045_s30 + $0x48] sm:$0xff] %v215_v9 }
  0x17   : > { %218 = vst [vmem:[%s1045_s30 + $0x50] sm:$0xff] %v217_v10  ;;  %220 = vst [vmem:[%s1045_s30 + $0x58] sm:$0xff] %v219_v11  ;;  %v221_v12 = vld [vmem:[%s1040_s29 + $0xc0] sm:$0xff]  ;;  %v223_v13 = vld [vmem:[%s1040_s29 + $0xc8] sm:$0xff] }
  0x18   : > { %v225_v14 = vld [vmem:[%s1040_s29 + $0xe0] sm:$0xff]  ;;  %222 = vst [vmem:[%s1045_s30 + $0x60] sm:$0xff] %v221_v12  ;;  %224 = vst [vmem:[%s1045_s30 + $0x68] sm:$0xff] %v223_v13  ;;  %v227_v15 = vld [vmem:[%s1040_s29 + $0xe8] sm:$0xff] }
  0x19   : > { %226 = vst [vmem:[%s1045_s30 + $0x70] sm:$0xff] %v225_v14  ;;  %v229_v16 = vld [vmem:[%s1040_s29 + $0x100] sm:$0xff]  ;;  %v231_v17 = vld [vmem:[%s1040_s29 + $0x108] sm:$0xff]  ;;  %228 = vst [vmem:[%s1045_s30 + $0x78] sm:$0xff] %v227_v15 }
  0x1a   : > { %230 = vst [vmem:[%s1045_s30 + $0x80] sm:$0xff] %v229_v16  ;;  %232 = vst [vmem:[%s1045_s30 + $0x88] sm:$0xff] %v231_v17  ;;  %v233_v18 = vld [vmem:[%s1040_s29 + $0x120] sm:$0xff]  ;;  %v235_v19 = vld [vmem:[%s1040_s29 + $0x128] sm:$0xff] }
  0x1b   : > { %v237_v20 = vld [vmem:[%s1040_s29 + $0x140] sm:$0xff]  ;;  %234 = vst [vmem:[%s1045_s30 + $0x90] sm:$0xff] %v233_v18  ;;  %236 = vst [vmem:[%s1045_s30 + $0x98] sm:$0xff] %v235_v19  ;;  %v239_v21 = vld [vmem:[%s1040_s29 + $0x148] sm:$0xff] }
  0x1c   : > { %238 = vst [vmem:[%s1045_s30 + $0xa0] sm:$0xff] %v237_v20  ;;  %v241_v22 = vld [vmem:[%s1040_s29 + $0x160] sm:$0xff]  ;;  %v243_v23 = vld [vmem:[%s1040_s29 + $0x168] sm:$0xff]  ;;  %240 = vst [vmem:[%s1045_s30 + $0xa8] sm:$0xff] %v239_v21 }
  0x1d   : > { %242 = vst [vmem:[%s1045_s30 + $0xb0] sm:$0xff] %v241_v22  ;;  %244 = vst [vmem:[%s1045_s30 + $0xb8] sm:$0xff] %v243_v23  ;;  %v245_v24 = vld [vmem:[%s1040_s29 + $0x180] sm:$0xff]  ;;  %v247_v25 = vld [vmem:[%s1040_s29 + $0x188] sm:$0xff] }
  0x1e   : > { %v249_v26 = vld [vmem:[%s1040_s29 + $0x1a0] sm:$0xff]  ;;  %246 = vst [vmem:[%s1045_s30 + $0xc0] sm:$0xff] %v245_v24  ;;  %248 = vst [vmem:[%s1045_s30 + $0xc8] sm:$0xff] %v247_v25  ;;  %v251_v27 = vld [vmem:[%s1040_s29 + $0x1a8] sm:$0xff] }
  0x1f   : > { %250 = vst [vmem:[%s1045_s30 + $0xd0] sm:$0xff] %v249_v26  ;;  %v253_v28 = vld [vmem:[%s1040_s29 + $0x1c0] sm:$0xff]  ;;  %v255_v29 = vld [vmem:[%s1040_s29 + $0x1c8] sm:$0xff]  ;;  %252 = vst [vmem:[%s1045_s30 + $0xd8] sm:$0xff] %v251_v27 }
  0x20   : > { %254 = vst [vmem:[%s1045_s30 + $0xe0] sm:$0xff] %v253_v28  ;;  %256 = vst [vmem:[%s1045_s30 + $0xe8] sm:$0xff] %v255_v29  ;;  %v257_v30 = vld [vmem:[%s1040_s29 + $0x1e0] sm:$0xff]  ;;  %v259_v31 = vld [vmem:[%s1040_s29 + $0x1e8] sm:$0xff] }
  0x21   : > { %258 = vst [vmem:[%s1045_s30 + $0xf0] sm:$0xff] %v257_v30  ;;  %260 = vst [vmem:[%s1045_s30 + $0xf8] sm:$0xff] %v259_v31 }
  0x22 PF: > { %p796_p6 = scmp.ge.s32.totalorder %s969_s19, 1  ;;  %p265_p7 = scmp.lt.s32.totalorder %s969_s19, 3 }
  0x24   : > { %p266_p8 = pnand %p796_p6, %p265_p7 }
  0x25   : > { %s272_s5 = sand.u32 (!%p266_p8), 1, %s953_s15   ;;  %v971_v32 = vmov (!%p266_p8), 0   ;;  %v329_v1 = vld [vmem:[%s1175_s0] sm:$0xf] (!%p266_p8)  ;;  %s798_s10 = sshll.u32 (!%p266_p8), %s961_s17, 2 }
  0x26   : > { %269 = sbr.rel (%p266_p8) target bundleno = 291 (0x123), region = 47  ;;  %s797_s6 = sshll.u32 (!%p266_p8), %s272_s5, 8  ;;  %554 = vmatprep.mubr.bf16.mxu0 (!%p266_p8), %v971_v32  ;;  %595 = vmatprep.mubr.bf16.mxu1 (!%p266_p8), %v971_v32 }
  0x27   : > { %s1111_s7 = scalar_lea.vmem (!%p266_p8), [#allocation2], %s797_s6  ;;  %p312_p9 = scmp.lt.s32.totalorder (!%p266_p8), %s798_s10, 7 }
  0x28   : > { %v883_v33 = vld [vmem:[%s1111_s7 + $0x4] ss:$16 sps:$4 sm:$0xff] (!%p266_p8)   ;;  %v885_v34 = vld [vmem:[%s1111_s7 + $0xc] ss:$16 sps:$4 sm:$0xff] (!%p266_p8)   ;;  %v887_v35 = vld [vmem:[%s1111_s7] ss:$16 sps:$4 sm:$0xff] (!%p266_p8)  }
  0x29   : > { %522 = vmatprep.subr.bf16.mxu0 (!%p266_p8), %v883_v33  ;;  %v888_v36 = vld [vmem:[%s1111_s7 + $0x8] ss:$16 sps:$4 sm:$0xff] (!%p266_p8)   ;;  %563 = vmatprep.subr.bf16.mxu1 (!%p266_p8), %v885_v34  ;;  %v889_v37 = vld [vmem:[%s1111_s7 + $0x24] ss:$16 sps:$4 sm:$0xff] (!%p266_p8)   ;;  %v891_v38 = vld [vmem:[%s1111_s7 + $0x2c] ss:$16 sps:$4 sm:$0xff] (!%p266_p8)  }
  0x2a   : > { %523 = vmatpush1.bf16.msra.mxu0 (!%p266_p8), %v887_v35  ;;  %564 = vmatpush1.bf16.msra.mxu1 (!%p266_p8), %v888_v36  ;;  %v893_v39 = vld [vmem:[%s1111_s7 + $0x20] ss:$16 sps:$4 sm:$0xff] (!%p266_p8)   ;;  %v894_v40 = vld [vmem:[%s1111_s7 + $0x28] ss:$16 sps:$4 sm:$0xff] (!%p266_p8)   ;;  %v895_v41 = vld [vmem:[%s1111_s7 + $0x44] ss:$16 sps:$4 sm:$0xff] (!%p266_p8)  }
  0x2b   : > { %524 = vmatprep.subr.bf16.mxu0 (!%p266_p8), %v889_v37  ;;  %565 = vmatprep.subr.bf16.mxu1 (!%p266_p8), %v891_v38  ;;  %v897_v42 = vld [vmem:[%s1111_s7 + $0x4c] ss:$16 sps:$4 sm:$0xff] (!%p266_p8)   ;;  %v899_v43 = vld [vmem:[%s1111_s7 + $0x40] ss:$16 sps:$4 sm:$0xff] (!%p266_p8)   ;;  %v900_v44 = vld [vmem:[%s1111_s7 + $0x48] ss:$16 sps:$4 sm:$0xff] (!%p266_p8)  }
  0x2c   : > { %v901_v45 = vld [vmem:[%s1111_s7 + $0x64] ss:$16 sps:$4 sm:$0xff] (!%p266_p8)   ;;  %v903_v46 = vld [vmem:[%s1111_s7 + $0x6c] ss:$16 sps:$4 sm:$0xff] (!%p266_p8)   ;;  %v905_v47 = vld [vmem:[%s1111_s7 + $0x60] ss:$16 sps:$4 sm:$0xff] (!%p266_p8)  }
  0x2d   : > { %v906_v48 = vld [vmem:[%s1111_s7 + $0x68] ss:$16 sps:$4 sm:$0xff]   ;;  %v907_v49 = vld [vmem:[%s1111_s7 + $0x84] ss:$16 sps:$4 sm:$0xff]   ;;  %v909_v50 = vld [vmem:[%s1111_s7 + $0x8c] ss:$16 sps:$4 sm:$0xff]  }
  0x2e   : > { %525 = vmatpush1.bf16.msra.mxu0 %v893_v39  ;;  %566 = vmatpush1.bf16.msra.mxu1 %v894_v40  ;;  %v911_v51 = vld [vmem:[%s1111_s7 + $0x80] ss:$16 sps:$4 sm:$0xff]   ;;  %v912_v52 = vld [vmem:[%s1111_s7 + $0x88] ss:$16 sps:$4 sm:$0xff]   ;;  %v913_v53 = vld [vmem:[%s1111_s7 + $0xa4] ss:$16 sps:$4 sm:$0xff]  }
  0x2f   : > { %526 = vmatprep.subr.bf16.mxu0 %v895_v41  ;;  %567 = vmatprep.subr.bf16.mxu1 %v897_v42  ;;  %v915_v54 = vld [vmem:[%s1111_s7 + $0xac] ss:$16 sps:$4 sm:$0xff]   ;;  %v917_v55 = vld [vmem:[%s1111_s7 + $0xa0] ss:$16 sps:$4 sm:$0xff]   ;;  %v918_v56 = vld [vmem:[%s1111_s7 + $0xa8] ss:$16 sps:$4 sm:$0xff]  }
  0x30   : > { %v919_v57 = vld [vmem:[%s1111_s7 + $0xc4] ss:$16 sps:$4 sm:$0xff]   ;;  %v921_v58 = vld [vmem:[%s1111_s7 + $0xcc] ss:$16 sps:$4 sm:$0xff]   ;;  %v923_v59 = vld [vmem:[%s1111_s7 + $0xc0] ss:$16 sps:$4 sm:$0xff]  }
  0x31   : > { %v924_v60 = vld [vmem:[%s1111_s7 + $0xc8] ss:$16 sps:$4 sm:$0xff]   ;;  %v925_v61 = vld [vmem:[%s1111_s7 + $0xe4] ss:$16 sps:$4 sm:$0xff]   ;;  %v927_v62 = vld [vmem:[%s1111_s7 + $0xec] ss:$16 sps:$4 sm:$0xff]  }
  0x32   : > { %527 = vmatpush1.bf16.msra.mxu0 %v899_v43  ;;  %568 = vmatpush1.bf16.msra.mxu1 %v900_v44  ;;  %v929_v63 = vld [vmem:[%s1111_s7 + $0xe0] ss:$16 sps:$4 sm:$0xff]   ;;  %v930_v0 = vld [vmem:[%s1111_s7 + $0xe8] ss:$16 sps:$4 sm:$0xff]   ;;  %p318_p10 = scmp.lt.s32.totalorder %s961_s17, 1  ;;  %s1187_s10 = smov (!%p312_p9, %s798_s10), 7 }
  0x33   : > { %528 = vmatprep.subr.bf16.mxu0 %v901_v45  ;;  %569 = vmatprep.subr.bf16.mxu1 %v903_v46  ;;  %s799_s11 = sshll.u32 %s1187_s10, 3 }
  0x34   : > { %s1189_s17 = smov (!%p318_p10, %s961_s17), 1  ;;  %s315_s15 = scalar_lea.vmem %s1177_s2, %s799_s11 }
  0x35   : > { %s839_s12 = sshll.u32 %s1189_s17, 5 }
  0x36   : > { %529 = vmatpush1.bf16.msra.mxu0 %v905_v47  ;;  %570 = vmatpush1.bf16.msra.mxu1 %v906_v48  ;;  %s322_s24 = scalar_lea.vmem %s1178_s3, %s839_s12  ;;  %s327_s27 = scalar_lea.vmem %s1179_s4, %s839_s12 }
  0x37   : > { %530 = vmatprep.subr.bf16.mxu0 %v907_v49  ;;  %571 = vmatprep.subr.bf16.mxu1 %v909_v50 }
  0x3a   : > { %531 = vmatpush1.bf16.msra.mxu0 %v911_v51  ;;  %572 = vmatpush1.bf16.msra.mxu1 %v912_v52 }
  0x3b   : > { %532 = vmatprep.subr.bf16.mxu0 %v913_v53  ;;  %573 = vmatprep.subr.bf16.mxu1 %v915_v54 }
  0x3e   : > { %533 = vmatpush1.bf16.msra.mxu0 %v917_v55  ;;  %574 = vmatpush1.bf16.msra.mxu1 %v918_v56 }
  0x3f   : > { %534 = vmatprep.subr.bf16.mxu0 %v919_v57  ;;  %575 = vmatprep.subr.bf16.mxu1 %v921_v58 }
  0x42   : > { %535 = vmatpush1.bf16.msra.mxu0 %v923_v59  ;;  %576 = vmatpush1.bf16.msra.mxu1 %v924_v60 }
  0x43   : > { %536 = vmatprep.subr.bf16.mxu0 %v925_v61  ;;  %577 = vmatprep.subr.bf16.mxu1 %v927_v62 }
  0x46   : > { %537 = vmatpush1.bf16.msra.mxu0 %v929_v63  ;;  %578 = vmatpush1.bf16.msra.mxu1 %v930_v0 }
  0x49   : > { %555 = vmatmul.mubr.bf16.vlgmr.msra.gmra.mrb[0].mxu0 %v329_v1  ;;  %596 = vmatmul.mubr.bf16.vlgmr.msra.gmra.mrb[0].mxu1 %v329_v1 }
 0x11c   : > { %v556_v2 = vpop.f32.mrb[0].mxu0  ;;  %v597_v3 = vpop.f32.mrb[0].mxu1 }
 0x11d   : > { %604 = vst [vmem:[%s315_s15] sm:$0xff] %v556_v2  ;;  %v636_v4 = vmul.f32 %v556_v2, %v556_v2  ;;  %v638_v5 = vmul.f32 %v597_v3, %v597_v3  ;;  %v558_v6 = vpop.f32.mrb[1].mxu0  ;;  %v599_v7 = vpop.f32.mrb[1].mxu1  ;;  %628 = vst [vmem:[%s322_s24] sm:$0xff] %v556_v2 }
 0x11e   : > { %605 = vst [vmem:[%s315_s15 + $0x8] sm:$0xff] %v558_v6  ;;  %v637_v8 = vmul.f32 %v558_v6, %v558_v6  ;;  %v639_v9 = vmul.f32 %v599_v7, %v599_v7  ;;  %v560_v10 = vpop.f32.mrb[2].mxu0  ;;  %v601_v11 = vpop.f32.mrb[2].mxu1  ;;  %630 = vst [vmem:[%s322_s24 + $0x10] sm:$0xff] %v597_v3 }
 0x11f   : > { %606 = vst [vmem:[%s315_s15 + $0x10] sm:$0xff] %v597_v3  ;;  %v561_v12 = vpop.f32.mrb[3].mxu0  ;;  %v602_v13 = vpop.f32.mrb[3].mxu1  ;;  %629 = vst [vmem:[%s322_s24 + $0x8] sm:$0xff] %v558_v6 }
 0x120   : > { %607 = vst [vmem:[%s315_s15 + $0x18] sm:$0xff] %v599_v7  ;;  %631 = vst [vmem:[%s322_s24 + $0x18] sm:$0xff] %v599_v7 }
 0x121   : > { %644 = vst [vmem:[%s327_s27] sm:$0xff] %v636_v4  ;;  %646 = vst [vmem:[%s327_s27 + $0x10] sm:$0xff] %v638_v5 }
 0x122   : > { %645 = vst [vmem:[%s327_s27 + $0x8] sm:$0xff] %v637_v8  ;;  %647 = vst [vmem:[%s327_s27 + $0x18] sm:$0xff] %v639_v9 }
 0x123 PF: > { %s15_s19 = sadd.s32 1, %s969_s19   ;;  %s1180_s15 = smov %s957_s16 }
 0x124   : > { %p12_p11 = scmp.ge.s32.totalorder %s15_s19, 4   ;;  %s1181_s16 = smov %s1032_s23 }
 0x125   : > { %s1182_s17 = smov %s965_s18  ;;  %s1183_s18 = smov %s1185_s20 }
 0x126   :  { %14 = sbr.rel (!%p12_p11) target bundleno = 3 (0x3), region = 114 }

// kernel: upsample_module_forward.11
= control target key start
LH: loop header
LB: loop body
LE: loop exit
PB: predicated region body
PF: predicated region fallthrough
CT: control target
= control target key end

     0   :  { %s1341_s15 = smov 0   ;;  %s1343_s16 = smov 0   ;;  %s1621_s0 = inlined_call_operand.vmem [shape: bf16[8,256], index: 0, kind: input, shape index: {}]   ;;  %s1622_s1 = inlined_call_operand.vmem [shape: bf16[256,1024], index: 1, kind: input, shape index: {}]   ;;  %s1623_s2 = inlined_call_operand.vmem [shape: f32[8,1024], index: 2, kind: output, shape index: {0}]   ;;  %s1624_s3 = inlined_call_operand.vmem [shape: f32[2,8,512], index: 3, kind: output, shape index: {1}]   ;;  %s1625_s4 = inlined_call_operand.vmem [shape: f32[2,8,512], index: 4, kind: output, shape index: {2}]  }
   0x1   :  { %s1345_s17 = smov 0   ;;  %s1347_s18 = smov 0  }
   0x2   :  { %s1349_s19 = smov 0  }
   0x3 LB: > { %s27_s20 = sadd.s32 1, %s1310_s18  ;;  %p64_p1 = scmp.ne.s32.totalorder %s1302_s16, %s1298_s15  ;;  %s1314_s19 = sphi %s1349_s19, %s15_s19   ;;  %s1310_s18 = sphi %s1347_s18, %s1629_s18   ;;  %s1306_s17 = sphi %s1345_s17, %s1628_s17   ;;  %s1302_s16 = sphi %s1343_s16, %s1627_s16   ;;  %s1298_s15 = sphi %s1341_s15, %s1626_s15  }
   0x4   : > { %p29_p0 = scmp.ge.s32.totalorder %s27_s20, 2  ;;  %p65_p2 = scmp.eq.s32.totalorder %s1314_s19, 0 }
   0x5   : > { %s57_s22 = sadd.s32 1, %s1302_s16  ;;  %p1054_p5 = scmp.ge.s32.totalorder %s1314_s19, 2 }
   0x6   : > { %s1631_s20 = smov (%p29_p0, %s27_s20), 0  ;;  %p66_p3 = por %p65_p2, %p64_p1 }
   0x7   : > { %s54_s21 = ssub.s32 %s1310_s18, %s1631_s20  ;;  %173 = sbr.rel (%p1054_p5) target bundleno = 50 (0x32), region = 20 }
   0x8   : > { %p55_p4 = scmp.eq.s32.totalorder %s54_s21, 0 }
   0xa   : > { %s1376_s23 = scalar_select %p55_p4, %s1302_s16, %s57_s22  }
   0xe   : > { %176 = sbr.rel (!%p66_p3) target bundleno = 50 (0x32), region = 24  ;;  %s178_s24 = sand.u32 (%p66_p3), 1, %s1302_s16  }
   0xf   : > { %s1134_s25 = sshll.u32 (%p66_p3), %s1310_s18, 4  ;;  %s1055_s26 = sshll.u32 (%p66_p3), %s178_s24, 9 }
  0x10   : > { %s1384_s29 = scalar_lea.vmem (%p66_p3), %s1622_s1, %s1134_s25  ;;  %s1389_s30 = scalar_lea.vmem (%p66_p3), [#allocation2], %s1055_s26 }
  0x11   : > { %v197_v0 = vld [vmem:[%s1384_s29] sm:$0xff] (%p66_p3)  ;;  %v199_v1 = vld [vmem:[%s1384_s29 + $0x8] sm:$0xff] (%p66_p3) }
  0x12   : > { %v201_v2 = vld [vmem:[%s1384_s29 + $0x20] sm:$0xff] (%p66_p3)  ;;  %198 = vst [vmem:[%s1389_s30] sm:$0xff] (%p66_p3), %v197_v0  ;;  %200 = vst [vmem:[%s1389_s30 + $0x8] sm:$0xff] (%p66_p3), %v199_v1  ;;  %v203_v3 = vld [vmem:[%s1384_s29 + $0x28] sm:$0xff] (%p66_p3) }
  0x13   : > { %202 = vst [vmem:[%s1389_s30 + $0x10] sm:$0xff] (%p66_p3), %v201_v2  ;;  %v205_v4 = vld [vmem:[%s1384_s29 + $0x40] sm:$0xff] (%p66_p3)  ;;  %v207_v5 = vld [vmem:[%s1384_s29 + $0x48] sm:$0xff] (%p66_p3)  ;;  %204 = vst [vmem:[%s1389_s30 + $0x18] sm:$0xff] (%p66_p3), %v203_v3 }
  0x14   : > { %206 = vst [vmem:[%s1389_s30 + $0x20] sm:$0xff] (%p66_p3), %v205_v4  ;;  %208 = vst [vmem:[%s1389_s30 + $0x28] sm:$0xff] (%p66_p3), %v207_v5  ;;  %v209_v6 = vld [vmem:[%s1384_s29 + $0x60] sm:$0xff] (%p66_p3)  ;;  %v211_v7 = vld [vmem:[%s1384_s29 + $0x68] sm:$0xff] (%p66_p3) }
  0x15   : > { %v213_v8 = vld [vmem:[%s1384_s29 + $0x80] sm:$0xff]  ;;  %210 = vst [vmem:[%s1389_s30 + $0x30] sm:$0xff] %v209_v6  ;;  %212 = vst [vmem:[%s1389_s30 + $0x38] sm:$0xff] %v211_v7  ;;  %v215_v9 = vld [vmem:[%s1384_s29 + $0x88] sm:$0xff] }
  0x16   : > { %214 = vst [vmem:[%s1389_s30 + $0x40] sm:$0xff] %v213_v8  ;;  %v217_v10 = vld [vmem:[%s1384_s29 + $0xa0] sm:$0xff]  ;;  %v219_v11 = vld [vmem:[%s1384_s29 + $0xa8] sm:$0xff]  ;;  %216 = vst [vmem:[%s1389_s30 + $0x48] sm:$0xff] %v215_v9 }
  0x17   : > { %218 = vst [vmem:[%s1389_s30 + $0x50] sm:$0xff] %v217_v10  ;;  %220 = vst [vmem:[%s1389_s30 + $0x58] sm:$0xff] %v219_v11  ;;  %v221_v12 = vld [vmem:[%s1384_s29 + $0xc0] sm:$0xff]  ;;  %v223_v13 = vld [vmem:[%s1384_s29 + $0xc8] sm:$0xff] }
  0x18   : > { %v225_v14 = vld [vmem:[%s1384_s29 + $0xe0] sm:$0xff]  ;;  %222 = vst [vmem:[%s1389_s30 + $0x60] sm:$0xff] %v221_v12  ;;  %224 = vst [vmem:[%s1389_s30 + $0x68] sm:$0xff] %v223_v13  ;;  %v227_v15 = vld [vmem:[%s1384_s29 + $0xe8] sm:$0xff] }
  0x19   : > { %226 = vst [vmem:[%s1389_s30 + $0x70] sm:$0xff] %v225_v14  ;;  %v229_v16 = vld [vmem:[%s1384_s29 + $0x100] sm:$0xff]  ;;  %v231_v17 = vld [vmem:[%s1384_s29 + $0x108] sm:$0xff]  ;;  %228 = vst [vmem:[%s1389_s30 + $0x78] sm:$0xff] %v227_v15 }
  0x1a   : > { %230 = vst [vmem:[%s1389_s30 + $0x80] sm:$0xff] %v229_v16  ;;  %232 = vst [vmem:[%s1389_s30 + $0x88] sm:$0xff] %v231_v17  ;;  %v233_v18 = vld [vmem:[%s1384_s29 + $0x120] sm:$0xff]  ;;  %v235_v19 = vld [vmem:[%s1384_s29 + $0x128] sm:$0xff] }
  0x1b   : > { %v237_v20 = vld [vmem:[%s1384_s29 + $0x140] sm:$0xff]  ;;  %234 = vst [vmem:[%s1389_s30 + $0x90] sm:$0xff] %v233_v18  ;;  %236 = vst [vmem:[%s1389_s30 + $0x98] sm:$0xff] %v235_v19  ;;  %v239_v21 = vld [vmem:[%s1384_s29 + $0x148] sm:$0xff] }
  0x1c   : > { %238 = vst [vmem:[%s1389_s30 + $0xa0] sm:$0xff] %v237_v20  ;;  %v241_v22 = vld [vmem:[%s1384_s29 + $0x160] sm:$0xff]  ;;  %v243_v23 = vld [vmem:[%s1384_s29 + $0x168] sm:$0xff]  ;;  %240 = vst [vmem:[%s1389_s30 + $0xa8] sm:$0xff] %v239_v21 }
  0x1d   : > { %242 = vst [vmem:[%s1389_s30 + $0xb0] sm:$0xff] %v241_v22  ;;  %244 = vst [vmem:[%s1389_s30 + $0xb8] sm:$0xff] %v243_v23  ;;  %v245_v24 = vld [vmem:[%s1384_s29 + $0x180] sm:$0xff]  ;;  %v247_v25 = vld [vmem:[%s1384_s29 + $0x188] sm:$0xff] }
  0x1e   : > { %v249_v26 = vld [vmem:[%s1384_s29 + $0x1a0] sm:$0xff]  ;;  %246 = vst [vmem:[%s1389_s30 + $0xc0] sm:$0xff] %v245_v24  ;;  %248 = vst [vmem:[%s1389_s30 + $0xc8] sm:$0xff] %v247_v25  ;;  %v251_v27 = vld [vmem:[%s1384_s29 + $0x1a8] sm:$0xff] }
  0x1f   : > { %250 = vst [vmem:[%s1389_s30 + $0xd0] sm:$0xff] %v249_v26  ;;  %v253_v28 = vld [vmem:[%s1384_s29 + $0x1c0] sm:$0xff]  ;;  %v255_v29 = vld [vmem:[%s1384_s29 + $0x1c8] sm:$0xff]  ;;  %252 = vst [vmem:[%s1389_s30 + $0xd8] sm:$0xff] %v251_v27 }
  0x20   : > { %254 = vst [vmem:[%s1389_s30 + $0xe0] sm:$0xff] %v253_v28  ;;  %256 = vst [vmem:[%s1389_s30 + $0xe8] sm:$0xff] %v255_v29  ;;  %v257_v30 = vld [vmem:[%s1384_s29 + $0x1e0] sm:$0xff]  ;;  %v259_v31 = vld [vmem:[%s1384_s29 + $0x1e8] sm:$0xff] }
  0x21   : > { %v261_v32 = vld [vmem:[%s1384_s29 + $0x200] sm:$0xff]  ;;  %258 = vst [vmem:[%s1389_s30 + $0xf0] sm:$0xff] %v257_v30  ;;  %260 = vst [vmem:[%s1389_s30 + $0xf8] sm:$0xff] %v259_v31  ;;  %v263_v33 = vld [vmem:[%s1384_s29 + $0x208] sm:$0xff] }
  0x22   : > { %262 = vst [vmem:[%s1389_s30 + $0x100] sm:$0xff] %v261_v32  ;;  %v265_v34 = vld [vmem:[%s1384_s29 + $0x220] sm:$0xff]  ;;  %v267_v35 = vld [vmem:[%s1384_s29 + $0x228] sm:$0xff]  ;;  %264 = vst [vmem:[%s1389_s30 + $0x108] sm:$0xff] %v263_v33 }
  0x23   : > { %266 = vst [vmem:[%s1389_s30 + $0x110] sm:$0xff] %v265_v34  ;;  %268 = vst [vmem:[%s1389_s30 + $0x118] sm:$0xff] %v267_v35  ;;  %v269_v36 = vld [vmem:[%s1384_s29 + $0x240] sm:$0xff]  ;;  %v271_v37 = vld [vmem:[%s1384_s29 + $0x248] sm:$0xff] }
  0x24   : > { %v273_v38 = vld [vmem:[%s1384_s29 + $0x260] sm:$0xff]  ;;  %270 = vst [vmem:[%s1389_s30 + $0x120] sm:$0xff] %v269_v36  ;;  %272 = vst [vmem:[%s1389_s30 + $0x128] sm:$0xff] %v271_v37  ;;  %v275_v39 = vld [vmem:[%s1384_s29 + $0x268] sm:$0xff] }
  0x25   : > { %274 = vst [vmem:[%s1389_s30 + $0x130] sm:$0xff] %v273_v38  ;;  %v277_v40 = vld [vmem:[%s1384_s29 + $0x280] sm:$0xff]  ;;  %v279_v41 = vld [vmem:[%s1384_s29 + $0x288] sm:$0xff]  ;;  %276 = vst [vmem:[%s1389_s30 + $0x138] sm:$0xff] %v275_v39 }
  0x26   : > { %278 = vst [vmem:[%s1389_s30 + $0x140] sm:$0xff] %v277_v40  ;;  %280 = vst [vmem:[%s1389_s30 + $0x148] sm:$0xff] %v279_v41  ;;  %v281_v42 = vld [vmem:[%s1384_s29 + $0x2a0] sm:$0xff]  ;;  %v283_v43 = vld [vmem:[%s1384_s29 + $0x2a8] sm:$0xff] }
  0x27   : > { %v285_v44 = vld [vmem:[%s1384_s29 + $0x2c0] sm:$0xff]  ;;  %282 = vst [vmem:[%s1389_s30 + $0x150] sm:$0xff] %v281_v42  ;;  %284 = vst [vmem:[%s1389_s30 + $0x158] sm:$0xff] %v283_v43  ;;  %v287_v45 = vld [vmem:[%s1384_s29 + $0x2c8] sm:$0xff] }
  0x28   : > { %286 = vst [vmem:[%s1389_s30 + $0x160] sm:$0xff] %v285_v44  ;;  %v289_v46 = vld [vmem:[%s1384_s29 + $0x2e0] sm:$0xff]  ;;  %v291_v47 = vld [vmem:[%s1384_s29 + $0x2e8] sm:$0xff]  ;;  %288 = vst [vmem:[%s1389_s30 + $0x168] sm:$0xff] %v287_v45 }
  0x29   : > { %290 = vst [vmem:[%s1389_s30 + $0x170] sm:$0xff] %v289_v46  ;;  %292 = vst [vmem:[%s1389_s30 + $0x178] sm:$0xff] %v291_v47  ;;  %v293_v48 = vld [vmem:[%s1384_s29 + $0x300] sm:$0xff]  ;;  %v295_v49 = vld [vmem:[%s1384_s29 + $0x308] sm:$0xff] }
  0x2a   : > { %v297_v50 = vld [vmem:[%s1384_s29 + $0x320] sm:$0xff]  ;;  %294 = vst [vmem:[%s1389_s30 + $0x180] sm:$0xff] %v293_v48  ;;  %296 = vst [vmem:[%s1389_s30 + $0x188] sm:$0xff] %v295_v49  ;;  %v299_v51 = vld [vmem:[%s1384_s29 + $0x328] sm:$0xff] }
  0x2b   : > { %298 = vst [vmem:[%s1389_s30 + $0x190] sm:$0xff] %v297_v50  ;;  %v301_v52 = vld [vmem:[%s1384_s29 + $0x340] sm:$0xff]  ;;  %v303_v53 = vld [vmem:[%s1384_s29 + $0x348] sm:$0xff]  ;;  %300 = vst [vmem:[%s1389_s30 + $0x198] sm:$0xff] %v299_v51 }
  0x2c   : > { %302 = vst [vmem:[%s1389_s30 + $0x1a0] sm:$0xff] %v301_v52  ;;  %304 = vst [vmem:[%s1389_s30 + $0x1a8] sm:$0xff] %v303_v53  ;;  %v305_v54 = vld [vmem:[%s1384_s29 + $0x360] sm:$0xff]  ;;  %v307_v55 = vld [vmem:[%s1384_s29 + $0x368] sm:$0xff] }
  0x2d   : > { %v309_v56 = vld [vmem:[%s1384_s29 + $0x380] sm:$0xff]  ;;  %306 = vst [vmem:[%s1389_s30 + $0x1b0] sm:$0xff] %v305_v54  ;;  %308 = vst [vmem:[%s1389_s30 + $0x1b8] sm:$0xff] %v307_v55  ;;  %v311_v57 = vld [vmem:[%s1384_s29 + $0x388] sm:$0xff] }
  0x2e   : > { %310 = vst [vmem:[%s1389_s30 + $0x1c0] sm:$0xff] %v309_v56  ;;  %v313_v58 = vld [vmem:[%s1384_s29 + $0x3a0] sm:$0xff]  ;;  %v315_v59 = vld [vmem:[%s1384_s29 + $0x3a8] sm:$0xff]  ;;  %312 = vst [vmem:[%s1389_s30 + $0x1c8] sm:$0xff] %v311_v57 }
  0x2f   : > { %314 = vst [vmem:[%s1389_s30 + $0x1d0] sm:$0xff] %v313_v58  ;;  %316 = vst [vmem:[%s1389_s30 + $0x1d8] sm:$0xff] %v315_v59  ;;  %v317_v60 = vld [vmem:[%s1384_s29 + $0x3c0] sm:$0xff]  ;;  %v319_v61 = vld [vmem:[%s1384_s29 + $0x3c8] sm:$0xff] }
  0x30   : > { %v321_v62 = vld [vmem:[%s1384_s29 + $0x3e0] sm:$0xff]  ;;  %318 = vst [vmem:[%s1389_s30 + $0x1e0] sm:$0xff] %v317_v60  ;;  %320 = vst [vmem:[%s1389_s30 + $0x1e8] sm:$0xff] %v319_v61  ;;  %v323_v63 = vld [vmem:[%s1384_s29 + $0x3e8] sm:$0xff] }
  0x31   : > { %322 = vst [vmem:[%s1389_s30 + $0x1f0] sm:$0xff] %v321_v62  ;;  %324 = vst [vmem:[%s1389_s30 + $0x1f8] sm:$0xff] %v323_v63 }
  0x32 PF: > { %p1058_p6 = scmp.ge.s32.totalorder %s1314_s19, 1  ;;  %p329_p7 = scmp.lt.s32.totalorder %s1314_s19, 3 }
  0x34   : > { %p330_p8 = pnand %p1058_p6, %p329_p7 }
  0x35   : > { %s336_s5 = sand.u32 (!%p330_p8), 1, %s1298_s15   ;;  %v1522_v0 = vld [vmem:[%s1621_s0] sm:$0xff] (!%p330_p8)  ;;  %s1060_s10 = sshll.u32 (!%p330_p8), %s1306_s17, 2 }
  0x36   : > { %333 = sbr.rel (%p330_p8) target bundleno = 339 (0x153), region = 47  ;;  %s1059_s8 = sshll.u32 (!%p330_p8), %s336_s5, 9  ;;  %v1067_v1 = vcombine.high (!%p330_p8), %v1522_v0, %v1522_v0 }
  0x37   : > { %s1526_s9 = scalar_lea.vmem (!%p330_p8), [#allocation2], %s1059_s8  ;;  %p376_p9 = scmp.lt.s32.totalorder (!%p330_p8), %s1060_s10, 7 }
  0x38   : > { %v1178_v2 = vld [vmem:[%s1526_s9 + $0x4] ss:$16 sps:$4 sm:$0xff] (!%p330_p8)   ;;  %816 = vmatprep.mubr.bf16.mxu0 (!%p330_p8), %v1067_v1  ;;  %857 = vmatprep.mubr.bf16.mxu1 (!%p330_p8), %v1067_v1  ;;  %v1180_v3 = vld [vmem:[%s1526_s9 + $0xc] ss:$16 sps:$4 sm:$0xff] (!%p330_p8)   ;;  %v1182_v4 = vld [vmem:[%s1526_s9] ss:$16 sps:$4 sm:$0xff] (!%p330_p8)  }
  0x39   : > { %784 = vmatprep.subr.bf16.mxu0 (!%p330_p8), %v1178_v2  ;;  %v1183_v5 = vld [vmem:[%s1526_s9 + $0x8] ss:$16 sps:$4 sm:$0xff] (!%p330_p8)   ;;  %825 = vmatprep.subr.bf16.mxu1 (!%p330_p8), %v1180_v3  ;;  %v1184_v6 = vld [vmem:[%s1526_s9 + $0x24] ss:$16 sps:$4 sm:$0xff] (!%p330_p8)   ;;  %v1186_v7 = vld [vmem:[%s1526_s9 + $0x2c] ss:$16 sps:$4 sm:$0xff] (!%p330_p8)   ;;  %v1066_v3 = vcombine.low (!%p330_p8), %v1522_v0, %v1522_v0 }
  0x3a   : > { %785 = vmatpush1.bf16.msra.mxu0 (!%p330_p8), %v1182_v4  ;;  %826 = vmatpush1.bf16.msra.mxu1 (!%p330_p8), %v1183_v5  ;;  %v1188_v8 = vld [vmem:[%s1526_s9 + $0x20] ss:$16 sps:$4 sm:$0xff] (!%p330_p8)   ;;  %v1189_v9 = vld [vmem:[%s1526_s9 + $0x28] ss:$16 sps:$4 sm:$0xff] (!%p330_p8)   ;;  %v1190_v10 = vld [vmem:[%s1526_s9 + $0x44] ss:$16 sps:$4 sm:$0xff] (!%p330_p8)  }
  0x3b   : > { %786 = vmatprep.subr.bf16.mxu0 (!%p330_p8), %v1184_v6  ;;  %827 = vmatprep.subr.bf16.mxu1 (!%p330_p8), %v1186_v7  ;;  %v1192_v11 = vld [vmem:[%s1526_s9 + $0x4c] ss:$16 sps:$4 sm:$0xff] (!%p330_p8)   ;;  %v1194_v12 = vld [vmem:[%s1526_s9 + $0x40] ss:$16 sps:$4 sm:$0xff] (!%p330_p8)   ;;  %v1195_v13 = vld [vmem:[%s1526_s9 + $0x48] ss:$16 sps:$4 sm:$0xff] (!%p330_p8)  }
  0x3c   : > { %v1196_v14 = vld [vmem:[%s1526_s9 + $0x64] ss:$16 sps:$4 sm:$0xff] (!%p330_p8)   ;;  %v1198_v15 = vld [vmem:[%s1526_s9 + $0x6c] ss:$16 sps:$4 sm:$0xff] (!%p330_p8)   ;;  %v1200_v16 = vld [vmem:[%s1526_s9 + $0x60] ss:$16 sps:$4 sm:$0xff] (!%p330_p8)  }
  0x3d   : > { %v1201_v17 = vld [vmem:[%s1526_s9 + $0x68] ss:$16 sps:$4 sm:$0xff]   ;;  %v1202_v18 = vld [vmem:[%s1526_s9 + $0x84] ss:$16 sps:$4 sm:$0xff]   ;;  %v1204_v19 = vld [vmem:[%s1526_s9 + $0x8c] ss:$16 sps:$4 sm:$0xff]  }
  0x3e   : > { %787 = vmatpush1.bf16.msra.mxu0 %v1188_v8  ;;  %828 = vmatpush1.bf16.msra.mxu1 %v1189_v9  ;;  %v1206_v20 = vld [vmem:[%s1526_s9 + $0x80] ss:$16 sps:$4 sm:$0xff]   ;;  %v1207_v21 = vld [vmem:[%s1526_s9 + $0x88] ss:$16 sps:$4 sm:$0xff]   ;;  %v1208_v22 = vld [vmem:[%s1526_s9 + $0xa4] ss:$16 sps:$4 sm:$0xff]  }
  0x3f   : > { %788 = vmatprep.subr.bf16.mxu0 %v1190_v10  ;;  %829 = vmatprep.subr.bf16.mxu1 %v1192_v11  ;;  %v1210_v23 = vld [vmem:[%s1526_s9 + $0xac] ss:$16 sps:$4 sm:$0xff]   ;;  %v1212_v24 = vld [vmem:[%s1526_s9 + $0xa0] ss:$16 sps:$4 sm:$0xff]   ;;  %v1213_v25 = vld [vmem:[%s1526_s9 + $0xa8] ss:$16 sps:$4 sm:$0xff]  }
  0x40   : > { %v1214_v26 = vld [vmem:[%s1526_s9 + $0xc4] ss:$16 sps:$4 sm:$0xff]   ;;  %v1216_v27 = vld [vmem:[%s1526_s9 + $0xcc] ss:$16 sps:$4 sm:$0xff]   ;;  %v1218_v28 = vld [vmem:[%s1526_s9 + $0xc0] ss:$16 sps:$4 sm:$0xff]  }
  0x41   : > { %v1219_v29 = vld [vmem:[%s1526_s9 + $0xc8] ss:$16 sps:$4 sm:$0xff]   ;;  %v1220_v30 = vld [vmem:[%s1526_s9 + $0xe4] ss:$16 sps:$4 sm:$0xff]   ;;  %v1222_v31 = vld [vmem:[%s1526_s9 + $0xec] ss:$16 sps:$4 sm:$0xff]  }
  0x42   : > { %789 = vmatpush1.bf16.msra.mxu0 %v1194_v12  ;;  %830 = vmatpush1.bf16.msra.mxu1 %v1195_v13  ;;  %v1224_v32 = vld [vmem:[%s1526_s9 + $0xe0] ss:$16 sps:$4 sm:$0xff]   ;;  %v1225_v33 = vld [vmem:[%s1526_s9 + $0xe8] ss:$16 sps:$4 sm:$0xff]   ;;  %v1226_v34 = vld [vmem:[%s1526_s9 + $0x104] ss:$16 sps:$4 sm:$0xff]  }
  0x43   : > { %790 = vmatprep.subr.bf16.mxu0 %v1196_v14  ;;  %831 = vmatprep.subr.bf16.mxu1 %v1198_v15  ;;  %v1228_v35 = vld [vmem:[%s1526_s9 + $0x10c] ss:$16 sps:$4 sm:$0xff]   ;;  %v1230_v36 = vld [vmem:[%s1526_s9 + $0x100] ss:$16 sps:$4 sm:$0xff]   ;;  %v1231_v37 = vld [vmem:[%s1526_s9 + $0x108] ss:$16 sps:$4 sm:$0xff]  }
  0x44   : > { %v1232_v38 = vld [vmem:[%s1526_s9 + $0x124] ss:$16 sps:$4 sm:$0xff]   ;;  %v1234_v39 = vld [vmem:[%s1526_s9 + $0x12c] ss:$16 sps:$4 sm:$0xff]   ;;  %v1236_v40 = vld [vmem:[%s1526_s9 + $0x120] ss:$16 sps:$4 sm:$0xff]  }
  0x45   : > { %v1237_v41 = vld [vmem:[%s1526_s9 + $0x128] ss:$16 sps:$4 sm:$0xff]   ;;  %v1238_v42 = vld [vmem:[%s1526_s9 + $0x144] ss:$16 sps:$4 sm:$0xff]   ;;  %v1240_v43 = vld [vmem:[%s1526_s9 + $0x14c] ss:$16 sps:$4 sm:$0xff]  }
  0x46   : > { %791 = vmatpush1.bf16.msra.mxu0 %v1200_v16  ;;  %832 = vmatpush1.bf16.msra.mxu1 %v1201_v17  ;;  %v1242_v44 = vld [vmem:[%s1526_s9 + $0x140] ss:$16 sps:$4 sm:$0xff]   ;;  %v1243_v45 = vld [vmem:[%s1526_s9 + $0x148] ss:$16 sps:$4 sm:$0xff]   ;;  %v1244_v46 = vld [vmem:[%s1526_s9 + $0x164] ss:$16 sps:$4 sm:$0xff]  }
  0x47   : > { %792 = vmatprep.subr.bf16.mxu0 %v1202_v18  ;;  %833 = vmatprep.subr.bf16.mxu1 %v1204_v19  ;;  %v1246_v47 = vld [vmem:[%s1526_s9 + $0x16c] ss:$16 sps:$4 sm:$0xff]   ;;  %v1248_v48 = vld [vmem:[%s1526_s9 + $0x160] ss:$16 sps:$4 sm:$0xff]   ;;  %v1249_v49 = vld [vmem:[%s1526_s9 + $0x168] ss:$16 sps:$4 sm:$0xff]  }
  0x48   : > { %v1250_v50 = vld [vmem:[%s1526_s9 + $0x184] ss:$16 sps:$4 sm:$0xff]   ;;  %v1252_v51 = vld [vmem:[%s1526_s9 + $0x18c] ss:$16 sps:$4 sm:$0xff]   ;;  %v1254_v52 = vld [vmem:[%s1526_s9 + $0x180] ss:$16 sps:$4 sm:$0xff]  }
  0x49   : > { %v1255_v53 = vld [vmem:[%s1526_s9 + $0x188] ss:$16 sps:$4 sm:$0xff]   ;;  %v1256_v54 = vld [vmem:[%s1526_s9 + $0x1a4] ss:$16 sps:$4 sm:$0xff]   ;;  %v1258_v55 = vld [vmem:[%s1526_s9 + $0x1ac] ss:$16 sps:$4 sm:$0xff]  }
  0x4a   : > { %793 = vmatpush1.bf16.msra.mxu0 %v1206_v20  ;;  %834 = vmatpush1.bf16.msra.mxu1 %v1207_v21  ;;  %v1260_v56 = vld [vmem:[%s1526_s9 + $0x1a0] ss:$16 sps:$4 sm:$0xff]   ;;  %v1261_v57 = vld [vmem:[%s1526_s9 + $0x1a8] ss:$16 sps:$4 sm:$0xff]   ;;  %v1262_v58 = vld [vmem:[%s1526_s9 + $0x1c4] ss:$16 sps:$4 sm:$0xff]  }
  0x4b   : > { %794 = vmatprep.subr.bf16.mxu0 %v1208_v22  ;;  %835 = vmatprep.subr.bf16.mxu1 %v1210_v23  ;;  %v1264_v59 = vld [vmem:[%s1526_s9 + $0x1cc] ss:$16 sps:$4 sm:$0xff]   ;;  %v1266_v60 = vld [vmem:[%s1526_s9 + $0x1c0] ss:$16 sps:$4 sm:$0xff]   ;;  %v1267_v61 = vld [vmem:[%s1526_s9 + $0x1c8] ss:$16 sps:$4 sm:$0xff]  }
  0x4c   : > { %v1268_v62 = vld [vmem:[%s1526_s9 + $0x1e4] ss:$16 sps:$4 sm:$0xff]   ;;  %v1270_v63 = vld [vmem:[%s1526_s9 + $0x1ec] ss:$16 sps:$4 sm:$0xff]   ;;  %v1272_v1 = vld [vmem:[%s1526_s9 + $0x1e0] ss:$16 sps:$4 sm:$0xff]  }
  0x4d   : > { %v1273_v2 = vld [vmem:[%s1526_s9 + $0x1e8] ss:$16 sps:$4 sm:$0xff]   ;;  %p382_p10 = scmp.lt.s32.totalorder %s1306_s17, 1  ;;  %s1633_s10 = smov (!%p376_p9, %s1060_s10), 7 }
  0x4e   : > { %795 = vmatpush1.bf16.msra.mxu0 %v1212_v24  ;;  %836 = vmatpush1.bf16.msra.mxu1 %v1213_v25  ;;  %s1061_s11 = sshll.u32 %s1633_s10, 3 }
  0x4f   : > { %796 = vmatprep.subr.bf16.mxu0 %v1214_v26  ;;  %837 = vmatprep.subr.bf16.mxu1 %v1216_v27  ;;  %s1635_s17 = smov (!%p382_p10, %s1306_s17), 1  ;;  %s379_s15 = scalar_lea.vmem %s1623_s2, %s1061_s11 }
  0x50   : > { %s1135_s12 = sshll.u32 %s1635_s17, 5 }
  0x51   : > { %s386_s24 = scalar_lea.vmem %s1624_s3, %s1135_s12  ;;  %s391_s27 = scalar_lea.vmem %s1625_s4, %s1135_s12 }
  0x52   : > { %797 = vmatpush1.bf16.msra.mxu0 %v1218_v28  ;;  %838 = vmatpush1.bf16.msra.mxu1 %v1219_v29 }
  0x53   : > { %798 = vmatprep.subr.bf16.mxu0 %v1220_v30  ;;  %839 = vmatprep.subr.bf16.mxu1 %v1222_v31 }
  0x56   : > { %799 = vmatpush1.bf16.msra.mxu0 %v1224_v32  ;;  %840 = vmatpush1.bf16.msra.mxu1 %v1225_v33 }
  0x57   : > { %800 = vmatprep.subr.bf16.mxu0 %v1226_v34  ;;  %841 = vmatprep.subr.bf16.mxu1 %v1228_v35 }
  0x5a   : > { %801 = vmatpush1.bf16.msra.mxu0 %v1230_v36  ;;  %842 = vmatpush1.bf16.msra.mxu1 %v1231_v37 }
  0x5b   : > { %802 = vmatprep.subr.bf16.mxu0 %v1232_v38  ;;  %843 = vmatprep.subr.bf16.mxu1 %v1234_v39 }
  0x5e   : > { %803 = vmatpush1.bf16.msra.mxu0 %v1236_v40  ;;  %844 = vmatpush1.bf16.msra.mxu1 %v1237_v41 }
  0x5f   : > { %804 = vmatprep.subr.bf16.mxu0 %v1238_v42  ;;  %845 = vmatprep.subr.bf16.mxu1 %v1240_v43 }
  0x62   : > { %805 = vmatpush1.bf16.msra.mxu0 %v1242_v44  ;;  %846 = vmatpush1.bf16.msra.mxu1 %v1243_v45 }
  0x63   : > { %806 = vmatprep.subr.bf16.mxu0 %v1244_v46  ;;  %847 = vmatprep.subr.bf16.mxu1 %v1246_v47 }
  0x66   : > { %807 = vmatpush1.bf16.msra.mxu0 %v1248_v48  ;;  %848 = vmatpush1.bf16.msra.mxu1 %v1249_v49 }
  0x67   : > { %808 = vmatprep.subr.bf16.mxu0 %v1250_v50  ;;  %849 = vmatprep.subr.bf16.mxu1 %v1252_v51 }
  0x6a   : > { %809 = vmatpush1.bf16.msra.mxu0 %v1254_v52  ;;  %850 = vmatpush1.bf16.msra.mxu1 %v1255_v53 }
  0x6b   : > { %810 = vmatprep.subr.bf16.mxu0 %v1256_v54  ;;  %851 = vmatprep.subr.bf16.mxu1 %v1258_v55 }
  0x6e   : > { %811 = vmatpush1.bf16.msra.mxu0 %v1260_v56  ;;  %852 = vmatpush1.bf16.msra.mxu1 %v1261_v57 }
  0x6f   : > { %812 = vmatprep.subr.bf16.mxu0 %v1262_v58  ;;  %853 = vmatprep.subr.bf16.mxu1 %v1264_v59 }
  0x72   : > { %813 = vmatpush1.bf16.msra.mxu0 %v1266_v60  ;;  %854 = vmatpush1.bf16.msra.mxu1 %v1267_v61 }
  0x73   : > { %814 = vmatprep.subr.bf16.mxu0 %v1268_v62  ;;  %855 = vmatprep.subr.bf16.mxu1 %v1270_v63 }
  0x76   : > { %815 = vmatpush1.bf16.msra.mxu0 %v1272_v1  ;;  %856 = vmatpush1.bf16.msra.mxu1 %v1273_v2 }
  0x79   : > { %817 = vmatmul.mubr.bf16.vlgmr.msra.gmra.mrb[0].mxu0 %v1066_v3  ;;  %858 = vmatmul.mubr.bf16.vlgmr.msra.gmra.mrb[0].mxu1 %v1066_v3 }
 0x14c   : > { %v818_v0 = vpop.f32.mrb[0].mxu0  ;;  %v859_v4 = vpop.f32.mrb[0].mxu1 }
 0x14d   : > { %866 = vst [vmem:[%s379_s15] sm:$0xff] %v818_v0  ;;  %v898_v5 = vmul.f32 %v818_v0, %v818_v0  ;;  %v900_v6 = vmul.f32 %v859_v4, %v859_v4  ;;  %v820_v7 = vpop.f32.mrb[1].mxu0  ;;  %v861_v8 = vpop.f32.mrb[1].mxu1  ;;  %890 = vst [vmem:[%s386_s24] sm:$0xff] %v818_v0 }
 0x14e   : > { %867 = vst [vmem:[%s379_s15 + $0x8] sm:$0xff] %v820_v7  ;;  %v899_v9 = vmul.f32 %v820_v7, %v820_v7  ;;  %v901_v10 = vmul.f32 %v861_v8, %v861_v8  ;;  %v822_v11 = vpop.f32.mrb[2].mxu0  ;;  %v863_v12 = vpop.f32.mrb[2].mxu1  ;;  %892 = vst [vmem:[%s386_s24 + $0x10] sm:$0xff] %v859_v4 }
 0x14f   : > { %868 = vst [vmem:[%s379_s15 + $0x10] sm:$0xff] %v859_v4  ;;  %v823_v13 = vpop.f32.mrb[3].mxu0  ;;  %v864_v14 = vpop.f32.mrb[3].mxu1  ;;  %891 = vst [vmem:[%s386_s24 + $0x8] sm:$0xff] %v820_v7 }
 0x150   : > { %869 = vst [vmem:[%s379_s15 + $0x18] sm:$0xff] %v861_v8  ;;  %893 = vst [vmem:[%s386_s24 + $0x18] sm:$0xff] %v861_v8 }
 0x151   : > { %906 = vst [vmem:[%s391_s27] sm:$0xff] %v898_v5  ;;  %908 = vst [vmem:[%s391_s27 + $0x10] sm:$0xff] %v900_v6 }
 0x152   : > { %907 = vst [vmem:[%s391_s27 + $0x8] sm:$0xff] %v899_v9  ;;  %909 = vst [vmem:[%s391_s27 + $0x18] sm:$0xff] %v901_v10 }
 0x153 PF: > { %s15_s19 = sadd.s32 1, %s1314_s19   ;;  %s1626_s15 = smov %s1302_s16 }
 0x154   : > { %p12_p11 = scmp.ge.s32.totalorder %s15_s19, 4   ;;  %s1627_s16 = smov %s1376_s23 }
 0x155   : > { %s1628_s17 = smov %s1310_s18  ;;  %s1629_s18 = smov %s1631_s20 }
 0x156   :  { %14 = sbr.rel (!%p12_p11) target bundleno = 3 (0x3), region = 114 }

// kernel: upsample_module_forward.13
= control target key start
LH: loop header
LB: loop body
LE: loop exit
PB: predicated region body
PF: predicated region fallthrough
CT: control target
= control target key end

     0   :  { %s473_s12 = smov 0   ;;  %s548_s0 = inlined_call_operand.vmem [shape: f32[64,256], index: 0, kind: input, shape index: {}]   ;;  %s549_s1 = inlined_call_operand.vmem [shape: f32[16,8], index: 1, kind: input, shape index: {}]   ;;  %s550_s2 = inlined_call_operand.vmem [shape: f32[16,8,64], index: 2, kind: input, shape index: {}]   ;;  %s551_s3 = inlined_call_operand.vmem [shape: f32[16,16,256], index: 3, kind: output, shape index: {}]  }
   0x1 LB: > { %s405_s13 = sadd.s32 4294967295, %s450_s12   ;;  %p409_p0 = scmp.ge.s32.totalorder %s450_s12, 1  ;;  %s450_s12 = sphi %s473_s12, %s13_s12  }
   0x2   : > { %p136_p1 = scmp.lt.s32.totalorder %s450_s12, 17 }
   0x4   : > { %p137_p2 = pnand %p409_p0, %p136_p1 }
   0x5   : > { %v170_v0 = vld [vmem:[%s548_s0 + $0x8] sm:$0xff] (!%p137_p2)  ;;  %v172_v1 = vld [vmem:[%s548_s0 + $0x18] sm:$0xff] (!%p137_p2)  ;;  %v169_v2 = vld [vmem:[%s548_s0] sm:$0xff] (!%p137_p2)  ;;  %v452_v7 = vmov (!%p137_p2), 0.0   ;;  %p159_p3 = scmp.lt.s32.totalorder (!%p137_p2), %s405_s13, 15  ;;  %vm185_vm0 = vcmask (!%p137_p2), 523264  }
   0x6   : > { %140 = sbr.rel (%p137_p2) target bundleno = 457 (0x1c9), region = 32  ;;  %v419_v3 = vpack.c.bf16 (!%p137_p2), %v172_v1, %v170_v0  ;;  %v171_v4 = vld [vmem:[%s548_s0 + $0x10] sm:$0xff] (!%p137_p2)  ;;  %v174_v5 = vld [vmem:[%s548_s0 + $0x28] sm:$0xff] (!%p137_p2)  ;;  %v176_v6 = vld [vmem:[%s548_s0 + $0x38] sm:$0xff] (!%p137_p2)  ;;  %253 = vmatprep.mubr.f32.mxu0 (!%p137_p2), %v452_v7  ;;  %333 = vmatprep.mubr.f32.mxu1 (!%p137_p2), %v452_v7  ;;  %vm262_vm1 = vcmask (!%p137_p2), 64512  }
   0x7   : > { %v421_v8 = vpack.c.bf16 (!%p137_p2), %v171_v4, %v169_v2  ;;  %v423_v9 = vpack.c.bf16 (!%p137_p2), %v176_v6, %v174_v5  ;;  %v173_v10 = vld [vmem:[%s548_s0 + $0x20] sm:$0xff] (!%p137_p2)  ;;  %v175_v11 = vld [vmem:[%s548_s0 + $0x30] sm:$0xff] (!%p137_p2)  ;;  %v178_v12 = vld [vmem:[%s548_s0 + $0x48] sm:$0xff] (!%p137_p2) }
   0x8   : > { %420 = vmatprep.subr.bf16.mxu0 (!%p137_p2), %v419_v3  ;;  %v180_v13 = vld [vmem:[%s548_s0 + $0x58] sm:$0xff] (!%p137_p2)  ;;  %v425_v14 = vpack.c.bf16 (!%p137_p2), %v175_v11, %v173_v10  ;;  %v177_v16 = vld [vmem:[%s548_s0 + $0x40] sm:$0xff] (!%p137_p2)  ;;  %v179_v17 = vld [vmem:[%s548_s0 + $0x50] sm:$0xff] (!%p137_p2) }
   0x9   : > { %422 = vmatpush1.bf16.msra.mxu0 (!%p137_p2), %v421_v8  ;;  %v427_v15 = vpack.c.bf16 (!%p137_p2), %v180_v13, %v178_v12  ;;  %v182_v18 = vld [vmem:[%s548_s0 + $0x68] sm:$0xff] (!%p137_p2)  ;;  %v184_v19 = vld [vmem:[%s548_s0 + $0x78] sm:$0xff] (!%p137_p2)  ;;  %v429_v20 = vpack.c.bf16 (!%p137_p2), %v179_v17, %v177_v16  ;;  %v181_v22 = vld [vmem:[%s548_s0 + $0x60] sm:$0xff] (!%p137_p2) }
   0xa   : > { %424 = vmatprep.subr.bf16.mxu0 (!%p137_p2), %v423_v9  ;;  %v431_v21 = vpack.c.bf16 (!%p137_p2), %v184_v19, %v182_v18  ;;  %v183_v23 = vld [vmem:[%s548_s0 + $0x70] sm:$0xff] (!%p137_p2)  ;;  %v260_v28 = vld [vmem:[%s549_s1] sm:$0xff] (!%p137_p2)  ;;  %v261_v29 = vld [vmem:[%s549_s1 + $0x8] sm:$0xff] (!%p137_p2) }
   0xb   : > { %v433_v24 = vpack.c.bf16 (!%p137_p2), %v183_v23, %v181_v22 }
   0xd   : > { %s553_s13 = smov (!%p159_p3, %s405_s13), 15  ;;  %426 = vmatpush1.bf16.msra.mxu0 %v425_v14 }
   0xe   : > { %428 = vmatprep.subr.bf16.mxu0 %v427_v15  ;;  %s410_s21 = sshll.u32 %s553_s13, 3  ;;  %s418_s29 = sshll.u32 %s553_s13, 5 }
   0xf   : > { %s162_s24 = scalar_lea.vmem %s550_s2, %s410_s21  ;;  %s167_s5 = scalar_lea.vmem %s551_s3, %s418_s29 }
  0x10   : > { %v168_v25 = vld [vmem:[%s162_s24] sm:$0xff] }
  0x11   : > { %430 = vmatpush1.bf16.msra.mxu0 %v429_v20 }
  0x12   : > { %432 = vmatprep.subr.bf16.mxu0 %v431_v21 }
  0x15   : > { %434 = vmatpush1.bf16.msra.mxu0 %v433_v24 }
  0x18   : > { %413 = vmatmul.mubr.msk.f32.vlgmr.msra.gmra.mrb[0].mxu0 %vm185_vm0, %v168_v25 }
  0xeb   : > { %v255_v26 = vpop.f32.mrb[0].mxu0 }
  0xec   : > { %v257_v27 = vpop.f32.mrb[1].mxu0 }
  0xed   : > { %269 = vmatprep.subr.mxu1 %v257_v27 }
  0xee   : > { %270 = vmatpush1.msra.mxu1 %v255_v26 }
  0xef   : > { %414 = vmatmul.mubr.msk.f32.vlgmr.msra.gmra.mrb[0].mxu1 %vm262_vm1, %v260_v28 }
  0xf0   : > { %339 = vmatprep.mubr.f32.mxu1 %v452_v7 }
  0xf3   : > { %415 = vmatmul.mubr.msk.f32.gmra.mrb[2].mxu1 %vm262_vm1, %v261_v29 }
 0x1c2   : > { %v335_v30 = vpop.f32.mrb[0].mxu1 }
 0x1c3   : > { %346 = vst [vmem:[%s167_s5] sm:$0xff] %v335_v30  ;;  %v337_v31 = vpop.f32.mrb[1].mxu1 }
 0x1c4   : > { %347 = vst [vmem:[%s167_s5 + $0x8] sm:$0xff] %v337_v31 }
 0x1c6   : > { %v341_v32 = vpop.f32.mrb[2].mxu1 }
 0x1c7   : > { %348 = vst [vmem:[%s167_s5 + $0x10] sm:$0xff] %v341_v32  ;;  %v343_v33 = vpop.f32.mrb[3].mxu1 }
 0x1c8   : > { %349 = vst [vmem:[%s167_s5 + $0x18] sm:$0xff] %v343_v33 }
 0x1c9 PF: > { %s13_s12 = sadd.s32 1, %s450_s12  }
 0x1ca   : > { %p10_p4 = scmp.ge.s32.totalorder %s13_s12, 18  }
 0x1cc   :  { %12 = sbr.rel (!%p10_p4) target bundleno = 1 (0x1), region = 62 }

// kernel: upsample_module_forward.14
= control target key start
LH: loop header
LB: loop body
LE: loop exit
PB: predicated region body
PF: predicated region fallthrough
CT: control target
= control target key end

     0   :  { %s2171_s15 = smov 0   ;;  %s2173_s16 = smov 0   ;;  %s2703_s0 = inlined_call_operand.vmem [shape: bf16[8,512], index: 0, kind: input, shape index: {}]   ;;  %s2704_s1 = inlined_call_operand.vmem [shape: bf16[512,8192], index: 1, kind: input, shape index: {}]   ;;  %s2705_s2 = inlined_call_operand.vmem [shape: f32[8,8192], index: 2, kind: output, shape index: {0}]   ;;  %s2706_s3 = inlined_call_operand.vmem [shape: f32[2,8,512], index: 3, kind: output, shape index: {1}]   ;;  %s2707_s4 = inlined_call_operand.vmem [shape: f32[2,8,512], index: 4, kind: output, shape index: {2}]  }
   0x1   :  { %s2175_s17 = smov 0   ;;  %s2177_s18 = smov 0  }
   0x2   :  { %s2179_s19 = smov 0   ;;  %s2181_s20 = smov 0  }
   0x3   :  { %s2183_s21 = smov 0  }
   0x4 LB: > { %s24_s22 = sadd.s32 1, %s2135_s19  ;;  %s27_s23 = sadd.s32 1, %s2139_s20  ;;  %s2143_s21 = sphi %s2183_s21, %s15_s21   ;;  %s2139_s20 = sphi %s2181_s20, %s2713_s20   ;;  %s2135_s19 = sphi %s2179_s19, %s2712_s19   ;;  %s2131_s18 = sphi %s2177_s18, %s2711_s18   ;;  %s2127_s17 = sphi %s2175_s17, %s2710_s17   ;;  %s2123_s16 = sphi %s2173_s16, %s2709_s16   ;;  %s2119_s15 = sphi %s2171_s15, %s2708_s15  }
   0x5   : > { %p25_p0 = scmp.ge.s32.totalorder %s24_s22, 8  ;;  %p66_p1 = scmp.ne.s32.totalorder %s2123_s16, %s2119_s15 }
   0x6   : > { %p67_p2 = scmp.eq.s32.totalorder %s2143_s21, 0  ;;  %s1671_s24 = sshll.u32 %s2139_s20, 3 }
   0x7   : > { %s2715_s22 = smov (%p25_p0, %s24_s22), 0  ;;  %s2717_s23 = smov (!%p25_p0, %s27_s23), %s2139_s20 }
   0x8   : > { %p29_p3 = scmp.ge.s32.totalorder %s2717_s23, 2  ;;  %p68_p4 = por %p67_p2, %p66_p1 }
   0x9   : > { %s53_s25 = sadd.s32 %s2135_s19, %s1671_s24  ;;  %s59_s29 = sadd.s32 1, %s2123_s16 }
   0xa   : > { %s2719_s23 = smov (%p29_p3, %s2717_s23), 0  ;;  %p1676_p6 = scmp.ge.s32.totalorder %s2143_s21, 16 }
   0xb   : > { %s1672_s26 = sshll.u32 %s2719_s23, 3 }
   0xc   : > { %s55_s27 = sadd.s32 %s1672_s26, %s2715_s22  ;;  %177 = sbr.rel (%p1676_p6) target bundleno = 87 (0x57), region = 20 }
   0xd   : > { %s56_s28 = ssub.s32 %s53_s25, %s55_s27 }
   0xe   : > { %p57_p5 = scmp.eq.s32.totalorder %s56_s28, 0 }
  0x10   : > { %s2222_s30 = scalar_select %p57_p5, %s2123_s16, %s59_s29  }
  0x13   : > { %180 = sbr.rel (!%p68_p4) target bundleno = 87 (0x57), region = 24  ;;  %s182_s5 = sand.u32 (%p68_p4), 1, %s2123_s16  }
  0x14   : > { %s1825_s6 = sshll.u32 (%p68_p4), %s53_s25, 4  ;;  %s1677_s7 = sshll.u32 (%p68_p4), %s182_s5, 10 }
  0x15   : > { %s2229_s10 = scalar_lea.vmem (%p68_p4), %s2704_s1, %s1825_s6  ;;  %s2234_s11 = scalar_lea.vmem (%p68_p4), [#allocation2], %s1677_s7 }
  0x16   : > { %v202_v0 = vld [vmem:[%s2229_s10] sm:$0xff] (%p68_p4)  ;;  %v204_v1 = vld [vmem:[%s2229_s10 + $0x8] sm:$0xff] (%p68_p4) }
  0x17   : > { %v206_v2 = vld [vmem:[%s2229_s10 + $0x100] sm:$0xff] (%p68_p4)  ;;  %203 = vst [vmem:[%s2234_s11] sm:$0xff] (%p68_p4), %v202_v0  ;;  %205 = vst [vmem:[%s2234_s11 + $0x8] sm:$0xff] (%p68_p4), %v204_v1  ;;  %v208_v3 = vld [vmem:[%s2229_s10 + $0x108] sm:$0xff] (%p68_p4) }
  0x18   : > { %207 = vst [vmem:[%s2234_s11 + $0x10] sm:$0xff] (%p68_p4), %v206_v2  ;;  %v210_v4 = vld [vmem:[%s2229_s10 + $0x200] sm:$0xff] (%p68_p4)  ;;  %v212_v5 = vld [vmem:[%s2229_s10 + $0x208] sm:$0xff] (%p68_p4)  ;;  %209 = vst [vmem:[%s2234_s11 + $0x18] sm:$0xff] (%p68_p4), %v208_v3 }
  0x19   : > { %211 = vst [vmem:[%s2234_s11 + $0x20] sm:$0xff] (%p68_p4), %v210_v4  ;;  %213 = vst [vmem:[%s2234_s11 + $0x28] sm:$0xff] (%p68_p4), %v212_v5  ;;  %v214_v6 = vld [vmem:[%s2229_s10 + $0x300] sm:$0xff] (%p68_p4)  ;;  %v216_v7 = vld [vmem:[%s2229_s10 + $0x308] sm:$0xff] (%p68_p4) }
  0x1a   : > { %v218_v8 = vld [vmem:[%s2229_s10 + $0x400] sm:$0xff]  ;;  %215 = vst [vmem:[%s2234_s11 + $0x30] sm:$0xff] %v214_v6  ;;  %217 = vst [vmem:[%s2234_s11 + $0x38] sm:$0xff] %v216_v7  ;;  %v220_v9 = vld [vmem:[%s2229_s10 + $0x408] sm:$0xff] }
  0x1b   : > { %219 = vst [vmem:[%s2234_s11 + $0x40] sm:$0xff] %v218_v8  ;;  %v222_v10 = vld [vmem:[%s2229_s10 + $0x500] sm:$0xff]  ;;  %v224_v11 = vld [vmem:[%s2229_s10 + $0x508] sm:$0xff]  ;;  %221 = vst [vmem:[%s2234_s11 + $0x48] sm:$0xff] %v220_v9 }
  0x1c   : > { %223 = vst [vmem:[%s2234_s11 + $0x50] sm:$0xff] %v222_v10  ;;  %225 = vst [vmem:[%s2234_s11 + $0x58] sm:$0xff] %v224_v11  ;;  %v226_v12 = vld [vmem:[%s2229_s10 + $0x600] sm:$0xff]  ;;  %v228_v13 = vld [vmem:[%s2229_s10 + $0x608] sm:$0xff] }
  0x1d   : > { %v230_v14 = vld [vmem:[%s2229_s10 + $0x700] sm:$0xff]  ;;  %227 = vst [vmem:[%s2234_s11 + $0x60] sm:$0xff] %v226_v12  ;;  %229 = vst [vmem:[%s2234_s11 + $0x68] sm:$0xff] %v228_v13  ;;  %v232_v15 = vld [vmem:[%s2229_s10 + $0x708] sm:$0xff] }
  0x1e   : > { %231 = vst [vmem:[%s2234_s11 + $0x70] sm:$0xff] %v230_v14  ;;  %v234_v16 = vld [vmem:[%s2229_s10 + $0x800] sm:$0xff]  ;;  %v236_v17 = vld [vmem:[%s2229_s10 + $0x808] sm:$0xff]  ;;  %233 = vst [vmem:[%s2234_s11 + $0x78] sm:$0xff] %v232_v15 }
  0x1f   : > { %235 = vst [vmem:[%s2234_s11 + $0x80] sm:$0xff] %v234_v16  ;;  %237 = vst [vmem:[%s2234_s11 + $0x88] sm:$0xff] %v236_v17  ;;  %v238_v18 = vld [vmem:[%s2229_s10 + $0x900] sm:$0xff]  ;;  %v240_v19 = vld [vmem:[%s2229_s10 + $0x908] sm:$0xff] }
  0x20   : > { %v242_v20 = vld [vmem:[%s2229_s10 + $0xa00] sm:$0xff]  ;;  %239 = vst [vmem:[%s2234_s11 + $0x90] sm:$0xff] %v238_v18  ;;  %241 = vst [vmem:[%s2234_s11 + $0x98] sm:$0xff] %v240_v19  ;;  %v244_v21 = vld [vmem:[%s2229_s10 + $0xa08] sm:$0xff] }
  0x21   : > { %243 = vst [vmem:[%s2234_s11 + $0xa0] sm:$0xff] %v242_v20  ;;  %v246_v22 = vld [vmem:[%s2229_s10 + $0xb00] sm:$0xff]  ;;  %v248_v23 = vld [vmem:[%s2229_s10 + $0xb08] sm:$0xff]  ;;  %245 = vst [vmem:[%s2234_s11 + $0xa8] sm:$0xff] %v244_v21 }
  0x22   : > { %247 = vst [vmem:[%s2234_s11 + $0xb0] sm:$0xff] %v246_v22  ;;  %249 = vst [vmem:[%s2234_s11 + $0xb8] sm:$0xff] %v248_v23  ;;  %v250_v24 = vld [vmem:[%s2229_s10 + $0xc00] sm:$0xff]  ;;  %v252_v25 = vld [vmem:[%s2229_s10 + $0xc08] sm:$0xff] }
  0x23   : > { %v254_v26 = vld [vmem:[%s2229_s10 + $0xd00] sm:$0xff]  ;;  %251 = vst [vmem:[%s2234_s11 + $0xc0] sm:$0xff] %v250_v24  ;;  %253 = vst [vmem:[%s2234_s11 + $0xc8] sm:$0xff] %v252_v25  ;;  %v256_v27 = vld [vmem:[%s2229_s10 + $0xd08] sm:$0xff] }
  0x24   : > { %255 = vst [vmem:[%s2234_s11 + $0xd0] sm:$0xff] %v254_v26  ;;  %v258_v28 = vld [vmem:[%s2229_s10 + $0xe00] sm:$0xff]  ;;  %v260_v29 = vld [vmem:[%s2229_s10 + $0xe08] sm:$0xff]  ;;  %257 = vst [vmem:[%s2234_s11 + $0xd8] sm:$0xff] %v256_v27 }
  0x25   : > { %259 = vst [vmem:[%s2234_s11 + $0xe0] sm:$0xff] %v258_v28  ;;  %261 = vst [vmem:[%s2234_s11 + $0xe8] sm:$0xff] %v260_v29  ;;  %v262_v30 = vld [vmem:[%s2229_s10 + $0xf00] sm:$0xff]  ;;  %v264_v31 = vld [vmem:[%s2229_s10 + $0xf08] sm:$0xff] }
  0x26   : > { %v266_v32 = vld [vmem:[%s2229_s10 + $0x1000] sm:$0xff]  ;;  %263 = vst [vmem:[%s2234_s11 + $0xf0] sm:$0xff] %v262_v30  ;;  %265 = vst [vmem:[%s2234_s11 + $0xf8] sm:$0xff] %v264_v31  ;;  %v268_v33 = vld [vmem:[%s2229_s10 + $0x1008] sm:$0xff] }
  0x27   : > { %267 = vst [vmem:[%s2234_s11 + $0x100] sm:$0xff] %v266_v32  ;;  %v270_v34 = vld [vmem:[%s2229_s10 + $0x1100] sm:$0xff]  ;;  %v272_v35 = vld [vmem:[%s2229_s10 + $0x1108] sm:$0xff]  ;;  %269 = vst [vmem:[%s2234_s11 + $0x108] sm:$0xff] %v268_v33 }
  0x28   : > { %271 = vst [vmem:[%s2234_s11 + $0x110] sm:$0xff] %v270_v34  ;;  %273 = vst [vmem:[%s2234_s11 + $0x118] sm:$0xff] %v272_v35  ;;  %v274_v36 = vld [vmem:[%s2229_s10 + $0x1200] sm:$0xff]  ;;  %v276_v37 = vld [vmem:[%s2229_s10 + $0x1208] sm:$0xff] }
  0x29   : > { %v278_v38 = vld [vmem:[%s2229_s10 + $0x1300] sm:$0xff]  ;;  %275 = vst [vmem:[%s2234_s11 + $0x120] sm:$0xff] %v274_v36  ;;  %277 = vst [vmem:[%s2234_s11 + $0x128] sm:$0xff] %v276_v37  ;;  %v280_v39 = vld [vmem:[%s2229_s10 + $0x1308] sm:$0xff] }
  0x2a   : > { %279 = vst [vmem:[%s2234_s11 + $0x130] sm:$0xff] %v278_v38  ;;  %v282_v40 = vld [vmem:[%s2229_s10 + $0x1400] sm:$0xff]  ;;  %v284_v41 = vld [vmem:[%s2229_s10 + $0x1408] sm:$0xff]  ;;  %281 = vst [vmem:[%s2234_s11 + $0x138] sm:$0xff] %v280_v39 }
  0x2b   : > { %283 = vst [vmem:[%s2234_s11 + $0x140] sm:$0xff] %v282_v40  ;;  %285 = vst [vmem:[%s2234_s11 + $0x148] sm:$0xff] %v284_v41  ;;  %v286_v42 = vld [vmem:[%s2229_s10 + $0x1500] sm:$0xff]  ;;  %v288_v43 = vld [vmem:[%s2229_s10 + $0x1508] sm:$0xff] }
  0x2c   : > { %v290_v44 = vld [vmem:[%s2229_s10 + $0x1600] sm:$0xff]  ;;  %287 = vst [vmem:[%s2234_s11 + $0x150] sm:$0xff] %v286_v42  ;;  %289 = vst [vmem:[%s2234_s11 + $0x158] sm:$0xff] %v288_v43  ;;  %v292_v45 = vld [vmem:[%s2229_s10 + $0x1608] sm:$0xff] }
  0x2d   : > { %291 = vst [vmem:[%s2234_s11 + $0x160] sm:$0xff] %v290_v44  ;;  %v294_v46 = vld [vmem:[%s2229_s10 + $0x1700] sm:$0xff]  ;;  %v296_v47 = vld [vmem:[%s2229_s10 + $0x1708] sm:$0xff]  ;;  %293 = vst [vmem:[%s2234_s11 + $0x168] sm:$0xff] %v292_v45 }
  0x2e   : > { %295 = vst [vmem:[%s2234_s11 + $0x170] sm:$0xff] %v294_v46  ;;  %297 = vst [vmem:[%s2234_s11 + $0x178] sm:$0xff] %v296_v47  ;;  %v298_v48 = vld [vmem:[%s2229_s10 + $0x1800] sm:$0xff]  ;;  %v300_v49 = vld [vmem:[%s2229_s10 + $0x1808] sm:$0xff] }
  0x2f   : > { %v302_v50 = vld [vmem:[%s2229_s10 + $0x1900] sm:$0xff]  ;;  %299 = vst [vmem:[%s2234_s11 + $0x180] sm:$0xff] %v298_v48  ;;  %301 = vst [vmem:[%s2234_s11 + $0x188] sm:$0xff] %v300_v49  ;;  %v304_v51 = vld [vmem:[%s2229_s10 + $0x1908] sm:$0xff] }
  0x30   : > { %303 = vst [vmem:[%s2234_s11 + $0x190] sm:$0xff] %v302_v50  ;;  %v306_v52 = vld [vmem:[%s2229_s10 + $0x1a00] sm:$0xff]  ;;  %v308_v53 = vld [vmem:[%s2229_s10 + $0x1a08] sm:$0xff]  ;;  %305 = vst [vmem:[%s2234_s11 + $0x198] sm:$0xff] %v304_v51 }
  0x31   : > { %307 = vst [vmem:[%s2234_s11 + $0x1a0] sm:$0xff] %v306_v52  ;;  %309 = vst [vmem:[%s2234_s11 + $0x1a8] sm:$0xff] %v308_v53  ;;  %v310_v54 = vld [vmem:[%s2229_s10 + $0x1b00] sm:$0xff]  ;;  %v312_v55 = vld [vmem:[%s2229_s10 + $0x1b08] sm:$0xff] }
  0x32   : > { %v314_v56 = vld [vmem:[%s2229_s10 + $0x1c00] sm:$0xff]  ;;  %311 = vst [vmem:[%s2234_s11 + $0x1b0] sm:$0xff] %v310_v54  ;;  %313 = vst [vmem:[%s2234_s11 + $0x1b8] sm:$0xff] %v312_v55  ;;  %v316_v57 = vld [vmem:[%s2229_s10 + $0x1c08] sm:$0xff] }
  0x33   : > { %315 = vst [vmem:[%s2234_s11 + $0x1c0] sm:$0xff] %v314_v56  ;;  %v318_v58 = vld [vmem:[%s2229_s10 + $0x1d00] sm:$0xff]  ;;  %v320_v59 = vld [vmem:[%s2229_s10 + $0x1d08] sm:$0xff]  ;;  %317 = vst [vmem:[%s2234_s11 + $0x1c8] sm:$0xff] %v316_v57 }
  0x34   : > { %319 = vst [vmem:[%s2234_s11 + $0x1d0] sm:$0xff] %v318_v58  ;;  %321 = vst [vmem:[%s2234_s11 + $0x1d8] sm:$0xff] %v320_v59  ;;  %v322_v60 = vld [vmem:[%s2229_s10 + $0x1e00] sm:$0xff]  ;;  %v324_v61 = vld [vmem:[%s2229_s10 + $0x1e08] sm:$0xff] }
  0x35   : > { %v326_v62 = vld [vmem:[%s2229_s10 + $0x1f00] sm:$0xff]  ;;  %323 = vst [vmem:[%s2234_s11 + $0x1e0] sm:$0xff] %v322_v60  ;;  %325 = vst [vmem:[%s2234_s11 + $0x1e8] sm:$0xff] %v324_v61  ;;  %v328_v63 = vld [vmem:[%s2229_s10 + $0x1f08] sm:$0xff] }
  0x36   : > { %327 = vst [vmem:[%s2234_s11 + $0x1f0] sm:$0xff] %v326_v62  ;;  %v330_v0 = vld [vmem:[%s2229_s10 + $0x2000] sm:$0xff]  ;;  %v332_v1 = vld [vmem:[%s2229_s10 + $0x2008] sm:$0xff]  ;;  %329 = vst [vmem:[%s2234_s11 + $0x1f8] sm:$0xff] %v328_v63 }
  0x37   : > { %331 = vst [vmem:[%s2234_s11 + $0x200] sm:$0xff] %v330_v0  ;;  %333 = vst [vmem:[%s2234_s11 + $0x208] sm:$0xff] %v332_v1  ;;  %v334_v2 = vld [vmem:[%s2229_s10 + $0x2100] sm:$0xff]  ;;  %v336_v3 = vld [vmem:[%s2229_s10 + $0x2108] sm:$0xff] }
  0x38   : > { %v338_v4 = vld [vmem:[%s2229_s10 + $0x2200] sm:$0xff]  ;;  %335 = vst [vmem:[%s2234_s11 + $0x210] sm:$0xff] %v334_v2  ;;  %337 = vst [vmem:[%s2234_s11 + $0x218] sm:$0xff] %v336_v3  ;;  %v340_v5 = vld [vmem:[%s2229_s10 + $0x2208] sm:$0xff] }
  0x39   : > { %339 = vst [vmem:[%s2234_s11 + $0x220] sm:$0xff] %v338_v4  ;;  %v342_v6 = vld [vmem:[%s2229_s10 + $0x2300] sm:$0xff]  ;;  %v344_v7 = vld [vmem:[%s2229_s10 + $0x2308] sm:$0xff]  ;;  %341 = vst [vmem:[%s2234_s11 + $0x228] sm:$0xff] %v340_v5 }
  0x3a   : > { %343 = vst [vmem:[%s2234_s11 + $0x230] sm:$0xff] %v342_v6  ;;  %345 = vst [vmem:[%s2234_s11 + $0x238] sm:$0xff] %v344_v7  ;;  %v346_v8 = vld [vmem:[%s2229_s10 + $0x2400] sm:$0xff]  ;;  %v348_v9 = vld [vmem:[%s2229_s10 + $0x2408] sm:$0xff] }
  0x3b   : > { %v350_v10 = vld [vmem:[%s2229_s10 + $0x2500] sm:$0xff]  ;;  %347 = vst [vmem:[%s2234_s11 + $0x240] sm:$0xff] %v346_v8  ;;  %349 = vst [vmem:[%s2234_s11 + $0x248] sm:$0xff] %v348_v9  ;;  %v352_v11 = vld [vmem:[%s2229_s10 + $0x2508] sm:$0xff] }
  0x3c   : > { %351 = vst [vmem:[%s2234_s11 + $0x250] sm:$0xff] %v350_v10  ;;  %v354_v12 = vld [vmem:[%s2229_s10 + $0x2600] sm:$0xff]  ;;  %v356_v13 = vld [vmem:[%s2229_s10 + $0x2608] sm:$0xff]  ;;  %353 = vst [vmem:[%s2234_s11 + $0x258] sm:$0xff] %v352_v11 }
  0x3d   : > { %355 = vst [vmem:[%s2234_s11 + $0x260] sm:$0xff] %v354_v12  ;;  %357 = vst [vmem:[%s2234_s11 + $0x268] sm:$0xff] %v356_v13  ;;  %v358_v14 = vld [vmem:[%s2229_s10 + $0x2700] sm:$0xff]  ;;  %v360_v15 = vld [vmem:[%s2229_s10 + $0x2708] sm:$0xff] }
  0x3e   : > { %v362_v16 = vld [vmem:[%s2229_s10 + $0x2800] sm:$0xff]  ;;  %359 = vst [vmem:[%s2234_s11 + $0x270] sm:$0xff] %v358_v14  ;;  %361 = vst [vmem:[%s2234_s11 + $0x278] sm:$0xff] %v360_v15  ;;  %v364_v17 = vld [vmem:[%s2229_s10 + $0x2808] sm:$0xff] }
  0x3f   : > { %363 = vst [vmem:[%s2234_s11 + $0x280] sm:$0xff] %v362_v16  ;;  %v366_v18 = vld [vmem:[%s2229_s10 + $0x2900] sm:$0xff]  ;;  %v368_v19 = vld [vmem:[%s2229_s10 + $0x2908] sm:$0xff]  ;;  %365 = vst [vmem:[%s2234_s11 + $0x288] sm:$0xff] %v364_v17 }
  0x40   : > { %367 = vst [vmem:[%s2234_s11 + $0x290] sm:$0xff] %v366_v18  ;;  %369 = vst [vmem:[%s2234_s11 + $0x298] sm:$0xff] %v368_v19  ;;  %v370_v20 = vld [vmem:[%s2229_s10 + $0x2a00] sm:$0xff]  ;;  %v372_v21 = vld [vmem:[%s2229_s10 + $0x2a08] sm:$0xff] }
  0x41   : > { %v374_v22 = vld [vmem:[%s2229_s10 + $0x2b00] sm:$0xff]  ;;  %371 = vst [vmem:[%s2234_s11 + $0x2a0] sm:$0xff] %v370_v20  ;;  %373 = vst [vmem:[%s2234_s11 + $0x2a8] sm:$0xff] %v372_v21  ;;  %v376_v23 = vld [vmem:[%s2229_s10 + $0x2b08] sm:$0xff] }
  0x42   : > { %375 = vst [vmem:[%s2234_s11 + $0x2b0] sm:$0xff] %v374_v22  ;;  %v378_v24 = vld [vmem:[%s2229_s10 + $0x2c00] sm:$0xff]  ;;  %v380_v25 = vld [vmem:[%s2229_s10 + $0x2c08] sm:$0xff]  ;;  %377 = vst [vmem:[%s2234_s11 + $0x2b8] sm:$0xff] %v376_v23 }
  0x43   : > { %379 = vst [vmem:[%s2234_s11 + $0x2c0] sm:$0xff] %v378_v24  ;;  %381 = vst [vmem:[%s2234_s11 + $0x2c8] sm:$0xff] %v380_v25  ;;  %v382_v26 = vld [vmem:[%s2229_s10 + $0x2d00] sm:$0xff]  ;;  %v384_v27 = vld [vmem:[%s2229_s10 + $0x2d08] sm:$0xff] }
  0x44   : > { %v386_v28 = vld [vmem:[%s2229_s10 + $0x2e00] sm:$0xff]  ;;  %383 = vst [vmem:[%s2234_s11 + $0x2d0] sm:$0xff] %v382_v26  ;;  %385 = vst [vmem:[%s2234_s11 + $0x2d8] sm:$0xff] %v384_v27  ;;  %v388_v29 = vld [vmem:[%s2229_s10 + $0x2e08] sm:$0xff] }
  0x45   : > { %387 = vst [vmem:[%s2234_s11 + $0x2e0] sm:$0xff] %v386_v28  ;;  %v390_v30 = vld [vmem:[%s2229_s10 + $0x2f00] sm:$0xff]  ;;  %v392_v31 = vld [vmem:[%s2229_s10 + $0x2f08] sm:$0xff]  ;;  %389 = vst [vmem:[%s2234_s11 + $0x2e8] sm:$0xff] %v388_v29 }
  0x46   : > { %391 = vst [vmem:[%s2234_s11 + $0x2f0] sm:$0xff] %v390_v30  ;;  %393 = vst [vmem:[%s2234_s11 + $0x2f8] sm:$0xff] %v392_v31  ;;  %v394_v32 = vld [vmem:[%s2229_s10 + $0x3000] sm:$0xff]  ;;  %v396_v33 = vld [vmem:[%s2229_s10 + $0x3008] sm:$0xff] }
  0x47   : > { %v398_v34 = vld [vmem:[%s2229_s10 + $0x3100] sm:$0xff]  ;;  %395 = vst [vmem:[%s2234_s11 + $0x300] sm:$0xff] %v394_v32  ;;  %397 = vst [vmem:[%s2234_s11 + $0x308] sm:$0xff] %v396_v33  ;;  %v400_v35 = vld [vmem:[%s2229_s10 + $0x3108] sm:$0xff] }
  0x48   : > { %399 = vst [vmem:[%s2234_s11 + $0x310] sm:$0xff] %v398_v34  ;;  %v402_v36 = vld [vmem:[%s2229_s10 + $0x3200] sm:$0xff]  ;;  %v404_v37 = vld [vmem:[%s2229_s10 + $0x3208] sm:$0xff]  ;;  %401 = vst [vmem:[%s2234_s11 + $0x318] sm:$0xff] %v400_v35 }
  0x49   : > { %403 = vst [vmem:[%s2234_s11 + $0x320] sm:$0xff] %v402_v36  ;;  %405 = vst [vmem:[%s2234_s11 + $0x328] sm:$0xff] %v404_v37  ;;  %v406_v38 = vld [vmem:[%s2229_s10 + $0x3300] sm:$0xff]  ;;  %v408_v39 = vld [vmem:[%s2229_s10 + $0x3308] sm:$0xff] }
  0x4a   : > { %v410_v40 = vld [vmem:[%s2229_s10 + $0x3400] sm:$0xff]  ;;  %407 = vst [vmem:[%s2234_s11 + $0x330] sm:$0xff] %v406_v38  ;;  %409 = vst [vmem:[%s2234_s11 + $0x338] sm:$0xff] %v408_v39  ;;  %v412_v41 = vld [vmem:[%s2229_s10 + $0x3408] sm:$0xff] }
  0x4b   : > { %411 = vst [vmem:[%s2234_s11 + $0x340] sm:$0xff] %v410_v40  ;;  %v414_v42 = vld [vmem:[%s2229_s10 + $0x3500] sm:$0xff]  ;;  %v416_v43 = vld [vmem:[%s2229_s10 + $0x3508] sm:$0xff]  ;;  %413 = vst [vmem:[%s2234_s11 + $0x348] sm:$0xff] %v412_v41 }
  0x4c   : > { %415 = vst [vmem:[%s2234_s11 + $0x350] sm:$0xff] %v414_v42  ;;  %417 = vst [vmem:[%s2234_s11 + $0x358] sm:$0xff] %v416_v43  ;;  %v418_v44 = vld [vmem:[%s2229_s10 + $0x3600] sm:$0xff]  ;;  %v420_v45 = vld [vmem:[%s2229_s10 + $0x3608] sm:$0xff] }
  0x4d   : > { %v422_v46 = vld [vmem:[%s2229_s10 + $0x3700] sm:$0xff]  ;;  %419 = vst [vmem:[%s2234_s11 + $0x360] sm:$0xff] %v418_v44  ;;  %421 = vst [vmem:[%s2234_s11 + $0x368] sm:$0xff] %v420_v45  ;;  %v424_v47 = vld [vmem:[%s2229_s10 + $0x3708] sm:$0xff] }
  0x4e   : > { %423 = vst [vmem:[%s2234_s11 + $0x370] sm:$0xff] %v422_v46  ;;  %v426_v48 = vld [vmem:[%s2229_s10 + $0x3800] sm:$0xff]  ;;  %v428_v49 = vld [vmem:[%s2229_s10 + $0x3808] sm:$0xff]  ;;  %425 = vst [vmem:[%s2234_s11 + $0x378] sm:$0xff] %v424_v47 }
  0x4f   : > { %427 = vst [vmem:[%s2234_s11 + $0x380] sm:$0xff] %v426_v48  ;;  %429 = vst [vmem:[%s2234_s11 + $0x388] sm:$0xff] %v428_v49  ;;  %v430_v50 = vld [vmem:[%s2229_s10 + $0x3900] sm:$0xff]  ;;  %v432_v51 = vld [vmem:[%s2229_s10 + $0x3908] sm:$0xff] }
  0x50   : > { %v434_v52 = vld [vmem:[%s2229_s10 + $0x3a00] sm:$0xff]  ;;  %431 = vst [vmem:[%s2234_s11 + $0x390] sm:$0xff] %v430_v50  ;;  %433 = vst [vmem:[%s2234_s11 + $0x398] sm:$0xff] %v432_v51  ;;  %v436_v53 = vld [vmem:[%s2229_s10 + $0x3a08] sm:$0xff] }
  0x51   : > { %435 = vst [vmem:[%s2234_s11 + $0x3a0] sm:$0xff] %v434_v52  ;;  %v438_v54 = vld [vmem:[%s2229_s10 + $0x3b00] sm:$0xff]  ;;  %v440_v55 = vld [vmem:[%s2229_s10 + $0x3b08] sm:$0xff]  ;;  %437 = vst [vmem:[%s2234_s11 + $0x3a8] sm:$0xff] %v436_v53 }
  0x52   : > { %439 = vst [vmem:[%s2234_s11 + $0x3b0] sm:$0xff] %v438_v54  ;;  %441 = vst [vmem:[%s2234_s11 + $0x3b8] sm:$0xff] %v440_v55  ;;  %v442_v56 = vld [vmem:[%s2229_s10 + $0x3c00] sm:$0xff]  ;;  %v444_v57 = vld [vmem:[%s2229_s10 + $0x3c08] sm:$0xff] }
  0x53   : > { %v446_v58 = vld [vmem:[%s2229_s10 + $0x3d00] sm:$0xff]  ;;  %443 = vst [vmem:[%s2234_s11 + $0x3c0] sm:$0xff] %v442_v56  ;;  %445 = vst [vmem:[%s2234_s11 + $0x3c8] sm:$0xff] %v444_v57  ;;  %v448_v59 = vld [vmem:[%s2229_s10 + $0x3d08] sm:$0xff] }
  0x54   : > { %447 = vst [vmem:[%s2234_s11 + $0x3d0] sm:$0xff] %v446_v58  ;;  %v450_v60 = vld [vmem:[%s2229_s10 + $0x3e00] sm:$0xff]  ;;  %v452_v61 = vld [vmem:[%s2229_s10 + $0x3e08] sm:$0xff]  ;;  %449 = vst [vmem:[%s2234_s11 + $0x3d8] sm:$0xff] %v448_v59 }
  0x55   : > { %451 = vst [vmem:[%s2234_s11 + $0x3e0] sm:$0xff] %v450_v60  ;;  %453 = vst [vmem:[%s2234_s11 + $0x3e8] sm:$0xff] %v452_v61  ;;  %v454_v62 = vld [vmem:[%s2229_s10 + $0x3f00] sm:$0xff]  ;;  %v456_v63 = vld [vmem:[%s2229_s10 + $0x3f08] sm:$0xff] }
  0x56   : > { %455 = vst [vmem:[%s2234_s11 + $0x3f0] sm:$0xff] %v454_v62  ;;  %457 = vst [vmem:[%s2234_s11 + $0x3f8] sm:$0xff] %v456_v63 }
  0x57 PF: > { %p1681_p7 = scmp.ge.s32.totalorder %s2143_s21, 1  ;;  %p462_p8 = scmp.lt.s32.totalorder %s2143_s21, 17 }
  0x59   : > { %p463_p9 = pnand %p1681_p7, %p462_p8 }
  0x5a   : > { %s469_s12 = sand.u32 (!%p463_p9), 1, %s2119_s15   ;;  %p519_p10 = scmp.lt.s32.totalorder (!%p463_p9), %s2131_s18, 1  ;;  %v2496_v0 = vld [vmem:[%s2703_s0] sm:$0xff] (!%p463_p9) }
  0x5b   : > { %466 = sbr.rel (%p463_p9) target bundleno = 444 (0x1bc), region = 47  ;;  %s1682_s24 = sshll.u32 (!%p463_p9), %s469_s12, 10  ;;  %v1691_v1 = vcombine.high (!%p463_p9), %v2496_v0, %v2496_v0 }
  0x5c   : > { %s2501_s26 = scalar_lea.vmem (!%p463_p9), [#allocation2], %s1682_s24  ;;  %s1683_s10 = sshll.u32 (!%p463_p9), %s2131_s18, 3 }
  0x5d   : > { %v1893_v2 = vld [vmem:[%s2501_s26 + $0x4] ss:$16 sps:$4 sm:$0xff] (!%p463_p9)   ;;  %1345 = vmatprep.mubr.bf16.mxu0 (!%p463_p9), %v1691_v1  ;;  %1427 = vmatprep.mubr.bf16.mxu1 (!%p463_p9), %v1691_v1  ;;  %v1895_v3 = vld [vmem:[%s2501_s26 + $0xc] ss:$16 sps:$4 sm:$0xff] (!%p463_p9)   ;;  %v1897_v4 = vld [vmem:[%s2501_s26] ss:$16 sps:$4 sm:$0xff] (!%p463_p9)   ;;  %s510_s11 = sadd.s32 (!%p463_p9), %s2127_s17, %s1683_s10 }
  0x5e   : > { %1313 = vmatprep.subr.bf16.mxu0 (!%p463_p9), %v1893_v2  ;;  %v1898_v5 = vld [vmem:[%s2501_s26 + $0x8] ss:$16 sps:$4 sm:$0xff] (!%p463_p9)   ;;  %1395 = vmatprep.subr.bf16.mxu1 (!%p463_p9), %v1895_v3  ;;  %v1899_v6 = vld [vmem:[%s2501_s26 + $0x24] ss:$16 sps:$4 sm:$0xff] (!%p463_p9)   ;;  %v1901_v7 = vld [vmem:[%s2501_s26 + $0x2c] ss:$16 sps:$4 sm:$0xff] (!%p463_p9)  }
  0x5f   : > { %1314 = vmatpush1.bf16.msra.mxu0 (!%p463_p9), %v1897_v4  ;;  %1396 = vmatpush1.bf16.msra.mxu1 (!%p463_p9), %v1898_v5  ;;  %v1903_v8 = vld [vmem:[%s2501_s26 + $0x20] ss:$16 sps:$4 sm:$0xff] (!%p463_p9)   ;;  %v1904_v9 = vld [vmem:[%s2501_s26 + $0x28] ss:$16 sps:$4 sm:$0xff] (!%p463_p9)   ;;  %v1905_v10 = vld [vmem:[%s2501_s26 + $0x44] ss:$16 sps:$4 sm:$0xff] (!%p463_p9)  }
  0x60   : > { %1315 = vmatprep.subr.bf16.mxu0 (!%p463_p9), %v1899_v6  ;;  %1397 = vmatprep.subr.bf16.mxu1 (!%p463_p9), %v1901_v7  ;;  %v1907_v11 = vld [vmem:[%s2501_s26 + $0x4c] ss:$16 sps:$4 sm:$0xff] (!%p463_p9)   ;;  %v1909_v12 = vld [vmem:[%s2501_s26 + $0x40] ss:$16 sps:$4 sm:$0xff] (!%p463_p9)   ;;  %v1910_v13 = vld [vmem:[%s2501_s26 + $0x48] ss:$16 sps:$4 sm:$0xff] (!%p463_p9)   ;;  %v1690_v6 = vcombine.low (!%p463_p9), %v2496_v0, %v2496_v0 }
  0x61   : > { %v1911_v14 = vld [vmem:[%s2501_s26 + $0x64] ss:$16 sps:$4 sm:$0xff] (!%p463_p9)   ;;  %v1913_v15 = vld [vmem:[%s2501_s26 + $0x6c] ss:$16 sps:$4 sm:$0xff] (!%p463_p9)   ;;  %v1915_v16 = vld [vmem:[%s2501_s26 + $0x60] ss:$16 sps:$4 sm:$0xff] (!%p463_p9)  }
  0x62   : > { %s520_s25 = scalar_select %p519_p10, %s2131_s18, 1  ;;  %v1916_v17 = vld [vmem:[%s2501_s26 + $0x68] ss:$16 sps:$4 sm:$0xff]   ;;  %v1917_v18 = vld [vmem:[%s2501_s26 + $0x84] ss:$16 sps:$4 sm:$0xff]  }
  0x63   : > { %1316 = vmatpush1.bf16.msra.mxu0 %v1903_v8  ;;  %1398 = vmatpush1.bf16.msra.mxu1 %v1904_v9  ;;  %v1919_v19 = vld [vmem:[%s2501_s26 + $0x8c] ss:$16 sps:$4 sm:$0xff]   ;;  %v1921_v20 = vld [vmem:[%s2501_s26 + $0x80] ss:$16 sps:$4 sm:$0xff]   ;;  %v1922_v21 = vld [vmem:[%s2501_s26 + $0x88] ss:$16 sps:$4 sm:$0xff]  }
  0x64   : > { %s1826_s15 = sshll.u32 %s520_s25, 5  ;;  %1317 = vmatprep.subr.bf16.mxu0 %v1905_v10  ;;  %1399 = vmatprep.subr.bf16.mxu1 %v1907_v11  ;;  %v1923_v22 = vld [vmem:[%s2501_s26 + $0xa4] ss:$16 sps:$4 sm:$0xff]   ;;  %v1925_v23 = vld [vmem:[%s2501_s26 + $0xac] ss:$16 sps:$4 sm:$0xff]   ;;  %s1684_s12 = sshll.u32 %s510_s11, 2 }
  0x65   : > { %s2510_s29 = scalar_lea.vmem %s2706_s3, %s1826_s15  ;;  %s2515_s7 = scalar_lea.vmem %s2707_s4, %s1826_s15  ;;  %v1927_v24 = vld [vmem:[%s2501_s26 + $0xa0] ss:$16 sps:$4 sm:$0xff]   ;;  %v1928_v25 = vld [vmem:[%s2501_s26 + $0xa8] ss:$16 sps:$4 sm:$0xff]   ;;  %v1929_v26 = vld [vmem:[%s2501_s26 + $0xc4] ss:$16 sps:$4 sm:$0xff]  }
  0x66   : > { %v1931_v27 = vld [vmem:[%s2501_s26 + $0xcc] ss:$16 sps:$4 sm:$0xff]   ;;  %v1933_v28 = vld [vmem:[%s2501_s26 + $0xc0] ss:$16 sps:$4 sm:$0xff]   ;;  %v1934_v29 = vld [vmem:[%s2501_s26 + $0xc8] ss:$16 sps:$4 sm:$0xff]  }
  0x67   : > { %1318 = vmatpush1.bf16.msra.mxu0 %v1909_v12  ;;  %1400 = vmatpush1.bf16.msra.mxu1 %v1910_v13  ;;  %v1935_v30 = vld [vmem:[%s2501_s26 + $0xe4] ss:$16 sps:$4 sm:$0xff]   ;;  %v1937_v31 = vld [vmem:[%s2501_s26 + $0xec] ss:$16 sps:$4 sm:$0xff]   ;;  %v1939_v32 = vld [vmem:[%s2501_s26 + $0xe0] ss:$16 sps:$4 sm:$0xff]  }
  0x68   : > { %1319 = vmatprep.subr.bf16.mxu0 %v1911_v14  ;;  %1401 = vmatprep.subr.bf16.mxu1 %v1913_v15  ;;  %v1940_v33 = vld [vmem:[%s2501_s26 + $0xe8] ss:$16 sps:$4 sm:$0xff]   ;;  %v1941_v34 = vld [vmem:[%s2501_s26 + $0x104] ss:$16 sps:$4 sm:$0xff]   ;;  %v1943_v35 = vld [vmem:[%s2501_s26 + $0x10c] ss:$16 sps:$4 sm:$0xff]  }
  0x69   : > { %v1945_v36 = vld [vmem:[%s2501_s26 + $0x100] ss:$16 sps:$4 sm:$0xff]   ;;  %v1946_v37 = vld [vmem:[%s2501_s26 + $0x108] ss:$16 sps:$4 sm:$0xff]   ;;  %v1947_v38 = vld [vmem:[%s2501_s26 + $0x124] ss:$16 sps:$4 sm:$0xff]  }
  0x6a   : > { %v1949_v39 = vld [vmem:[%s2501_s26 + $0x12c] ss:$16 sps:$4 sm:$0xff]   ;;  %v1951_v40 = vld [vmem:[%s2501_s26 + $0x120] ss:$16 sps:$4 sm:$0xff]   ;;  %v1952_v41 = vld [vmem:[%s2501_s26 + $0x128] ss:$16 sps:$4 sm:$0xff]  }
  0x6b   : > { %1320 = vmatpush1.bf16.msra.mxu0 %v1915_v16  ;;  %1402 = vmatpush1.bf16.msra.mxu1 %v1916_v17  ;;  %v1953_v42 = vld [vmem:[%s2501_s26 + $0x144] ss:$16 sps:$4 sm:$0xff]   ;;  %v1955_v43 = vld [vmem:[%s2501_s26 + $0x14c] ss:$16 sps:$4 sm:$0xff]   ;;  %v1957_v44 = vld [vmem:[%s2501_s26 + $0x140] ss:$16 sps:$4 sm:$0xff]  }
  0x6c   : > { %1321 = vmatprep.subr.bf16.mxu0 %v1917_v18  ;;  %1403 = vmatprep.subr.bf16.mxu1 %v1919_v19  ;;  %v1958_v45 = vld [vmem:[%s2501_s26 + $0x148] ss:$16 sps:$4 sm:$0xff]   ;;  %v1959_v46 = vld [vmem:[%s2501_s26 + $0x164] ss:$16 sps:$4 sm:$0xff]   ;;  %v1961_v47 = vld [vmem:[%s2501_s26 + $0x16c] ss:$16 sps:$4 sm:$0xff]  }
  0x6d   : > { %v1963_v48 = vld [vmem:[%s2501_s26 + $0x160] ss:$16 sps:$4 sm:$0xff]   ;;  %v1964_v49 = vld [vmem:[%s2501_s26 + $0x168] ss:$16 sps:$4 sm:$0xff]   ;;  %v1965_v50 = vld [vmem:[%s2501_s26 + $0x184] ss:$16 sps:$4 sm:$0xff]  }
  0x6e   : > { %v1967_v51 = vld [vmem:[%s2501_s26 + $0x18c] ss:$16 sps:$4 sm:$0xff]   ;;  %v1969_v52 = vld [vmem:[%s2501_s26 + $0x180] ss:$16 sps:$4 sm:$0xff]   ;;  %v1970_v53 = vld [vmem:[%s2501_s26 + $0x188] ss:$16 sps:$4 sm:$0xff]  }
  0x6f   : > { %1322 = vmatpush1.bf16.msra.mxu0 %v1921_v20  ;;  %1404 = vmatpush1.bf16.msra.mxu1 %v1922_v21  ;;  %v1971_v54 = vld [vmem:[%s2501_s26 + $0x1a4] ss:$16 sps:$4 sm:$0xff]   ;;  %v1973_v55 = vld [vmem:[%s2501_s26 + $0x1ac] ss:$16 sps:$4 sm:$0xff]   ;;  %v1975_v56 = vld [vmem:[%s2501_s26 + $0x1a0] ss:$16 sps:$4 sm:$0xff]  }
  0x70   : > { %1323 = vmatprep.subr.bf16.mxu0 %v1923_v22  ;;  %1405 = vmatprep.subr.bf16.mxu1 %v1925_v23  ;;  %v1976_v57 = vld [vmem:[%s2501_s26 + $0x1a8] ss:$16 sps:$4 sm:$0xff]   ;;  %v1977_v58 = vld [vmem:[%s2501_s26 + $0x1c4] ss:$16 sps:$4 sm:$0xff]   ;;  %v1979_v59 = vld [vmem:[%s2501_s26 + $0x1cc] ss:$16 sps:$4 sm:$0xff]  }
  0x71   : > { %v1981_v60 = vld [vmem:[%s2501_s26 + $0x1c0] ss:$16 sps:$4 sm:$0xff]   ;;  %v1982_v61 = vld [vmem:[%s2501_s26 + $0x1c8] ss:$16 sps:$4 sm:$0xff]   ;;  %v1983_v62 = vld [vmem:[%s2501_s26 + $0x1e4] ss:$16 sps:$4 sm:$0xff]  }
  0x72   : > { %v1985_v63 = vld [vmem:[%s2501_s26 + $0x1ec] ss:$16 sps:$4 sm:$0xff]   ;;  %v1987_v1 = vld [vmem:[%s2501_s26 + $0x1e0] ss:$16 sps:$4 sm:$0xff]   ;;  %v1988_v2 = vld [vmem:[%s2501_s26 + $0x1e8] ss:$16 sps:$4 sm:$0xff]  }
  0x73   : > { %1324 = vmatpush1.bf16.msra.mxu0 %v1927_v24  ;;  %1406 = vmatpush1.bf16.msra.mxu1 %v1928_v25  ;;  %v1993_v3 = vld [vmem:[%s2501_s26 + $0x204] ss:$16 sps:$4 sm:$0xff]   ;;  %v1996_v4 = vld [vmem:[%s2501_s26 + $0x20c] ss:$16 sps:$4 sm:$0xff]   ;;  %v1991_v7 = vld [vmem:[%s2501_s26 + $0x200] ss:$16 sps:$4 sm:$0xff]  }
  0x74   : > { %1325 = vmatprep.subr.bf16.mxu0 %v1929_v26  ;;  %1407 = vmatprep.subr.bf16.mxu1 %v1931_v27  ;;  %v2582_v5 = vld [vmem:[%s2703_s0 + $0x8] sm:$0xff]  ;;  %v1999_v9 = vld [vmem:[%s2501_s26 + $0x224] ss:$16 sps:$4 sm:$0xff]   ;;  %v1997_v12 = vld [vmem:[%s2501_s26 + $0x220] ss:$16 sps:$4 sm:$0xff]   ;;  %p512_p11 = scmp.lt.s32.totalorder %s1684_s12, 63 }
  0x75   : > { %v1994_v8 = vld [vmem:[%s2501_s26 + $0x208] ss:$16 sps:$4 sm:$0xff]   ;;  %v2002_v10 = vld [vmem:[%s2501_s26 + $0x22c] ss:$16 sps:$4 sm:$0xff]   ;;  %v1693_v11 = vcombine.high %v2582_v5, %v2582_v5  ;;  %v2005_v13 = vld [vmem:[%s2501_s26 + $0x244] ss:$16 sps:$4 sm:$0xff]  }
  0x76   : > { %v2000_v0 = vld [vmem:[%s2501_s26 + $0x228] ss:$16 sps:$4 sm:$0xff]   ;;  %v2008_v14 = vld [vmem:[%s2501_s26 + $0x24c] ss:$16 sps:$4 sm:$0xff]   ;;  %v2003_v15 = vld [vmem:[%s2501_s26 + $0x240] ss:$16 sps:$4 sm:$0xff]  }
  0x77   : > { %1326 = vmatpush1.bf16.msra.mxu0 %v1933_v28  ;;  %1408 = vmatpush1.bf16.msra.mxu1 %v1934_v29  ;;  %v2006_v16 = vld [vmem:[%s2501_s26 + $0x248] ss:$16 sps:$4 sm:$0xff]   ;;  %v2011_v17 = vld [vmem:[%s2501_s26 + $0x264] ss:$16 sps:$4 sm:$0xff]   ;;  %v2014_v18 = vld [vmem:[%s2501_s26 + $0x26c] ss:$16 sps:$4 sm:$0xff]  }
  0x78   : > { %1327 = vmatprep.subr.bf16.mxu0 %v1935_v30  ;;  %1409 = vmatprep.subr.bf16.mxu1 %v1937_v31  ;;  %v2009_v19 = vld [vmem:[%s2501_s26 + $0x260] ss:$16 sps:$4 sm:$0xff]   ;;  %v2012_v20 = vld [vmem:[%s2501_s26 + $0x268] ss:$16 sps:$4 sm:$0xff]   ;;  %v2017_v21 = vld [vmem:[%s2501_s26 + $0x284] ss:$16 sps:$4 sm:$0xff]  }
  0x79   : > { %v2020_v22 = vld [vmem:[%s2501_s26 + $0x28c] ss:$16 sps:$4 sm:$0xff]   ;;  %v2015_v23 = vld [vmem:[%s2501_s26 + $0x280] ss:$16 sps:$4 sm:$0xff]   ;;  %v2018_v24 = vld [vmem:[%s2501_s26 + $0x288] ss:$16 sps:$4 sm:$0xff]  }
  0x7a   : > { %v2023_v25 = vld [vmem:[%s2501_s26 + $0x2a4] ss:$16 sps:$4 sm:$0xff]   ;;  %v2026_v26 = vld [vmem:[%s2501_s26 + $0x2ac] ss:$16 sps:$4 sm:$0xff]   ;;  %v2021_v27 = vld [vmem:[%s2501_s26 + $0x2a0] ss:$16 sps:$4 sm:$0xff]  }
  0x7b   : > { %1328 = vmatpush1.bf16.msra.mxu0 %v1939_v32  ;;  %1410 = vmatpush1.bf16.msra.mxu1 %v1940_v33  ;;  %v2024_v28 = vld [vmem:[%s2501_s26 + $0x2a8] ss:$16 sps:$4 sm:$0xff]   ;;  %v2029_v29 = vld [vmem:[%s2501_s26 + $0x2c4] ss:$16 sps:$4 sm:$0xff]   ;;  %v2032_v30 = vld [vmem:[%s2501_s26 + $0x2cc] ss:$16 sps:$4 sm:$0xff]  }
  0x7c   : > { %1329 = vmatprep.subr.bf16.mxu0 %v1941_v34  ;;  %1411 = vmatprep.subr.bf16.mxu1 %v1943_v35  ;;  %v2027_v31 = vld [vmem:[%s2501_s26 + $0x2c0] ss:$16 sps:$4 sm:$0xff]   ;;  %v2030_v32 = vld [vmem:[%s2501_s26 + $0x2c8] ss:$16 sps:$4 sm:$0xff]   ;;  %v2035_v33 = vld [vmem:[%s2501_s26 + $0x2e4] ss:$16 sps:$4 sm:$0xff]  }
  0x7d   : > { %v2038_v34 = vld [vmem:[%s2501_s26 + $0x2ec] ss:$16 sps:$4 sm:$0xff]   ;;  %v2033_v35 = vld [vmem:[%s2501_s26 + $0x2e0] ss:$16 sps:$4 sm:$0xff]   ;;  %s2721_s12 = smov (!%p512_p11, %s1684_s12), 63  ;;  %p1822_p12 = scmp.ne.s32.totalorder %s2127_s17, 0 }
  0x7e   : > { %s1685_s13 = sshll.u32 %s2721_s12, 3 }
  0x7f   : > { %1330 = vmatpush1.bf16.msra.mxu0 %v1945_v36  ;;  %1412 = vmatpush1.bf16.msra.mxu1 %v1946_v37  ;;  %v2036_v36 = vld [vmem:[%s2501_s26 + $0x2e8] ss:$16 sps:$4 sm:$0xff]   ;;  %v2041_v37 = vld [vmem:[%s2501_s26 + $0x304] ss:$16 sps:$4 sm:$0xff]   ;;  %s515_s25 = scalar_lea.vmem %s2705_s2, %s1685_s13 }
  0x80   : > { %1331 = vmatprep.subr.bf16.mxu0 %v1947_v38  ;;  %1413 = vmatprep.subr.bf16.mxu1 %v1949_v39  ;;  %v2044_v38 = vld [vmem:[%s2501_s26 + $0x30c] ss:$16 sps:$4 sm:$0xff]   ;;  %v2039_v39 = vld [vmem:[%s2501_s26 + $0x300] ss:$16 sps:$4 sm:$0xff]  }
  0x83   : > { %1332 = vmatpush1.bf16.msra.mxu0 %v1951_v40  ;;  %1414 = vmatpush1.bf16.msra.mxu1 %v1952_v41  ;;  %v2042_v40 = vld [vmem:[%s2501_s26 + $0x308] ss:$16 sps:$4 sm:$0xff]   ;;  %v2047_v41 = vld [vmem:[%s2501_s26 + $0x324] ss:$16 sps:$4 sm:$0xff]  }
  0x84   : > { %1333 = vmatprep.subr.bf16.mxu0 %v1953_v42  ;;  %1415 = vmatprep.subr.bf16.mxu1 %v1955_v43  ;;  %v2050_v42 = vld [vmem:[%s2501_s26 + $0x32c] ss:$16 sps:$4 sm:$0xff]   ;;  %v2045_v43 = vld [vmem:[%s2501_s26 + $0x320] ss:$16 sps:$4 sm:$0xff]  }
  0x87   : > { %1334 = vmatpush1.bf16.msra.mxu0 %v1957_v44  ;;  %1416 = vmatpush1.bf16.msra.mxu1 %v1958_v45  ;;  %v2048_v44 = vld [vmem:[%s2501_s26 + $0x328] ss:$16 sps:$4 sm:$0xff]   ;;  %v2053_v45 = vld [vmem:[%s2501_s26 + $0x344] ss:$16 sps:$4 sm:$0xff]  }
  0x88   : > { %1335 = vmatprep.subr.bf16.mxu0 %v1959_v46  ;;  %1417 = vmatprep.subr.bf16.mxu1 %v1961_v47  ;;  %v2056_v46 = vld [vmem:[%s2501_s26 + $0x34c] ss:$16 sps:$4 sm:$0xff]   ;;  %v2051_v47 = vld [vmem:[%s2501_s26 + $0x340] ss:$16 sps:$4 sm:$0xff]  }
  0x8b   : > { %1336 = vmatpush1.bf16.msra.mxu0 %v1963_v48  ;;  %1418 = vmatpush1.bf16.msra.mxu1 %v1964_v49  ;;  %v2054_v48 = vld [vmem:[%s2501_s26 + $0x348] ss:$16 sps:$4 sm:$0xff]   ;;  %v2059_v49 = vld [vmem:[%s2501_s26 + $0x364] ss:$16 sps:$4 sm:$0xff]  }
  0x8c   : > { %1337 = vmatprep.subr.bf16.mxu0 %v1965_v50  ;;  %1419 = vmatprep.subr.bf16.mxu1 %v1967_v51  ;;  %v2062_v50 = vld [vmem:[%s2501_s26 + $0x36c] ss:$16 sps:$4 sm:$0xff]   ;;  %v2057_v51 = vld [vmem:[%s2501_s26 + $0x360] ss:$16 sps:$4 sm:$0xff]  }
  0x8f   : > { %1338 = vmatpush1.bf16.msra.mxu0 %v1969_v52  ;;  %1420 = vmatpush1.bf16.msra.mxu1 %v1970_v53  ;;  %v2060_v52 = vld [vmem:[%s2501_s26 + $0x368] ss:$16 sps:$4 sm:$0xff]   ;;  %v2065_v53 = vld [vmem:[%s2501_s26 + $0x384] ss:$16 sps:$4 sm:$0xff]  }
  0x90   : > { %1339 = vmatprep.subr.bf16.mxu0 %v1971_v54  ;;  %1421 = vmatprep.subr.bf16.mxu1 %v1973_v55  ;;  %v2068_v54 = vld [vmem:[%s2501_s26 + $0x38c] ss:$16 sps:$4 sm:$0xff]   ;;  %v2063_v55 = vld [vmem:[%s2501_s26 + $0x380] ss:$16 sps:$4 sm:$0xff]  }
  0x93   : > { %1340 = vmatpush1.bf16.msra.mxu0 %v1975_v56  ;;  %1422 = vmatpush1.bf16.msra.mxu1 %v1976_v57  ;;  %v2066_v56 = vld [vmem:[%s2501_s26 + $0x388] ss:$16 sps:$4 sm:$0xff]   ;;  %v2071_v57 = vld [vmem:[%s2501_s26 + $0x3a4] ss:$16 sps:$4 sm:$0xff]  }
  0x94   : > { %1341 = vmatprep.subr.bf16.mxu0 %v1977_v58  ;;  %1423 = vmatprep.subr.bf16.mxu1 %v1979_v59  ;;  %v2074_v58 = vld [vmem:[%s2501_s26 + $0x3ac] ss:$16 sps:$4 sm:$0xff]   ;;  %v2069_v59 = vld [vmem:[%s2501_s26 + $0x3a0] ss:$16 sps:$4 sm:$0xff]  }
  0x97   : > { %1342 = vmatpush1.bf16.msra.mxu0 %v1981_v60  ;;  %1424 = vmatpush1.bf16.msra.mxu1 %v1982_v61  ;;  %v2072_v60 = vld [vmem:[%s2501_s26 + $0x3a8] ss:$16 sps:$4 sm:$0xff]   ;;  %v2077_v61 = vld [vmem:[%s2501_s26 + $0x3c4] ss:$16 sps:$4 sm:$0xff]  }
  0x98   : > { %1343 = vmatprep.subr.bf16.mxu0 %v1983_v62  ;;  %1425 = vmatprep.subr.bf16.mxu1 %v1985_v63  ;;  %v2080_v62 = vld [vmem:[%s2501_s26 + $0x3cc] ss:$16 sps:$4 sm:$0xff]   ;;  %v2075_v63 = vld [vmem:[%s2501_s26 + $0x3c0] ss:$16 sps:$4 sm:$0xff]  }
  0x9b   : > { %1344 = vmatpush1.bf16.msra.mxu0 %v1987_v1  ;;  %1426 = vmatpush1.bf16.msra.mxu1 %v1988_v2  ;;  %v2078_v1 = vld [vmem:[%s2501_s26 + $0x3c8] ss:$16 sps:$4 sm:$0xff]   ;;  %v2083_v2 = vld [vmem:[%s2501_s26 + $0x3e4] ss:$16 sps:$4 sm:$0xff]  }
  0x9c   : > { %1354 = vmatprep.subr.bf16.mxu0 %v1993_v3  ;;  %1436 = vmatprep.subr.bf16.mxu1 %v1996_v4  ;;  %v2086_v3 = vld [vmem:[%s2501_s26 + $0x3ec] ss:$16 sps:$4 sm:$0xff]   ;;  %v2081_v4 = vld [vmem:[%s2501_s26 + $0x3e0] ss:$16 sps:$4 sm:$0xff]  }
  0x9e   : > { %1346 = vmatmul.mubr.bf16.vlgmr.msra.gmra.mrb[0].mxu0 %v1690_v6  ;;  %1428 = vmatmul.mubr.bf16.vlgmr.msra.gmra.mrb[0].mxu1 %v1690_v6  ;;  %v2084_v6 = vld [vmem:[%s2501_s26 + $0x3e8] ss:$16 sps:$4 sm:$0xff]  }
  0x9f   : > { %1355 = vmatpush1.bf16.msra.mxu0 %v1991_v7  ;;  %1437 = vmatpush1.bf16.msra.mxu1 %v1994_v8  ;;  %v1692_v7 = vcombine.low %v2582_v5, %v2582_v5 }
  0xa0   : > { %1356 = vmatprep.subr.bf16.mxu0 %v1999_v9  ;;  %1438 = vmatprep.subr.bf16.mxu1 %v2002_v10 }
  0xa1   : > { %1386 = vmatprep.mubr.bf16.mxu0 %v1693_v11  ;;  %1468 = vmatprep.mubr.bf16.mxu1 %v1693_v11 }
  0xa3   : > { %1357 = vmatpush1.bf16.msra.mxu0 %v1997_v12  ;;  %1439 = vmatpush1.bf16.msra.mxu1 %v2000_v0 }
  0xa4   : > { %1358 = vmatprep.subr.bf16.mxu0 %v2005_v13  ;;  %1440 = vmatprep.subr.bf16.mxu1 %v2008_v14  ;;  %v2145_v14 = vmov (!%p1822_p12), 0.0  }
  0xa5   : > { %1485 = vst [vmem:[%s2510_s29] sm:$0xff] (!%p1822_p12), %v2145_v14  ;;  %1486 = vst [vmem:[%s2510_s29 + $0x8] sm:$0xff] (!%p1822_p12), %v2145_v14 }
  0xa6   : > { %1487 = vst [vmem:[%s2510_s29 + $0x10] sm:$0xff] (!%p1822_p12), %v2145_v14  ;;  %1488 = vst [vmem:[%s2510_s29 + $0x18] sm:$0xff] (!%p1822_p12), %v2145_v14 }
  0xa7   : > { %1359 = vmatpush1.bf16.msra.mxu0 %v2003_v15  ;;  %1441 = vmatpush1.bf16.msra.mxu1 %v2006_v16  ;;  %1489 = vst [vmem:[%s2515_s7] sm:$0xff] (!%p1822_p12), %v2145_v14  ;;  %1490 = vst [vmem:[%s2515_s7 + $0x8] sm:$0xff] (!%p1822_p12), %v2145_v14 }
  0xa8   : > { %1360 = vmatprep.subr.bf16.mxu0 %v2011_v17  ;;  %1442 = vmatprep.subr.bf16.mxu1 %v2014_v18  ;;  %1491 = vst [vmem:[%s2515_s7 + $0x10] sm:$0xff] (!%p1822_p12), %v2145_v14  ;;  %1492 = vst [vmem:[%s2515_s7 + $0x18] sm:$0xff] (!%p1822_p12), %v2145_v14 }
  0xab   : > { %1361 = vmatpush1.bf16.msra.mxu0 %v2009_v19  ;;  %1443 = vmatpush1.bf16.msra.mxu1 %v2012_v20 }
  0xac   : > { %1362 = vmatprep.subr.bf16.mxu0 %v2017_v21  ;;  %1444 = vmatprep.subr.bf16.mxu1 %v2020_v22 }
  0xaf   : > { %1363 = vmatpush1.bf16.msra.mxu0 %v2015_v23  ;;  %1445 = vmatpush1.bf16.msra.mxu1 %v2018_v24 }
  0xb0   : > { %1364 = vmatprep.subr.bf16.mxu0 %v2023_v25  ;;  %1446 = vmatprep.subr.bf16.mxu1 %v2026_v26 }
  0xb3   : > { %1365 = vmatpush1.bf16.msra.mxu0 %v2021_v27  ;;  %1447 = vmatpush1.bf16.msra.mxu1 %v2024_v28 }
  0xb4   : > { %1366 = vmatprep.subr.bf16.mxu0 %v2029_v29  ;;  %1448 = vmatprep.subr.bf16.mxu1 %v2032_v30 }
  0xb7   : > { %1367 = vmatpush1.bf16.msra.mxu0 %v2027_v31  ;;  %1449 = vmatpush1.bf16.msra.mxu1 %v2030_v32 }
  0xb8   : > { %1368 = vmatprep.subr.bf16.mxu0 %v2035_v33  ;;  %1450 = vmatprep.subr.bf16.mxu1 %v2038_v34 }
  0xbb   : > { %1369 = vmatpush1.bf16.msra.mxu0 %v2033_v35  ;;  %1451 = vmatpush1.bf16.msra.mxu1 %v2036_v36 }
  0xbc   : > { %1370 = vmatprep.subr.bf16.mxu0 %v2041_v37  ;;  %1452 = vmatprep.subr.bf16.mxu1 %v2044_v38 }
  0xbf   : > { %1371 = vmatpush1.bf16.msra.mxu0 %v2039_v39  ;;  %1453 = vmatpush1.bf16.msra.mxu1 %v2042_v40 }
  0xc0   : > { %1372 = vmatprep.subr.bf16.mxu0 %v2047_v41  ;;  %1454 = vmatprep.subr.bf16.mxu1 %v2050_v42 }
  0xc3   : > { %1373 = vmatpush1.bf16.msra.mxu0 %v2045_v43  ;;  %1455 = vmatpush1.bf16.msra.mxu1 %v2048_v44 }
  0xc4   : > { %1374 = vmatprep.subr.bf16.mxu0 %v2053_v45  ;;  %1456 = vmatprep.subr.bf16.mxu1 %v2056_v46 }
  0xc7   : > { %1375 = vmatpush1.bf16.msra.mxu0 %v2051_v47  ;;  %1457 = vmatpush1.bf16.msra.mxu1 %v2054_v48 }
  0xc8   : > { %1376 = vmatprep.subr.bf16.mxu0 %v2059_v49  ;;  %1458 = vmatprep.subr.bf16.mxu1 %v2062_v50 }
  0xcb   : > { %1377 = vmatpush1.bf16.msra.mxu0 %v2057_v51  ;;  %1459 = vmatpush1.bf16.msra.mxu1 %v2060_v52 }
  0xcc   : > { %1378 = vmatprep.subr.bf16.mxu0 %v2065_v53  ;;  %1460 = vmatprep.subr.bf16.mxu1 %v2068_v54 }
  0xcf   : > { %1379 = vmatpush1.bf16.msra.mxu0 %v2063_v55  ;;  %1461 = vmatpush1.bf16.msra.mxu1 %v2066_v56 }
  0xd0   : > { %1380 = vmatprep.subr.bf16.mxu0 %v2071_v57  ;;  %1462 = vmatprep.subr.bf16.mxu1 %v2074_v58 }
  0xd3   : > { %1381 = vmatpush1.bf16.msra.mxu0 %v2069_v59  ;;  %1463 = vmatpush1.bf16.msra.mxu1 %v2072_v60 }
  0xd4   : > { %1382 = vmatprep.subr.bf16.mxu0 %v2077_v61  ;;  %1464 = vmatprep.subr.bf16.mxu1 %v2080_v62 }
  0xd7   : > { %1383 = vmatpush1.bf16.msra.mxu0 %v2075_v63  ;;  %1465 = vmatpush1.bf16.msra.mxu1 %v2078_v1 }
  0xd8   : > { %1384 = vmatprep.subr.bf16.mxu0 %v2083_v2  ;;  %1466 = vmatprep.subr.bf16.mxu1 %v2086_v3 }
  0xdb   : > { %1385 = vmatpush1.bf16.msra.mxu0 %v2081_v4  ;;  %1467 = vmatpush1.bf16.msra.mxu1 %v2084_v6 }
  0xde   : > { %1387 = vmatmul.mubr.bf16.vlgmr.msra.gmra.mrb[0].mxu0 %v1692_v7  ;;  %1469 = vmatmul.mubr.bf16.vlgmr.msra.gmra.mrb[0].mxu1 %v1692_v7 }
 0x1ae   : > { %1484 = sbr.rel (%p1822_p12) target bundleno = 437 (0x1b5), region = 55 }
 0x1b1   : > { %v1388_v8 = vpop.f32.mrb[0].mxu0  ;;  %v1470_v9 = vpop.f32.mrb[0].mxu1 }
 0x1b2   : > { %1477 = vst [vmem:[%s515_s25] sm:$0xff] %v1388_v8  ;;  %1479 = vst [vmem:[%s515_s25 + $0x10] sm:$0xff] %v1470_v9  ;;  %v1390_v10 = vpop.f32.mrb[1].mxu0  ;;  %v1472_v5 = vpop.f32.mrb[1].mxu1 }
 0x1b3   : > { %1478 = vst [vmem:[%s515_s25 + $0x8] sm:$0xff] %v1390_v10  ;;  %1480 = vst [vmem:[%s515_s25 + $0x18] sm:$0xff] %v1472_v5  ;;  %v1392_v11 = vpop.f32.mrb[2].mxu0  ;;  %v1474_v12 = vpop.f32.mrb[2].mxu1 }
 0x1b4   : > { %v1393_v0 = vpop.f32.mrb[3].mxu0  ;;  %v1475_v13 = vpop.f32.mrb[3].mxu1 }
 0x1b5 PF: > { %v1493_v15 = vld [vmem:[%s2510_s29] sm:$0xff]  ;;  %v1494_v16 = vld [vmem:[%s2510_s29 + $0x8] sm:$0xff]  ;;  %v1495_v17 = vld [vmem:[%s2510_s29 + $0x10] sm:$0xff]  ;;  %v1509_v18 = vmul.f32 %v1388_v8, %v1388_v8  ;;  %v1510_v19 = vmul.f32 %v1390_v10, %v1390_v10  ;;  %v1511_v20 = vmul.f32 %v1470_v9, %v1470_v9  ;;  %v1512_v21 = vmul.f32 %v1472_v5, %v1472_v5 }
 0x1b6   : > { %v1497_v22 = vadd.f32 %v1493_v15, %v1388_v8  ;;  %v1498_v23 = vadd.f32 %v1494_v16, %v1390_v10  ;;  %v1499_v24 = vadd.f32 %v1495_v17, %v1470_v9  ;;  %v1496_v25 = vld [vmem:[%s2510_s29 + $0x18] sm:$0xff]  ;;  %v1505_v26 = vld [vmem:[%s2515_s7] sm:$0xff]  ;;  %v1506_v27 = vld [vmem:[%s2515_s7 + $0x8] sm:$0xff] }
 0x1b7   : > { %v1500_v28 = vadd.f32 %v1496_v25, %v1472_v5  ;;  %v1513_v29 = vadd.f32 %v1509_v18, %v1505_v26  ;;  %v1514_v30 = vadd.f32 %v1510_v19, %v1506_v27  ;;  %v1507_v31 = vld [vmem:[%s2515_s7 + $0x10] sm:$0xff]  ;;  %v1508_v32 = vld [vmem:[%s2515_s7 + $0x18] sm:$0xff] }
 0x1b8   : > { %1501 = vst [vmem:[%s2510_s29] sm:$0xff] %v1497_v22  ;;  %1502 = vst [vmem:[%s2510_s29 + $0x8] sm:$0xff] %v1498_v23  ;;  %v1515_v33 = vadd.f32 %v1511_v20, %v1507_v31  ;;  %v1516_v34 = vadd.f32 %v1512_v21, %v1508_v32 }
 0x1b9   : > { %1503 = vst [vmem:[%s2510_s29 + $0x10] sm:$0xff] %v1499_v24  ;;  %1504 = vst [vmem:[%s2510_s29 + $0x18] sm:$0xff] %v1500_v28 }
 0x1ba   : > { %1517 = vst [vmem:[%s2515_s7] sm:$0xff] %v1513_v29  ;;  %1518 = vst [vmem:[%s2515_s7 + $0x8] sm:$0xff] %v1514_v30 }
 0x1bb   : > { %1519 = vst [vmem:[%s2515_s7 + $0x10] sm:$0xff] %v1515_v33  ;;  %1520 = vst [vmem:[%s2515_s7 + $0x18] sm:$0xff] %v1516_v34 }
 0x1bc PF: > { %s15_s21 = sadd.s32 1, %s2143_s21   ;;  %s2708_s15 = smov %s2123_s16 }
 0x1bd   : > { %p12_p13 = scmp.ge.s32.totalorder %s15_s21, 18   ;;  %s2709_s16 = smov %s2222_s30 }
 0x1be   : > { %s2710_s17 = smov %s2135_s19  ;;  %s2711_s18 = smov %s2139_s20 }
 0x1bf   : > { %s2712_s19 = smov %s2715_s22  ;;  %s2713_s20 = smov %s2719_s23 }
 0x1c0   :  { %14 = sbr.rel (!%p12_p13) target bundleno = 4 (0x4), region = 114 }

// kernel: upsample_module_forward.15
= control target key start
LH: loop header
LB: loop body
LE: loop exit
PB: predicated region body
PF: predicated region fallthrough
CT: control target
= control target key end

     0   :  { %s312_s12 = smov 0   ;;  %s335_s0 = inlined_call_operand.vmem [shape: f32[8,8192], index: 0, kind: input, shape index: {}, may-alias: {0,3}]   ;;  %s336_s1 = inlined_call_operand.vmem [shape: f32[8,1], index: 1, kind: input, shape index: {}]   ;;  %s337_s2 = inlined_call_operand.vmem [shape: f32[8,1], index: 2, kind: input, shape index: {}]   ;;  %s338_s3 = inlined_call_operand.vmem [shape: f32[8,8192], index: 3, kind: output, shape index: {}, may-alias: {0,3}]  }
   0x1 LB: > { %s262_s13 = sadd.s32 4294967295, %s289_s12   ;;  %p266_p0 = scmp.ge.s32.totalorder %s289_s12, 1  ;;  %s289_s12 = sphi %s312_s12, %s13_s12  }
   0x2   : > { %p138_p1 = scmp.lt.s32.totalorder %s289_s12, 17 }
   0x4   : > { %p139_p2 = pnand %p266_p0, %p138_p1 }
   0x5   : > { %v178_v0 = vld [vmem:[%s336_s1] sm:$0xff] (!%p139_p2)  ;;  %v291_v1 = vmov (!%p139_p2), 0   ;;  %s267_s18 = sshll.u32 (!%p139_p2), %s262_s13, 2 }
   0x6   : > { %142 = sbr.rel (%p139_p2) target bundleno = 145 (0x91), region = 32  ;;  %282 = vset.pattern.permute.xlu0 (!%p139_p2), %v291_v1  ;;  %v188_v2 = vld [vmem:[%s337_s2] sm:$0xff] (!%p139_p2)  ;;  %p163_p3 = scmp.lt.s32.totalorder (!%p139_p2), %s267_s18, 63 }
   0x7   : > { %181 = vperm.xlu0 (!%p139_p2), %282, %v178_v0  }
   0xb   : > { %191 = vperm.xlu0 (!%p139_p2), %282, %v188_v2  }
   0xd   : > { %s340_s18 = smov (!%p163_p3, %s267_s18), 63 }
   0xe   : > { %s268_s19 = sshll.u32 %s340_s18, 3 }
   0xf   : > { %s166_s22 = scalar_lea.vmem %s335_s0, %s268_s19  ;;  %s172_s25 = scalar_lea.vmem %s338_s3, %s268_s19 }
  0x10   : > { %v174_v3 = vld [vmem:[%s166_s22] sm:$0xff]  ;;  %v175_v5 = vld [vmem:[%s166_s22 + $0x8] sm:$0xff]  ;;  %v176_v6 = vld [vmem:[%s166_s22 + $0x10] sm:$0xff] }
  0x11   : > { %v177_v7 = vld [vmem:[%s166_s22 + $0x18] sm:$0xff] }
  0x86   : > { %v182_v4 = vpop.permute.xlu0 %181 }
  0x87   : > { %v184_v8 = vmul.f32 %v182_v4, %v174_v3  ;;  %v185_v9 = vmul.f32 %v182_v4, %v175_v5  ;;  %v186_v10 = vmul.f32 %v182_v4, %v176_v6  ;;  %v187_v11 = vmul.f32 %v182_v4, %v177_v7 }
  0x8a   : > { %v192_v12 = vpop.permute.xlu0 %191 }
  0x8b   : > { %v194_v13 = vadd.f32 %v192_v12, %v184_v8  ;;  %v195_v14 = vadd.f32 %v192_v12, %v185_v9  ;;  %v196_v15 = vadd.f32 %v192_v12, %v186_v10  ;;  %v197_v16 = vadd.f32 %v192_v12, %v187_v11 }
  0x8d   : > { %v198_v17 = vmax.f32 %v194_v13, 0.0  ;;  %v199_v18 = vmax.f32 %v195_v14, 0.0  ;;  %v200_v19 = vmax.f32 %v196_v15, 0.0  ;;  %v201_v20 = vmax.f32 %v197_v16, 0.0 }
  0x8f   : > { %202 = vst [vmem:[%s172_s25] sm:$0xff] %v198_v17  ;;  %203 = vst [vmem:[%s172_s25 + $0x8] sm:$0xff] %v199_v18 }
  0x90   : > { %204 = vst [vmem:[%s172_s25 + $0x10] sm:$0xff] %v200_v19  ;;  %205 = vst [vmem:[%s172_s25 + $0x18] sm:$0xff] %v201_v20 }
  0x91 PF: > { %s13_s12 = sadd.s32 1, %s289_s12  }
  0x92   : > { %p10_p4 = scmp.ge.s32.totalorder %s13_s12, 18  }
  0x94   :  { %12 = sbr.rel (!%p10_p4) target bundleno = 1 (0x1), region = 62 }

// kernel: upsample_module_forward.16
= control target key start
LH: loop header
LB: loop body
LE: loop exit
PB: predicated region body
PF: predicated region fallthrough
CT: control target
= control target key end

     0   :  { %s1397_s15 = smov 0   ;;  %s1399_s16 = smov 0   ;;  %s1728_s0 = inlined_call_operand.vmem [shape: bf16[8,256], index: 0, kind: input, shape index: {}]   ;;  %s1729_s1 = inlined_call_operand.vmem [shape: bf16[256,8192], index: 1, kind: input, shape index: {}]   ;;  %s1730_s2 = inlined_call_operand.vmem [shape: f32[8,8192], index: 2, kind: output, shape index: {0}]   ;;  %s1731_s3 = inlined_call_operand.vmem [shape: f32[2,8,512], index: 3, kind: output, shape index: {1}]   ;;  %s1732_s4 = inlined_call_operand.vmem [shape: f32[2,8,512], index: 4, kind: output, shape index: {2}]  }
   0x1   :  { %s1401_s17 = smov 0   ;;  %s1403_s18 = smov 0  }
   0x2   :  { %s1405_s19 = smov 0   ;;  %s1407_s20 = smov 0  }
   0x3   :  { %s1409_s21 = smov 0  }
   0x4 LB: > { %s24_s22 = sadd.s32 1, %s1361_s19  ;;  %s27_s23 = sadd.s32 1, %s1365_s20  ;;  %s1369_s21 = sphi %s1409_s21, %s15_s21   ;;  %s1365_s20 = sphi %s1407_s20, %s1738_s20   ;;  %s1361_s19 = sphi %s1405_s19, %s1737_s19   ;;  %s1357_s18 = sphi %s1403_s18, %s1736_s18   ;;  %s1353_s17 = sphi %s1401_s17, %s1735_s17   ;;  %s1349_s16 = sphi %s1399_s16, %s1734_s16   ;;  %s1345_s15 = sphi %s1397_s15, %s1733_s15  }
   0x5   : > { %p25_p0 = scmp.ge.s32.totalorder %s24_s22, 8  ;;  %p66_p1 = scmp.ne.s32.totalorder %s1349_s16, %s1345_s15 }
   0x6   : > { %p67_p2 = scmp.eq.s32.totalorder %s1369_s21, 0  ;;  %s1069_s24 = sshll.u32 %s1365_s20, 3 }
   0x7   : > { %s1740_s22 = smov (%p25_p0, %s24_s22), 0  ;;  %s1742_s23 = smov (!%p25_p0, %s27_s23), %s1365_s20 }
   0x8   : > { %p29_p3 = scmp.ge.s32.totalorder %s1742_s23, 2  ;;  %p68_p4 = por %p67_p2, %p66_p1 }
   0x9   : > { %s53_s25 = sadd.s32 %s1361_s19, %s1069_s24  ;;  %s59_s29 = sadd.s32 1, %s1349_s16 }
   0xa   : > { %s1744_s23 = smov (%p29_p3, %s1742_s23), 0  ;;  %p1074_p6 = scmp.ge.s32.totalorder %s1369_s21, 16 }
   0xb   : > { %s1070_s26 = sshll.u32 %s1744_s23, 3 }
   0xc   : > { %s55_s27 = sadd.s32 %s1070_s26, %s1740_s22  ;;  %177 = sbr.rel (%p1074_p6) target bundleno = 55 (0x37), region = 20 }
   0xd   : > { %s56_s28 = ssub.s32 %s53_s25, %s55_s27 }
   0xe   : > { %p57_p5 = scmp.eq.s32.totalorder %s56_s28, 0 }
  0x10   : > { %s1448_s30 = scalar_select %p57_p5, %s1349_s16, %s59_s29  }
  0x13   : > { %180 = sbr.rel (!%p68_p4) target bundleno = 55 (0x37), region = 24  ;;  %s182_s5 = sand.u32 (%p68_p4), 1, %s1349_s16  }
  0x14   : > { %s1157_s6 = sshll.u32 (%p68_p4), %s53_s25, 4  ;;  %s1075_s7 = sshll.u32 (%p68_p4), %s182_s5, 9 }
  0x15   : > { %s1455_s10 = scalar_lea.vmem (%p68_p4), %s1729_s1, %s1157_s6  ;;  %s1460_s11 = scalar_lea.vmem (%p68_p4), [#allocation2], %s1075_s7 }
  0x16   : > { %v202_v0 = vld [vmem:[%s1455_s10] sm:$0xff] (%p68_p4)  ;;  %v204_v1 = vld [vmem:[%s1455_s10 + $0x8] sm:$0xff] (%p68_p4) }
  0x17   : > { %v206_v2 = vld [vmem:[%s1455_s10 + $0x100] sm:$0xff] (%p68_p4)  ;;  %203 = vst [vmem:[%s1460_s11] sm:$0xff] (%p68_p4), %v202_v0  ;;  %205 = vst [vmem:[%s1460_s11 + $0x8] sm:$0xff] (%p68_p4), %v204_v1  ;;  %v208_v3 = vld [vmem:[%s1455_s10 + $0x108] sm:$0xff] (%p68_p4) }
  0x18   : > { %207 = vst [vmem:[%s1460_s11 + $0x10] sm:$0xff] (%p68_p4), %v206_v2  ;;  %v210_v4 = vld [vmem:[%s1455_s10 + $0x200] sm:$0xff] (%p68_p4)  ;;  %v212_v5 = vld [vmem:[%s1455_s10 + $0x208] sm:$0xff] (%p68_p4)  ;;  %209 = vst [vmem:[%s1460_s11 + $0x18] sm:$0xff] (%p68_p4), %v208_v3 }
  0x19   : > { %211 = vst [vmem:[%s1460_s11 + $0x20] sm:$0xff] (%p68_p4), %v210_v4  ;;  %213 = vst [vmem:[%s1460_s11 + $0x28] sm:$0xff] (%p68_p4), %v212_v5  ;;  %v214_v6 = vld [vmem:[%s1455_s10 + $0x300] sm:$0xff] (%p68_p4)  ;;  %v216_v7 = vld [vmem:[%s1455_s10 + $0x308] sm:$0xff] (%p68_p4) }
  0x1a   : > { %v218_v8 = vld [vmem:[%s1455_s10 + $0x400] sm:$0xff]  ;;  %215 = vst [vmem:[%s1460_s11 + $0x30] sm:$0xff] %v214_v6  ;;  %217 = vst [vmem:[%s1460_s11 + $0x38] sm:$0xff] %v216_v7  ;;  %v220_v9 = vld [vmem:[%s1455_s10 + $0x408] sm:$0xff] }
  0x1b   : > { %219 = vst [vmem:[%s1460_s11 + $0x40] sm:$0xff] %v218_v8  ;;  %v222_v10 = vld [vmem:[%s1455_s10 + $0x500] sm:$0xff]  ;;  %v224_v11 = vld [vmem:[%s1455_s10 + $0x508] sm:$0xff]  ;;  %221 = vst [vmem:[%s1460_s11 + $0x48] sm:$0xff] %v220_v9 }
  0x1c   : > { %223 = vst [vmem:[%s1460_s11 + $0x50] sm:$0xff] %v222_v10  ;;  %225 = vst [vmem:[%s1460_s11 + $0x58] sm:$0xff] %v224_v11  ;;  %v226_v12 = vld [vmem:[%s1455_s10 + $0x600] sm:$0xff]  ;;  %v228_v13 = vld [vmem:[%s1455_s10 + $0x608] sm:$0xff] }
  0x1d   : > { %v230_v14 = vld [vmem:[%s1455_s10 + $0x700] sm:$0xff]  ;;  %227 = vst [vmem:[%s1460_s11 + $0x60] sm:$0xff] %v226_v12  ;;  %229 = vst [vmem:[%s1460_s11 + $0x68] sm:$0xff] %v228_v13  ;;  %v232_v15 = vld [vmem:[%s1455_s10 + $0x708] sm:$0xff] }
  0x1e   : > { %231 = vst [vmem:[%s1460_s11 + $0x70] sm:$0xff] %v230_v14  ;;  %v234_v16 = vld [vmem:[%s1455_s10 + $0x800] sm:$0xff]  ;;  %v236_v17 = vld [vmem:[%s1455_s10 + $0x808] sm:$0xff]  ;;  %233 = vst [vmem:[%s1460_s11 + $0x78] sm:$0xff] %v232_v15 }
  0x1f   : > { %235 = vst [vmem:[%s1460_s11 + $0x80] sm:$0xff] %v234_v16  ;;  %237 = vst [vmem:[%s1460_s11 + $0x88] sm:$0xff] %v236_v17  ;;  %v238_v18 = vld [vmem:[%s1455_s10 + $0x900] sm:$0xff]  ;;  %v240_v19 = vld [vmem:[%s1455_s10 + $0x908] sm:$0xff] }
  0x20   : > { %v242_v20 = vld [vmem:[%s1455_s10 + $0xa00] sm:$0xff]  ;;  %239 = vst [vmem:[%s1460_s11 + $0x90] sm:$0xff] %v238_v18  ;;  %241 = vst [vmem:[%s1460_s11 + $0x98] sm:$0xff] %v240_v19  ;;  %v244_v21 = vld [vmem:[%s1455_s10 + $0xa08] sm:$0xff] }
  0x21   : > { %243 = vst [vmem:[%s1460_s11 + $0xa0] sm:$0xff] %v242_v20  ;;  %v246_v22 = vld [vmem:[%s1455_s10 + $0xb00] sm:$0xff]  ;;  %v248_v23 = vld [vmem:[%s1455_s10 + $0xb08] sm:$0xff]  ;;  %245 = vst [vmem:[%s1460_s11 + $0xa8] sm:$0xff] %v244_v21 }
  0x22   : > { %247 = vst [vmem:[%s1460_s11 + $0xb0] sm:$0xff] %v246_v22  ;;  %249 = vst [vmem:[%s1460_s11 + $0xb8] sm:$0xff] %v248_v23  ;;  %v250_v24 = vld [vmem:[%s1455_s10 + $0xc00] sm:$0xff]  ;;  %v252_v25 = vld [vmem:[%s1455_s10 + $0xc08] sm:$0xff] }
  0x23   : > { %v254_v26 = vld [vmem:[%s1455_s10 + $0xd00] sm:$0xff]  ;;  %251 = vst [vmem:[%s1460_s11 + $0xc0] sm:$0xff] %v250_v24  ;;  %253 = vst [vmem:[%s1460_s11 + $0xc8] sm:$0xff] %v252_v25  ;;  %v256_v27 = vld [vmem:[%s1455_s10 + $0xd08] sm:$0xff] }
  0x24   : > { %255 = vst [vmem:[%s1460_s11 + $0xd0] sm:$0xff] %v254_v26  ;;  %v258_v28 = vld [vmem:[%s1455_s10 + $0xe00] sm:$0xff]  ;;  %v260_v29 = vld [vmem:[%s1455_s10 + $0xe08] sm:$0xff]  ;;  %257 = vst [vmem:[%s1460_s11 + $0xd8] sm:$0xff] %v256_v27 }
  0x25   : > { %259 = vst [vmem:[%s1460_s11 + $0xe0] sm:$0xff] %v258_v28  ;;  %261 = vst [vmem:[%s1460_s11 + $0xe8] sm:$0xff] %v260_v29  ;;  %v262_v30 = vld [vmem:[%s1455_s10 + $0xf00] sm:$0xff]  ;;  %v264_v31 = vld [vmem:[%s1455_s10 + $0xf08] sm:$0xff] }
  0x26   : > { %v266_v32 = vld [vmem:[%s1455_s10 + $0x1000] sm:$0xff]  ;;  %263 = vst [vmem:[%s1460_s11 + $0xf0] sm:$0xff] %v262_v30  ;;  %265 = vst [vmem:[%s1460_s11 + $0xf8] sm:$0xff] %v264_v31  ;;  %v268_v33 = vld [vmem:[%s1455_s10 + $0x1008] sm:$0xff] }
  0x27   : > { %267 = vst [vmem:[%s1460_s11 + $0x100] sm:$0xff] %v266_v32  ;;  %v270_v34 = vld [vmem:[%s1455_s10 + $0x1100] sm:$0xff]  ;;  %v272_v35 = vld [vmem:[%s1455_s10 + $0x1108] sm:$0xff]  ;;  %269 = vst [vmem:[%s1460_s11 + $0x108] sm:$0xff] %v268_v33 }
  0x28   : > { %271 = vst [vmem:[%s1460_s11 + $0x110] sm:$0xff] %v270_v34  ;;  %273 = vst [vmem:[%s1460_s11 + $0x118] sm:$0xff] %v272_v35  ;;  %v274_v36 = vld [vmem:[%s1455_s10 + $0x1200] sm:$0xff]  ;;  %v276_v37 = vld [vmem:[%s1455_s10 + $0x1208] sm:$0xff] }
  0x29   : > { %v278_v38 = vld [vmem:[%s1455_s10 + $0x1300] sm:$0xff]  ;;  %275 = vst [vmem:[%s1460_s11 + $0x120] sm:$0xff] %v274_v36  ;;  %277 = vst [vmem:[%s1460_s11 + $0x128] sm:$0xff] %v276_v37  ;;  %v280_v39 = vld [vmem:[%s1455_s10 + $0x1308] sm:$0xff] }
  0x2a   : > { %279 = vst [vmem:[%s1460_s11 + $0x130] sm:$0xff] %v278_v38  ;;  %v282_v40 = vld [vmem:[%s1455_s10 + $0x1400] sm:$0xff]  ;;  %v284_v41 = vld [vmem:[%s1455_s10 + $0x1408] sm:$0xff]  ;;  %281 = vst [vmem:[%s1460_s11 + $0x138] sm:$0xff] %v280_v39 }
  0x2b   : > { %283 = vst [vmem:[%s1460_s11 + $0x140] sm:$0xff] %v282_v40  ;;  %285 = vst [vmem:[%s1460_s11 + $0x148] sm:$0xff] %v284_v41  ;;  %v286_v42 = vld [vmem:[%s1455_s10 + $0x1500] sm:$0xff]  ;;  %v288_v43 = vld [vmem:[%s1455_s10 + $0x1508] sm:$0xff] }
  0x2c   : > { %v290_v44 = vld [vmem:[%s1455_s10 + $0x1600] sm:$0xff]  ;;  %287 = vst [vmem:[%s1460_s11 + $0x150] sm:$0xff] %v286_v42  ;;  %289 = vst [vmem:[%s1460_s11 + $0x158] sm:$0xff] %v288_v43  ;;  %v292_v45 = vld [vmem:[%s1455_s10 + $0x1608] sm:$0xff] }
  0x2d   : > { %291 = vst [vmem:[%s1460_s11 + $0x160] sm:$0xff] %v290_v44  ;;  %v294_v46 = vld [vmem:[%s1455_s10 + $0x1700] sm:$0xff]  ;;  %v296_v47 = vld [vmem:[%s1455_s10 + $0x1708] sm:$0xff]  ;;  %293 = vst [vmem:[%s1460_s11 + $0x168] sm:$0xff] %v292_v45 }
  0x2e   : > { %295 = vst [vmem:[%s1460_s11 + $0x170] sm:$0xff] %v294_v46  ;;  %297 = vst [vmem:[%s1460_s11 + $0x178] sm:$0xff] %v296_v47  ;;  %v298_v48 = vld [vmem:[%s1455_s10 + $0x1800] sm:$0xff]  ;;  %v300_v49 = vld [vmem:[%s1455_s10 + $0x1808] sm:$0xff] }
  0x2f   : > { %v302_v50 = vld [vmem:[%s1455_s10 + $0x1900] sm:$0xff]  ;;  %299 = vst [vmem:[%s1460_s11 + $0x180] sm:$0xff] %v298_v48  ;;  %301 = vst [vmem:[%s1460_s11 + $0x188] sm:$0xff] %v300_v49  ;;  %v304_v51 = vld [vmem:[%s1455_s10 + $0x1908] sm:$0xff] }
  0x30   : > { %303 = vst [vmem:[%s1460_s11 + $0x190] sm:$0xff] %v302_v50  ;;  %v306_v52 = vld [vmem:[%s1455_s10 + $0x1a00] sm:$0xff]  ;;  %v308_v53 = vld [vmem:[%s1455_s10 + $0x1a08] sm:$0xff]  ;;  %305 = vst [vmem:[%s1460_s11 + $0x198] sm:$0xff] %v304_v51 }
  0x31   : > { %307 = vst [vmem:[%s1460_s11 + $0x1a0] sm:$0xff] %v306_v52  ;;  %309 = vst [vmem:[%s1460_s11 + $0x1a8] sm:$0xff] %v308_v53  ;;  %v310_v54 = vld [vmem:[%s1455_s10 + $0x1b00] sm:$0xff]  ;;  %v312_v55 = vld [vmem:[%s1455_s10 + $0x1b08] sm:$0xff] }
  0x32   : > { %v314_v56 = vld [vmem:[%s1455_s10 + $0x1c00] sm:$0xff]  ;;  %311 = vst [vmem:[%s1460_s11 + $0x1b0] sm:$0xff] %v310_v54  ;;  %313 = vst [vmem:[%s1460_s11 + $0x1b8] sm:$0xff] %v312_v55  ;;  %v316_v57 = vld [vmem:[%s1455_s10 + $0x1c08] sm:$0xff] }
  0x33   : > { %315 = vst [vmem:[%s1460_s11 + $0x1c0] sm:$0xff] %v314_v56  ;;  %v318_v58 = vld [vmem:[%s1455_s10 + $0x1d00] sm:$0xff]  ;;  %v320_v59 = vld [vmem:[%s1455_s10 + $0x1d08] sm:$0xff]  ;;  %317 = vst [vmem:[%s1460_s11 + $0x1c8] sm:$0xff] %v316_v57 }
  0x34   : > { %319 = vst [vmem:[%s1460_s11 + $0x1d0] sm:$0xff] %v318_v58  ;;  %321 = vst [vmem:[%s1460_s11 + $0x1d8] sm:$0xff] %v320_v59  ;;  %v322_v60 = vld [vmem:[%s1455_s10 + $0x1e00] sm:$0xff]  ;;  %v324_v61 = vld [vmem:[%s1455_s10 + $0x1e08] sm:$0xff] }
  0x35   : > { %v326_v62 = vld [vmem:[%s1455_s10 + $0x1f00] sm:$0xff]  ;;  %323 = vst [vmem:[%s1460_s11 + $0x1e0] sm:$0xff] %v322_v60  ;;  %325 = vst [vmem:[%s1460_s11 + $0x1e8] sm:$0xff] %v324_v61  ;;  %v328_v63 = vld [vmem:[%s1455_s10 + $0x1f08] sm:$0xff] }
  0x36   : > { %327 = vst [vmem:[%s1460_s11 + $0x1f0] sm:$0xff] %v326_v62  ;;  %329 = vst [vmem:[%s1460_s11 + $0x1f8] sm:$0xff] %v328_v63 }
  0x37 PF: > { %p1079_p7 = scmp.ge.s32.totalorder %s1369_s21, 1  ;;  %p334_p8 = scmp.lt.s32.totalorder %s1369_s21, 17 }
  0x39   : > { %p335_p9 = pnand %p1079_p7, %p334_p8 }
  0x3a   : > { %s341_s12 = sand.u32 (!%p335_p9), 1, %s1345_s15   ;;  %p391_p10 = scmp.lt.s32.totalorder (!%p335_p9), %s1357_s18, 1  ;;  %v1594_v0 = vld [vmem:[%s1728_s0] sm:$0xff] (!%p335_p9) }
  0x3b   : > { %338 = sbr.rel (%p335_p9) target bundleno = 348 (0x15c), region = 47  ;;  %s1080_s24 = sshll.u32 (!%p335_p9), %s341_s12, 9  ;;  %v1089_v1 = vcombine.high (!%p335_p9), %v1594_v0, %v1594_v0 }
  0x3c   : > { %s1599_s26 = scalar_lea.vmem (!%p335_p9), [#allocation2], %s1080_s24  ;;  %s1081_s8 = sshll.u32 (!%p335_p9), %s1357_s18, 3 }
  0x3d   : > { %v1217_v2 = vld [vmem:[%s1599_s26 + $0x4] ss:$16 sps:$4 sm:$0xff] (!%p335_p9)   ;;  %825 = vmatprep.mubr.bf16.mxu0 (!%p335_p9), %v1089_v1  ;;  %866 = vmatprep.mubr.bf16.mxu1 (!%p335_p9), %v1089_v1  ;;  %v1219_v3 = vld [vmem:[%s1599_s26 + $0xc] ss:$16 sps:$4 sm:$0xff] (!%p335_p9)   ;;  %v1221_v4 = vld [vmem:[%s1599_s26] ss:$16 sps:$4 sm:$0xff] (!%p335_p9)   ;;  %s382_s9 = sadd.s32 (!%p335_p9), %s1353_s17, %s1081_s8 }
  0x3e   : > { %793 = vmatprep.subr.bf16.mxu0 (!%p335_p9), %v1217_v2  ;;  %v1222_v5 = vld [vmem:[%s1599_s26 + $0x8] ss:$16 sps:$4 sm:$0xff] (!%p335_p9)   ;;  %834 = vmatprep.subr.bf16.mxu1 (!%p335_p9), %v1219_v3  ;;  %v1223_v6 = vld [vmem:[%s1599_s26 + $0x24] ss:$16 sps:$4 sm:$0xff] (!%p335_p9)   ;;  %v1225_v7 = vld [vmem:[%s1599_s26 + $0x2c] ss:$16 sps:$4 sm:$0xff] (!%p335_p9)   ;;  %v1088_v3 = vcombine.low (!%p335_p9), %v1594_v0, %v1594_v0 }
  0x3f   : > { %794 = vmatpush1.bf16.msra.mxu0 (!%p335_p9), %v1221_v4  ;;  %835 = vmatpush1.bf16.msra.mxu1 (!%p335_p9), %v1222_v5  ;;  %v1227_v8 = vld [vmem:[%s1599_s26 + $0x20] ss:$16 sps:$4 sm:$0xff] (!%p335_p9)   ;;  %v1228_v9 = vld [vmem:[%s1599_s26 + $0x28] ss:$16 sps:$4 sm:$0xff] (!%p335_p9)   ;;  %v1229_v10 = vld [vmem:[%s1599_s26 + $0x44] ss:$16 sps:$4 sm:$0xff] (!%p335_p9)  }
  0x40   : > { %795 = vmatprep.subr.bf16.mxu0 (!%p335_p9), %v1223_v6  ;;  %836 = vmatprep.subr.bf16.mxu1 (!%p335_p9), %v1225_v7  ;;  %v1231_v11 = vld [vmem:[%s1599_s26 + $0x4c] ss:$16 sps:$4 sm:$0xff] (!%p335_p9)   ;;  %v1233_v12 = vld [vmem:[%s1599_s26 + $0x40] ss:$16 sps:$4 sm:$0xff] (!%p335_p9)   ;;  %v1234_v13 = vld [vmem:[%s1599_s26 + $0x48] ss:$16 sps:$4 sm:$0xff] (!%p335_p9)  }
  0x41   : > { %v1235_v14 = vld [vmem:[%s1599_s26 + $0x64] ss:$16 sps:$4 sm:$0xff] (!%p335_p9)   ;;  %v1237_v15 = vld [vmem:[%s1599_s26 + $0x6c] ss:$16 sps:$4 sm:$0xff] (!%p335_p9)   ;;  %v1239_v16 = vld [vmem:[%s1599_s26 + $0x60] ss:$16 sps:$4 sm:$0xff] (!%p335_p9)  }
  0x42   : > { %s392_s25 = scalar_select %p391_p10, %s1357_s18, 1  ;;  %v1240_v17 = vld [vmem:[%s1599_s26 + $0x68] ss:$16 sps:$4 sm:$0xff]   ;;  %v1241_v18 = vld [vmem:[%s1599_s26 + $0x84] ss:$16 sps:$4 sm:$0xff]  }
  0x43   : > { %796 = vmatpush1.bf16.msra.mxu0 %v1227_v8  ;;  %837 = vmatpush1.bf16.msra.mxu1 %v1228_v9  ;;  %v1243_v19 = vld [vmem:[%s1599_s26 + $0x8c] ss:$16 sps:$4 sm:$0xff]   ;;  %v1245_v20 = vld [vmem:[%s1599_s26 + $0x80] ss:$16 sps:$4 sm:$0xff]   ;;  %v1246_v21 = vld [vmem:[%s1599_s26 + $0x88] ss:$16 sps:$4 sm:$0xff]  }
  0x44   : > { %s1158_s15 = sshll.u32 %s392_s25, 5  ;;  %797 = vmatprep.subr.bf16.mxu0 %v1229_v10  ;;  %838 = vmatprep.subr.bf16.mxu1 %v1231_v11  ;;  %v1247_v22 = vld [vmem:[%s1599_s26 + $0xa4] ss:$16 sps:$4 sm:$0xff]   ;;  %v1249_v23 = vld [vmem:[%s1599_s26 + $0xac] ss:$16 sps:$4 sm:$0xff]   ;;  %s1082_s10 = sshll.u32 %s382_s9, 2 }
  0x45   : > { %s1608_s29 = scalar_lea.vmem %s1731_s3, %s1158_s15  ;;  %s1613_s7 = scalar_lea.vmem %s1732_s4, %s1158_s15  ;;  %v1251_v24 = vld [vmem:[%s1599_s26 + $0xa0] ss:$16 sps:$4 sm:$0xff]   ;;  %v1252_v25 = vld [vmem:[%s1599_s26 + $0xa8] ss:$16 sps:$4 sm:$0xff]   ;;  %v1253_v26 = vld [vmem:[%s1599_s26 + $0xc4] ss:$16 sps:$4 sm:$0xff]  }
  0x46   : > { %v1255_v27 = vld [vmem:[%s1599_s26 + $0xcc] ss:$16 sps:$4 sm:$0xff]   ;;  %v1257_v28 = vld [vmem:[%s1599_s26 + $0xc0] ss:$16 sps:$4 sm:$0xff]   ;;  %v1258_v29 = vld [vmem:[%s1599_s26 + $0xc8] ss:$16 sps:$4 sm:$0xff]  }
  0x47   : > { %798 = vmatpush1.bf16.msra.mxu0 %v1233_v12  ;;  %839 = vmatpush1.bf16.msra.mxu1 %v1234_v13  ;;  %v1259_v30 = vld [vmem:[%s1599_s26 + $0xe4] ss:$16 sps:$4 sm:$0xff]   ;;  %v1261_v31 = vld [vmem:[%s1599_s26 + $0xec] ss:$16 sps:$4 sm:$0xff]   ;;  %v1263_v32 = vld [vmem:[%s1599_s26 + $0xe0] ss:$16 sps:$4 sm:$0xff]  }
  0x48   : > { %799 = vmatprep.subr.bf16.mxu0 %v1235_v14  ;;  %840 = vmatprep.subr.bf16.mxu1 %v1237_v15  ;;  %v1264_v33 = vld [vmem:[%s1599_s26 + $0xe8] ss:$16 sps:$4 sm:$0xff]   ;;  %v1265_v34 = vld [vmem:[%s1599_s26 + $0x104] ss:$16 sps:$4 sm:$0xff]   ;;  %v1267_v35 = vld [vmem:[%s1599_s26 + $0x10c] ss:$16 sps:$4 sm:$0xff]  }
  0x49   : > { %v1269_v36 = vld [vmem:[%s1599_s26 + $0x100] ss:$16 sps:$4 sm:$0xff]   ;;  %v1270_v37 = vld [vmem:[%s1599_s26 + $0x108] ss:$16 sps:$4 sm:$0xff]   ;;  %v1271_v38 = vld [vmem:[%s1599_s26 + $0x124] ss:$16 sps:$4 sm:$0xff]  }
  0x4a   : > { %v1273_v39 = vld [vmem:[%s1599_s26 + $0x12c] ss:$16 sps:$4 sm:$0xff]   ;;  %v1275_v40 = vld [vmem:[%s1599_s26 + $0x120] ss:$16 sps:$4 sm:$0xff]   ;;  %v1276_v41 = vld [vmem:[%s1599_s26 + $0x128] ss:$16 sps:$4 sm:$0xff]  }
  0x4b   : > { %800 = vmatpush1.bf16.msra.mxu0 %v1239_v16  ;;  %841 = vmatpush1.bf16.msra.mxu1 %v1240_v17  ;;  %v1277_v42 = vld [vmem:[%s1599_s26 + $0x144] ss:$16 sps:$4 sm:$0xff]   ;;  %v1279_v43 = vld [vmem:[%s1599_s26 + $0x14c] ss:$16 sps:$4 sm:$0xff]   ;;  %v1281_v44 = vld [vmem:[%s1599_s26 + $0x140] ss:$16 sps:$4 sm:$0xff]  }
  0x4c   : > { %801 = vmatprep.subr.bf16.mxu0 %v1241_v18  ;;  %842 = vmatprep.subr.bf16.mxu1 %v1243_v19  ;;  %v1282_v45 = vld [vmem:[%s1599_s26 + $0x148] ss:$16 sps:$4 sm:$0xff]   ;;  %v1283_v46 = vld [vmem:[%s1599_s26 + $0x164] ss:$16 sps:$4 sm:$0xff]   ;;  %v1285_v47 = vld [vmem:[%s1599_s26 + $0x16c] ss:$16 sps:$4 sm:$0xff]  }
  0x4d   : > { %v1287_v48 = vld [vmem:[%s1599_s26 + $0x160] ss:$16 sps:$4 sm:$0xff]   ;;  %v1288_v49 = vld [vmem:[%s1599_s26 + $0x168] ss:$16 sps:$4 sm:$0xff]   ;;  %v1289_v50 = vld [vmem:[%s1599_s26 + $0x184] ss:$16 sps:$4 sm:$0xff]  }
  0x4e   : > { %v1291_v51 = vld [vmem:[%s1599_s26 + $0x18c] ss:$16 sps:$4 sm:$0xff]   ;;  %v1293_v52 = vld [vmem:[%s1599_s26 + $0x180] ss:$16 sps:$4 sm:$0xff]   ;;  %v1294_v53 = vld [vmem:[%s1599_s26 + $0x188] ss:$16 sps:$4 sm:$0xff]  }
  0x4f   : > { %802 = vmatpush1.bf16.msra.mxu0 %v1245_v20  ;;  %843 = vmatpush1.bf16.msra.mxu1 %v1246_v21  ;;  %v1295_v54 = vld [vmem:[%s1599_s26 + $0x1a4] ss:$16 sps:$4 sm:$0xff]   ;;  %v1297_v55 = vld [vmem:[%s1599_s26 + $0x1ac] ss:$16 sps:$4 sm:$0xff]   ;;  %v1299_v56 = vld [vmem:[%s1599_s26 + $0x1a0] ss:$16 sps:$4 sm:$0xff]  }
  0x50   : > { %803 = vmatprep.subr.bf16.mxu0 %v1247_v22  ;;  %844 = vmatprep.subr.bf16.mxu1 %v1249_v23  ;;  %v1300_v57 = vld [vmem:[%s1599_s26 + $0x1a8] ss:$16 sps:$4 sm:$0xff]   ;;  %v1301_v58 = vld [vmem:[%s1599_s26 + $0x1c4] ss:$16 sps:$4 sm:$0xff]   ;;  %v1303_v59 = vld [vmem:[%s1599_s26 + $0x1cc] ss:$16 sps:$4 sm:$0xff]  }
  0x51   : > { %v1305_v60 = vld [vmem:[%s1599_s26 + $0x1c0] ss:$16 sps:$4 sm:$0xff]   ;;  %v1306_v61 = vld [vmem:[%s1599_s26 + $0x1c8] ss:$16 sps:$4 sm:$0xff]   ;;  %v1307_v62 = vld [vmem:[%s1599_s26 + $0x1e4] ss:$16 sps:$4 sm:$0xff]  }
  0x52   : > { %v1309_v63 = vld [vmem:[%s1599_s26 + $0x1ec] ss:$16 sps:$4 sm:$0xff]   ;;  %v1311_v1 = vld [vmem:[%s1599_s26 + $0x1e0] ss:$16 sps:$4 sm:$0xff]   ;;  %v1312_v2 = vld [vmem:[%s1599_s26 + $0x1e8] ss:$16 sps:$4 sm:$0xff]  }
  0x53   : > { %804 = vmatpush1.bf16.msra.mxu0 %v1251_v24  ;;  %845 = vmatpush1.bf16.msra.mxu1 %v1252_v25  ;;  %p384_p11 = scmp.lt.s32.totalorder %s1082_s10, 63  ;;  %p1154_p12 = scmp.ne.s32.totalorder %s1353_s17, 0 }
  0x54   : > { %805 = vmatprep.subr.bf16.mxu0 %v1253_v26  ;;  %846 = vmatprep.subr.bf16.mxu1 %v1255_v27  ;;  %v1371_v11 = vmov (!%p1154_p12), 0.0  }
  0x55   : > { %s1746_s10 = smov (!%p384_p11, %s1082_s10), 63  ;;  %883 = vst [vmem:[%s1608_s29] sm:$0xff] (!%p1154_p12), %v1371_v11  ;;  %884 = vst [vmem:[%s1608_s29 + $0x8] sm:$0xff] (!%p1154_p12), %v1371_v11 }
  0x56   : > { %s1083_s11 = sshll.u32 %s1746_s10, 3  ;;  %885 = vst [vmem:[%s1608_s29 + $0x10] sm:$0xff] (!%p1154_p12), %v1371_v11  ;;  %886 = vst [vmem:[%s1608_s29 + $0x18] sm:$0xff] (!%p1154_p12), %v1371_v11 }
  0x57   : > { %806 = vmatpush1.bf16.msra.mxu0 %v1257_v28  ;;  %847 = vmatpush1.bf16.msra.mxu1 %v1258_v29  ;;  %s387_s14 = scalar_lea.vmem %s1730_s2, %s1083_s11  ;;  %887 = vst [vmem:[%s1613_s7] sm:$0xff] (!%p1154_p12), %v1371_v11  ;;  %888 = vst [vmem:[%s1613_s7 + $0x8] sm:$0xff] (!%p1154_p12), %v1371_v11 }
  0x58   : > { %807 = vmatprep.subr.bf16.mxu0 %v1259_v30  ;;  %848 = vmatprep.subr.bf16.mxu1 %v1261_v31  ;;  %889 = vst [vmem:[%s1613_s7 + $0x10] sm:$0xff] (!%p1154_p12), %v1371_v11  ;;  %890 = vst [vmem:[%s1613_s7 + $0x18] sm:$0xff] (!%p1154_p12), %v1371_v11 }
  0x5b   : > { %808 = vmatpush1.bf16.msra.mxu0 %v1263_v32  ;;  %849 = vmatpush1.bf16.msra.mxu1 %v1264_v33 }
  0x5c   : > { %809 = vmatprep.subr.bf16.mxu0 %v1265_v34  ;;  %850 = vmatprep.subr.bf16.mxu1 %v1267_v35 }
  0x5f   : > { %810 = vmatpush1.bf16.msra.mxu0 %v1269_v36  ;;  %851 = vmatpush1.bf16.msra.mxu1 %v1270_v37 }
  0x60   : > { %811 = vmatprep.subr.bf16.mxu0 %v1271_v38  ;;  %852 = vmatprep.subr.bf16.mxu1 %v1273_v39 }
  0x63   : > { %812 = vmatpush1.bf16.msra.mxu0 %v1275_v40  ;;  %853 = vmatpush1.bf16.msra.mxu1 %v1276_v41 }
  0x64   : > { %813 = vmatprep.subr.bf16.mxu0 %v1277_v42  ;;  %854 = vmatprep.subr.bf16.mxu1 %v1279_v43 }
  0x67   : > { %814 = vmatpush1.bf16.msra.mxu0 %v1281_v44  ;;  %855 = vmatpush1.bf16.msra.mxu1 %v1282_v45 }
  0x68   : > { %815 = vmatprep.subr.bf16.mxu0 %v1283_v46  ;;  %856 = vmatprep.subr.bf16.mxu1 %v1285_v47 }
  0x6b   : > { %816 = vmatpush1.bf16.msra.mxu0 %v1287_v48  ;;  %857 = vmatpush1.bf16.msra.mxu1 %v1288_v49 }
  0x6c   : > { %817 = vmatprep.subr.bf16.mxu0 %v1289_v50  ;;  %858 = vmatprep.subr.bf16.mxu1 %v1291_v51 }
  0x6f   : > { %818 = vmatpush1.bf16.msra.mxu0 %v1293_v52  ;;  %859 = vmatpush1.bf16.msra.mxu1 %v1294_v53 }
  0x70   : > { %819 = vmatprep.subr.bf16.mxu0 %v1295_v54  ;;  %860 = vmatprep.subr.bf16.mxu1 %v1297_v55 }
  0x73   : > { %820 = vmatpush1.bf16.msra.mxu0 %v1299_v56  ;;  %861 = vmatpush1.bf16.msra.mxu1 %v1300_v57 }
  0x74   : > { %821 = vmatprep.subr.bf16.mxu0 %v1301_v58  ;;  %862 = vmatprep.subr.bf16.mxu1 %v1303_v59 }
  0x77   : > { %822 = vmatpush1.bf16.msra.mxu0 %v1305_v60  ;;  %863 = vmatpush1.bf16.msra.mxu1 %v1306_v61 }
  0x78   : > { %823 = vmatprep.subr.bf16.mxu0 %v1307_v62  ;;  %864 = vmatprep.subr.bf16.mxu1 %v1309_v63 }
  0x7b   : > { %824 = vmatpush1.bf16.msra.mxu0 %v1311_v1  ;;  %865 = vmatpush1.bf16.msra.mxu1 %v1312_v2 }
  0x7e   : > { %826 = vmatmul.mubr.bf16.vlgmr.msra.gmra.mrb[0].mxu0 %v1088_v3  ;;  %867 = vmatmul.mubr.bf16.vlgmr.msra.gmra.mrb[0].mxu1 %v1088_v3 }
 0x14e   : > { %882 = sbr.rel (%p1154_p12) target bundleno = 341 (0x155), region = 55 }
 0x151   : > { %v827_v4 = vpop.f32.mrb[0].mxu0  ;;  %v868_v5 = vpop.f32.mrb[0].mxu1 }
 0x152   : > { %875 = vst [vmem:[%s387_s14] sm:$0xff] %v827_v4  ;;  %877 = vst [vmem:[%s387_s14 + $0x10] sm:$0xff] %v868_v5  ;;  %v829_v6 = vpop.f32.mrb[1].mxu0  ;;  %v870_v0 = vpop.f32.mrb[1].mxu1 }
 0x153   : > { %876 = vst [vmem:[%s387_s14 + $0x8] sm:$0xff] %v829_v6  ;;  %878 = vst [vmem:[%s387_s14 + $0x18] sm:$0xff] %v870_v0  ;;  %v831_v7 = vpop.f32.mrb[2].mxu0  ;;  %v872_v8 = vpop.f32.mrb[2].mxu1 }
 0x154   : > { %v832_v9 = vpop.f32.mrb[3].mxu0  ;;  %v873_v10 = vpop.f32.mrb[3].mxu1 }
 0x155 PF: > { %v891_v12 = vld [vmem:[%s1608_s29] sm:$0xff]  ;;  %v892_v13 = vld [vmem:[%s1608_s29 + $0x8] sm:$0xff]  ;;  %v893_v14 = vld [vmem:[%s1608_s29 + $0x10] sm:$0xff]  ;;  %v907_v15 = vmul.f32 %v827_v4, %v827_v4  ;;  %v908_v16 = vmul.f32 %v829_v6, %v829_v6  ;;  %v909_v17 = vmul.f32 %v868_v5, %v868_v5  ;;  %v910_v18 = vmul.f32 %v870_v0, %v870_v0 }
 0x156   : > { %v895_v19 = vadd.f32 %v891_v12, %v827_v4  ;;  %v896_v20 = vadd.f32 %v892_v13, %v829_v6  ;;  %v897_v21 = vadd.f32 %v893_v14, %v868_v5  ;;  %v894_v22 = vld [vmem:[%s1608_s29 + $0x18] sm:$0xff]  ;;  %v903_v23 = vld [vmem:[%s1613_s7] sm:$0xff]  ;;  %v904_v24 = vld [vmem:[%s1613_s7 + $0x8] sm:$0xff] }
 0x157   : > { %v898_v25 = vadd.f32 %v894_v22, %v870_v0  ;;  %v911_v26 = vadd.f32 %v907_v15, %v903_v23  ;;  %v912_v27 = vadd.f32 %v908_v16, %v904_v24  ;;  %v905_v28 = vld [vmem:[%s1613_s7 + $0x10] sm:$0xff]  ;;  %v906_v29 = vld [vmem:[%s1613_s7 + $0x18] sm:$0xff] }
 0x158   : > { %899 = vst [vmem:[%s1608_s29] sm:$0xff] %v895_v19  ;;  %900 = vst [vmem:[%s1608_s29 + $0x8] sm:$0xff] %v896_v20  ;;  %v913_v30 = vadd.f32 %v909_v17, %v905_v28  ;;  %v914_v31 = vadd.f32 %v910_v18, %v906_v29 }
 0x159   : > { %901 = vst [vmem:[%s1608_s29 + $0x10] sm:$0xff] %v897_v21  ;;  %902 = vst [vmem:[%s1608_s29 + $0x18] sm:$0xff] %v898_v25 }
 0x15a   : > { %915 = vst [vmem:[%s1613_s7] sm:$0xff] %v911_v26  ;;  %916 = vst [vmem:[%s1613_s7 + $0x8] sm:$0xff] %v912_v27 }
 0x15b   : > { %917 = vst [vmem:[%s1613_s7 + $0x10] sm:$0xff] %v913_v30  ;;  %918 = vst [vmem:[%s1613_s7 + $0x18] sm:$0xff] %v914_v31 }
 0x15c PF: > { %s15_s21 = sadd.s32 1, %s1369_s21   ;;  %s1733_s15 = smov %s1349_s16 }
 0x15d   : > { %p12_p13 = scmp.ge.s32.totalorder %s15_s21, 18   ;;  %s1734_s16 = smov %s1448_s30 }
 0x15e   : > { %s1735_s17 = smov %s1361_s19  ;;  %s1736_s18 = smov %s1365_s20 }
 0x15f   : > { %s1737_s19 = smov %s1740_s22  ;;  %s1738_s20 = smov %s1744_s23 }
 0x160   :  { %14 = sbr.rel (!%p12_p13) target bundleno = 4 (0x4), region = 114 }

</bundles_post_ra>
